<compile_context>
chip_gen: v7x
topology: tpu7x:2x2x1
jax: 0.10.0
libtpu: 0.0.40
codegen_flags: <defaults>
</compile_context>

<pallas_src>
import numpy as np
import jax
import jax.numpy as jnp
from jax import lax
from jax.experimental import pallas as pl
from jax.experimental.pallas import tpu as pltpu

# ---- model hyper-parameters (small, consistent with the module defaults) ----
N_NODES = 16
HID_DIM = 32
HEADS = 8
HEAD_DIM = HID_DIM // HEADS
NUM_LAYERS = 4
COORD_IN = 6            # coords_dim[0] default of GATv2Model
COORD_OUT = 2           # coords_dim[1] default of GATv2Model
BATCH = 2
LN_EPS = 1e-5
NEG_SLOPE = 0.2         # GATv2Conv leaky_relu negative_slope default

OP_ORDER = ["el", "Wlr", "Wp", "AattBig", "blr", "bln",
            "w_in1", "w_in2", "b_in", "Wo", "bo",
            "Woh3", "Wrux", "Wcx", "bg3f",
            "rep", "tmask", "erep", "gsum"]


def _mdot(a, b):
    """MXU matmul: bf16 operands, f32 accumulate."""
    return jnp.dot(a.astype(jnp.bfloat16), b.astype(jnp.bfloat16),
                   preferred_element_type=jnp.float32)


def _layernorm(v, gamma, beta):
    mu = jnp.mean(v, axis=-1, keepdims=True)
    var = jnp.mean(jnp.square(v - mu), axis=-1, keepdims=True)
    return (v - mu) * jax.lax.rsqrt(var + LN_EPS) * gamma + beta


def _kernel(x_ref, hx_ref, el_ref, Wlr_ref, Wp_ref, Aatt_ref, blr_ref, bln_ref,
            w_in1_ref, w_in2_ref, b_in_ref, Wo_ref, bo_ref,
            Woh3_ref, Wrux_ref, Wcx_ref, bg3f_ref,
            rep_ref, tmask_ref, erep_ref, gsum_ref,
            hgat_ref, hnew_ref):
    N, D = N_NODES, HID_DIM
    BB = x_ref.shape[0]          # batch elements (stacked on the sublane axis)
    R = BB * N
    bf16 = jnp.bfloat16

    x = x_ref[...].reshape(R, COORD_IN)
    hx = hx_ref[...].reshape(R, D)

    # Precomputed selection / replication constants (replicated inputs, loaded once).
    rep_c = rep_ref[...]         # (D, N*D)   bf16: lane-group replication of a (·, D) tile
    tmask_c = tmask_ref[...]     # (N, N*D)   bf16: per-target lane-group mask
    erep_c = erep_ref[...]       # (N*H, D)   bf16: head(d) selection
    gsum_c = gsum_ref[...]       # (N, N*H)   bf16: per-target head-group selection
    ones_n = jnp.ones((N, N), dtype=bf16)

    # ---- input MLP: Linear -> LayerNorm -> ReLU -> Linear -> LayerNorm ----
    h = _mdot(x, w_in1_ref[...]) + b_in_ref[0:1, :]
    h = _layernorm(h, b_in_ref[1:2, :], b_in_ref[2:3, :])
    h = jnp.maximum(h, 0.0)
    h = _mdot(h, w_in2_ref[...]) + b_in_ref[3:4, :]
    h = _layernorm(h, b_in_ref[4:5, :], b_in_ref[5:6, :])

    # ---- GATv2 layers (dense all-pairs graph, 8 heads, concat) ----
    def layer_body(l, h):
        Wlr_l, Wp_l, Aatt_l = Wlr_ref[l], Wp_ref[l], Aatt_ref[l]
        blr_l, bln_l, el_l = blr_ref[l], bln_ref[l], el_ref[l]
        h_prev = h
        xlr = _mdot(h, Wlr_l) + blr_l                        # (R, 2D): [lin_l | lin_r]
        parts = []
        for b in range(BB):
            xl = xlr[b * N:(b + 1) * N, 0:D]                 # (N, D) source transform
            xr = xlr[b * N:(b + 1) * N, D:2 * D]             # (N, D) target transform
            # xl replicated over targets on the lane axis: xl_t[i, j*D+d] = xl[i, d]
            xl_t = _mdot(xl, rep_c)
            # xr broadcast over sources on the sublane axis: xr_b[i, j*D+d] = xr[j, d]
            xr_spread = _mdot(xr, rep_c).astype(bf16) * tmask_c
            xr_b = _mdot(ones_n, xr_spread)
            # s[i, j*D+d] = x_l[i,d] + x_r[j,d] + edge(i->j)[d]   (lane-dense (16, 512))
            s = xl_t + xr_b + el_l
            s = jnp.where(s >= 0.0, s, NEG_SLOPE * s)        # leaky_relu
            # per-(target, head) logits via block-diagonal att matmul -> (16, 128)
            logits = _mdot(s, Aatt_l)
            # softmax over sources (sublane axis)
            m = jnp.max(logits, axis=0, keepdims=True)
            p = jnp.exp(logits - m)
            den = jnp.sum(p, axis=0, keepdims=True)
            alpha = p * pl.reciprocal(den, approx=True)      # (N_src, N_tgt*H)
            # aggregate: msrc[j*H+h, d] = sum_i alpha[i, j*H+h] * x_l[i, d]
            # contract source axis of both operands -> no explicit alpha.T transpose
            msrc = lax.dot_general(alpha.astype(bf16), xl.astype(bf16),
                                   dimension_numbers=(((0,), (0,)), ((), ())),
                                   preferred_element_type=jnp.float32)   # (N*H, D)
            # agg[j, d] = msrc[j*H + head(d), d]
            parts.append(_mdot(gsum_c, msrc.astype(bf16) * erep_c))      # (N, D)
        agg = parts[0] if BB == 1 else jnp.concatenate(parts, axis=0)
        hp = _mdot(agg + bln_l[0:1, :], Wp_l) + bln_l[1:2, :]   # conv bias, projection
        hp = _layernorm(hp, bln_l[2:3, :], bln_l[3:4, :])
        hp = jnp.maximum(hp, 0.0)
        return hp + h_prev                                      # residual

    h = lax.fori_loop(0, NUM_LAYERS, layer_body, h)

    # ---- output layer of the GAT model ----
    h_gat = _mdot(h, Wo_ref[...]) + bo_ref[...]               # (R, 2)
    hgat_ref[...] = h_gat.reshape(BB, N, COORD_OUT).astype(hgat_ref.dtype)

    # ---- GRU-style recurrent gates (h-side matmul folded through Wo on host) ----
    g3 = _mdot(h, Woh3_ref[...]) + bg3f_ref[...]              # (R, 3D): [r|u|c] h-parts
    ru = _mdot(hx, Wrux_ref[...])                             # (R, 2D): [r|u] hx-parts
    r = jax.nn.sigmoid(g3[:, 0:D] + ru[:, 0:D])
    u = jax.nn.sigmoid(g3[:, D:2 * D] + ru[:, D:2 * D])
    c = jnp.tanh(g3[:, 2 * D:3 * D] + _mdot(r * hx, Wcx_ref[...]))
    h_new = u * hx + (1.0 - u) * c
    hnew_ref[...] = h_new.reshape(BB, N, D).astype(hnew_ref.dtype)


# ------------------------- host-side packing (done ONCE) ---------------------

def _pack_operands(eemb_ts, params):
    L, N, D, H, C = NUM_LAYERS, N_NODES, HID_DIM, HEADS, HEAD_DIM
    bf16, f32 = jnp.bfloat16, jnp.float32

    # Hoisted (batch-invariant) edge transform, stored lane-dense:
    # el[l, src, tgt*D + d] = (eemb[tgt*N + src] @ We[l])[d]
    el = jnp.einsum("ed,ldf->lef", eemb_ts, params["We"])          # (L, N*N, D)
    el = el.reshape(L, N, N, D).transpose(0, 2, 1, 3).reshape(L, N, N * D)

    # Block-diagonal attention weights: logits[i, j*H+h] = sum_d s[i, j*D+d] * att[h, d]
    Aatt = np.asarray(params["Aatt"], dtype=np.float32)            # (L, D, H), per-head padded
    AattBig = np.zeros((L, N * D, N * H), dtype=np.float32)
    for j in range(N):
        AattBig[:, j * D:(j + 1) * D, j * H:(j + 1) * H] = Aatt

    # Selection / replication constants (precomputed; no in-kernel iota/where).
    rep = np.tile(np.eye(D, dtype=np.float32), (1, N))                         # (D, N*D)
    tmask = np.repeat(np.eye(N, dtype=np.float32), D, axis=1)                  # (N, N*D)
    erep = np.tile(np.repeat(np.eye(H, dtype=np.float32), C, axis=1), (N, 1))  # (N*H, D)
    gsum = np.repeat(np.eye(N, dtype=np.float32), H, axis=1)                   # (N, N*H)

    # GRU h-side gates folded through the GAT output projection (exact in f32):
    # h_gat @ Wh3 + bg3 == h @ (Wo @ Wh3) + (bo @ Wh3 + bg3)
    Wh3 = np.concatenate([np.asarray(params["Wrh"]), np.asarray(params["Wuh"]),
                          np.asarray(params["Wch"])], axis=1)      # (2, 3D)
    bg3 = np.concatenate([np.asarray(params["brg"]), np.asarray(params["bug"]),
                          np.asarray(params["bcg"])], axis=1)      # (1, 3D)
    Wo_np = np.asarray(params["Wo"], dtype=np.float32)
    bo_np = np.asarray(params["bo"], dtype=np.float32)
    Woh3 = Wo_np @ Wh3                                             # (D, 3D)
    bg3f = bo_np @ Wh3 + bg3                                       # (1, 3D)

    cat = jnp.concatenate
    return {
        "el": el.astype(f32),
        "Wlr": cat([params["Wl"], params["Wr"]], axis=2).astype(bf16),
        "Wp": params["Wp"].astype(bf16),
        "AattBig": jnp.asarray(AattBig, dtype=bf16),
        "blr": cat([params["bl"], params["br"]], axis=2).astype(f32),
        "bln": cat([params["cbias"], params["bp"], params["lng"], params["lnb"]],
                   axis=1).astype(f32),
        "w_in1": params["w_in1"].astype(bf16),
        "w_in2": params["w_in2"].astype(bf16),
        "b_in": cat([params["b_in1"], params["g_in1"], params["t_in1"],
                     params["b_in2"], params["g_in2"], params["t_in2"]],
                    axis=0).astype(f32),
        "Wo": params["Wo"].astype(bf16),
        "bo": params["bo"].astype(f32),
        "Woh3": jnp.asarray(Woh3, dtype=bf16),
        "Wrux": cat([params["Wrx"], params["Wux"]], axis=1).astype(bf16),
        "Wcx": params["Wcx"].astype(bf16),
        "bg3f": jnp.asarray(bg3f, dtype=f32),
        "rep": jnp.asarray(rep, dtype=bf16),
        "tmask": jnp.asarray(tmask, dtype=bf16),
        "erep": jnp.asarray(erep, dtype=bf16),
        "gsum": jnp.asarray(gsum, dtype=bf16),
    }


def _pallas_forward(x, hx, operands):
    B = x.shape[0]

    def rep_spec(a):
        nd = a.ndim
        return pl.BlockSpec(a.shape, lambda g, _nd=nd: (0,) * _nd)

    in_specs = [
        pl.BlockSpec((B, N_NODES, COORD_IN), lambda g: (0, 0, 0)),
        pl.BlockSpec((B, N_NODES, HID_DIM), lambda g: (0, 0, 0)),
    ] + [rep_spec(a) for a in operands]

    out_specs = (
        pl.BlockSpec((B, N_NODES, COORD_OUT), lambda g: (0, 0, 0)),
        pl.BlockSpec((B, N_NODES, HID_DIM), lambda g: (0, 0, 0)),
    )
    out_shape = (
        jax.ShapeDtypeStruct((B, N_NODES, COORD_OUT), jnp.float32),
        jax.ShapeDtypeStruct((B, N_NODES, HID_DIM), jnp.float32),
    )

    # Single grid step (work is tiny / latency-bound): whole batch stacked on sublanes.
    return pl.pallas_call(
        _kernel,
        out_shape=out_shape,
        grid_spec=pltpu.PrefetchScalarGridSpec(
            num_scalar_prefetch=0,
            grid=(1,),
            in_specs=in_specs,
            out_specs=out_specs,
        ),
        compiler_params=pltpu.CompilerParams(
            dimension_semantics=("arbitrary",)),
    )(x, hx, *operands)


def make_gatv2_recurrent_fn(eemb_ts, params):
    """Pack operands once, return a jitted step function (x, hx) -> (h_gat, h_new)."""
    ops = _pack_operands(eemb_ts, params)
    operands = tuple(ops[k] for k in OP_ORDER)

    @jax.jit
    def step(x, hx):
        return _pallas_forward(x, hx, operands)

    return step


# ------------------------- host-side glue / setup ---------------------------

def build_edge_embedding(emb_table, n_nodes, orbits):
    """Edge-category lookup + GATv2Conv self-loop handling (host-side glue).

    Categories: i==j -> k^2 + pos[i]; else pos[i]*k + pos[j]  (find_categories).
    GATv2Conv(add_self_loops=True, fill_value='mean') removes existing self loops and
    re-adds them with edge_attr = mean of incoming non-self edges.
    Returned flattened as [target*N + source, hid].
    """
    k = len(orbits)
    pos = np.zeros(n_nodes, dtype=np.int64)
    for a, orb in enumerate(orbits):
        for b in orb:
            pos[b] = a
    cats = np.zeros((n_nodes, n_nodes), dtype=np.int64)
    for i in range(n_nodes):
        for j in range(n_nodes):
            cats[i, j] = (k * k + pos[i]) if i == j else (pos[i] * k + pos[j])
    emb = np.asarray(emb_table)[cats]                # (N, N, D), [src, tgt, :]
    col_sum = emb.sum(axis=0)                        # sum over sources per target
    diag = emb[np.arange(n_nodes), np.arange(n_nodes)]
    emb[np.arange(n_nodes), np.arange(n_nodes)] = (col_sum - diag) / (n_nodes - 1)
    emb_ts = np.transpose(emb, (1, 0, 2)).reshape(n_nodes * n_nodes, -1)
    return jnp.asarray(emb_ts, dtype=jnp.float32)


def make_params(key, num_categories):
    D, H, C, L = HID_DIM, HEADS, HEAD_DIM, NUM_LAYERS
    shapes = {
        "w_in1": (COORD_IN, D), "b_in1": (1, D), "g_in1": (1, D), "t_in1": (1, D),
        "w_in2": (D, D), "b_in2": (1, D), "g_in2": (1, D), "t_in2": (1, D),
        "Wl": (L, D, D), "bl": (L, 1, D),
        "Wr": (L, D, D), "br": (L, 1, D),
        "We": (L, D, D),
        "cbias": (L, 1, D),
        "Wp": (L, D, D), "bp": (L, 1, D),
        "lng": (L, 1, D), "lnb": (L, 1, D),
        "Wo": (D, COORD_OUT), "bo": (1, COORD_OUT),
        "Wrh": (COORD_OUT, D), "Wrx": (D, D), "brg": (1, D),
        "Wuh": (COORD_OUT, D), "Wux": (D, D), "bug": (1, D),
        "Wch": (COORD_OUT, D), "Wcx": (D, D), "bcg": (1, D),
    }
    keys = jax.random.split(key, len(shapes) + 2)
    params = {}
    for i, (name, shp) in enumerate(shapes.items()):
        if name in ("g_in1", "g_in2", "lng"):                 # LayerNorm gammas
            params[name] = jnp.ones(shp, dtype=jnp.float32)
        elif name in ("t_in1", "t_in2", "lnb"):               # LayerNorm betas
            params[name] = jnp.zeros(shp, dtype=jnp.float32)
        else:
            params[name] = 0.1 * jax.random.normal(keys[i], shp, dtype=jnp.float32)

    # GATv2 attention vectors att (L, H, C), padded per-head into a (L, D, H) matmul
    att = 0.1 * jax.random.normal(keys[-2], (L, H, C), dtype=jnp.float32)
    att_np = np.asarray(att)
    Aatt = np.zeros((L, D, H), dtype=np.float32)
    for h in range(H):
        Aatt[:, h * C:(h + 1) * C, h] = att_np[:, h, :]
    params["Aatt"] = jnp.asarray(Aatt)

    # edge-category embedding table (EdgeEmbedder / nn.Embedding weights)
    emb_table = 0.1 * jax.random.normal(keys[-1], (num_categories, D),
                                        dtype=jnp.float32)
    return params, emb_table


if __name__ == "__main__":
    key = jax.random.PRNGKey(0)
    k_x, k_hx, k_p = jax.random.split(key, 3)

    # two node orbits -> num_categories = len(orbits) + len(orbits)^2 = 6
    orbits = [list(range(0, N_NODES // 2)), list(range(N_NODES // 2, N_NODES))]
    num_categories = len(orbits) + len(orbits) ** 2

    x = jax.random.normal(k_x, (BATCH, N_NODES, COORD_IN), dtype=jnp.float32)
    hx = jax.random.normal(k_hx, (BATCH, N_NODES, HID_DIM), dtype=jnp.float32)

    params, emb_table = make_params(k_p, num_categories)
    # TODO(synk): embedding gather + edge-category/self-loop bookkeeping done host-side
    # (pure index setup); the numeric hot path is in the kernel.
    eemb_ts = build_edge_embedding(emb_table, N_NODES, orbits)

    # Pack operands ONCE, jit the step function, and reuse it across timesteps.
    step_fn = make_gatv2_recurrent_fn(eemb_ts, params)

    h_gat, h_new = step_fn(x, hx)          # step 1 (compiles)
    h_gat2, h_new2 = step_fn(x, h_new)     # step 2 reuses the cached executable / operands
    jax.block_until_ready((h_gat, h_new, h_gat2, h_new2))

    assert h_gat.shape == (BATCH, N_NODES, COORD_OUT)
    assert h_new.shape == (BATCH, N_NODES, HID_DIM)
    assert h_gat2.shape == (BATCH, N_NODES, COORD_OUT)
    assert h_new2.shape == (BATCH, N_NODES, HID_DIM)
    ok = (jnp.all(jnp.isfinite(h_gat)) & jnp.all(jnp.isfinite(h_new))
          & jnp.all(jnp.isfinite(h_gat2)) & jnp.all(jnp.isfinite(h_new2)))
    assert bool(ok)
    print("KERNEL_OK")
</pallas_src>

<mosaic_0001>
module attributes {stable_mosaic.version = 11 : i64} {
  func.func @_kernel(%arg0: i32, %arg1: memref<2x16x6xf32, #tpu.memory_space<vmem>>, %arg2: memref<2x16x32xf32, #tpu.memory_space<vmem>>, %arg3: memref<4x16x512xf32, #tpu.memory_space<vmem>>, %arg4: memref<4x32x64xbf16, #tpu.memory_space<vmem>>, %arg5: memref<4x32x32xbf16, #tpu.memory_space<vmem>>, %arg6: memref<4x512x128xbf16, #tpu.memory_space<vmem>>, %arg7: memref<4x1x64xf32, #tpu.memory_space<vmem>>, %arg8: memref<4x4x32xf32, #tpu.memory_space<vmem>>, %arg9: memref<6x32xbf16, #tpu.memory_space<vmem>>, %arg10: memref<32x32xbf16, #tpu.memory_space<vmem>>, %arg11: memref<6x32xf32, #tpu.memory_space<vmem>>, %arg12: memref<32x2xbf16, #tpu.memory_space<vmem>>, %arg13: memref<1x2xf32, #tpu.memory_space<vmem>>, %arg14: memref<32x96xbf16, #tpu.memory_space<vmem>>, %arg15: memref<32x64xbf16, #tpu.memory_space<vmem>>, %arg16: memref<32x32xbf16, #tpu.memory_space<vmem>>, %arg17: memref<1x96xf32, #tpu.memory_space<vmem>>, %arg18: memref<32x512xbf16, #tpu.memory_space<vmem>>, %arg19: memref<16x512xbf16, #tpu.memory_space<vmem>>, %arg20: memref<128x32xbf16, #tpu.memory_space<vmem>>, %arg21: memref<16x128xbf16, #tpu.memory_space<vmem>>, %arg22: memref<2x16x2xf32, #tpu.memory_space<vmem>>, %arg23: memref<2x16x32xf32, #tpu.memory_space<vmem>>) attributes {dimension_semantics = [#tpu.dimension_semantics<arbitrary>], iteration_bounds = array<i64: 1>, scalar_prefetch = 0 : i64, scratch_operands = 0 : i64, tpu.core_type = #tpu.core_type<tc>, window_params = [{pipeline_mode = #tpu.pipeline_mode<synchronous>, transform_indices = @transform_0, window_bounds = array<i64: 2, 16, 6>}, {pipeline_mode = #tpu.pipeline_mode<synchronous>, transform_indices = @transform_1, window_bounds = array<i64: 2, 16, 32>}, {pipeline_mode = #tpu.pipeline_mode<synchronous>, transform_indices = @transform_2, window_bounds = array<i64: 4, 16, 512>}, {pipeline_mode = #tpu.pipeline_mode<synchronous>, transform_indices = @transform_3, window_bounds = array<i64: 4, 32, 64>}, {pipeline_mode = #tpu.pipeline_mode<synchronous>, transform_indices = @transform_4, window_bounds = array<i64: 4, 32, 32>}, {pipeline_mode = #tpu.pipeline_mode<synchronous>, transform_indices = @transform_5, window_bounds = array<i64: 4, 512, 128>}, {pipeline_mode = #tpu.pipeline_mode<synchronous>, transform_indices = @transform_6, window_bounds = array<i64: 4, 1, 64>}, {pipeline_mode = #tpu.pipeline_mode<synchronous>, transform_indices = @transform_7, window_bounds = array<i64: 4, 4, 32>}, {pipeline_mode = #tpu.pipeline_mode<synchronous>, transform_indices = @transform_8, window_bounds = array<i64: 6, 32>}, {pipeline_mode = #tpu.pipeline_mode<synchronous>, transform_indices = @transform_9, window_bounds = array<i64: 32, 32>}, {pipeline_mode = #tpu.pipeline_mode<synchronous>, transform_indices = @transform_10, window_bounds = array<i64: 6, 32>}, {pipeline_mode = #tpu.pipeline_mode<synchronous>, transform_indices = @transform_11, window_bounds = array<i64: 32, 2>}, {pipeline_mode = #tpu.pipeline_mode<synchronous>, transform_indices = @transform_12, window_bounds = array<i64: 1, 2>}, {pipeline_mode = #tpu.pipeline_mode<synchronous>, transform_indices = @transform_13, window_bounds = array<i64: 32, 96>}, {pipeline_mode = #tpu.pipeline_mode<synchronous>, transform_indices = @transform_14, window_bounds = array<i64: 32, 64>}, {pipeline_mode = #tpu.pipeline_mode<synchronous>, transform_indices = @transform_15, window_bounds = array<i64: 32, 32>}, {pipeline_mode = #tpu.pipeline_mode<synchronous>, transform_indices = @transform_16, window_bounds = array<i64: 1, 96>}, {pipeline_mode = #tpu.pipeline_mode<synchronous>, transform_indices = @transform_17, window_bounds = array<i64: 32, 512>}, {pipeline_mode = #tpu.pipeline_mode<synchronous>, transform_indices = @transform_18, window_bounds = array<i64: 16, 512>}, {pipeline_mode = #tpu.pipeline_mode<synchronous>, transform_indices = @transform_19, window_bounds = array<i64: 128, 32>}, {pipeline_mode = #tpu.pipeline_mode<synchronous>, transform_indices = @transform_20, window_bounds = array<i64: 16, 128>}, {pipeline_mode = #tpu.pipeline_mode<synchronous>, transform_indices = @transform_21, window_bounds = array<i64: 2, 16, 2>}, {pipeline_mode = #tpu.pipeline_mode<synchronous>, transform_indices = @transform_22, window_bounds = array<i64: 2, 16, 32>}]} {
    %c0 = arith.constant 0 : index
    %c0_0 = arith.constant 0 : index
    %c0_1 = arith.constant 0 : index
    %0 = vector.load %arg1[%c0, %c0_0, %c0_1] : memref<2x16x6xf32, #tpu.memory_space<vmem>>, vector<2x16x6xf32>
    %1 = vector.shape_cast %0 : vector<2x16x6xf32> to vector<32x6xf32>
    %c0_2 = arith.constant 0 : index
    %c0_3 = arith.constant 0 : index
    %c0_4 = arith.constant 0 : index
    %2 = vector.load %arg2[%c0_2, %c0_3, %c0_4] : memref<2x16x32xf32, #tpu.memory_space<vmem>>, vector<2x16x32xf32>
    %3 = vector.shape_cast %2 : vector<2x16x32xf32> to vector<32x32xf32>
    %c0_5 = arith.constant 0 : index
    %c0_6 = arith.constant 0 : index
    %4 = vector.load %arg18[%c0_5, %c0_6] : memref<32x512xbf16, #tpu.memory_space<vmem>>, vector<32x512xbf16>
    %c0_7 = arith.constant 0 : index
    %c0_8 = arith.constant 0 : index
    %5 = vector.load %arg19[%c0_7, %c0_8] : memref<16x512xbf16, #tpu.memory_space<vmem>>, vector<16x512xbf16>
    %c0_9 = arith.constant 0 : index
    %c0_10 = arith.constant 0 : index
    %6 = vector.load %arg20[%c0_9, %c0_10] : memref<128x32xbf16, #tpu.memory_space<vmem>>, vector<128x32xbf16>
    %c0_11 = arith.constant 0 : index
    %c0_12 = arith.constant 0 : index
    %7 = vector.load %arg21[%c0_11, %c0_12] : memref<16x128xbf16, #tpu.memory_space<vmem>>, vector<16x128xbf16>
    %cst = arith.constant 1.000000e+00 : bf16
    %8 = vector.broadcast %cst : bf16 to vector<16x16xbf16>
    %c0_13 = arith.constant 0 : index
    %c0_14 = arith.constant 0 : index
    %9 = vector.load %arg9[%c0_13, %c0_14] : memref<6x32xbf16, #tpu.memory_space<vmem>>, vector<6x32xbf16>
    %10 = arith.truncf %1 : vector<32x6xf32> to vector<32x6xbf16>
    %cst_15 = arith.constant dense<0.000000e+00> : vector<32x32xf32>
    %11 = tpu.matmul %10, %9, %cst_15 {dimension_numbers = #tpu.dot_dimension_numbers<[1], [0], [0], [1], [0, 0, 1, 1], [], []>} : vector<32x6xbf16>, vector<6x32xbf16>, vector<32x32xf32> -> vector<32x32xf32>
    %c0_16 = arith.constant 0 : index
    %c0_17 = arith.constant 0 : index
    %12 = vector.load %arg11[%c0_16, %c0_17] : memref<6x32xf32, #tpu.memory_space<vmem>>, vector<1x32xf32>
    %13 = vector.broadcast %12 : vector<1x32xf32> to vector<32x32xf32>
    %14 = arith.addf %11, %13 : vector<32x32xf32>
    %c1 = arith.constant 1 : index
    %c0_18 = arith.constant 0 : index
    %15 = vector.load %arg11[%c1, %c0_18] : memref<6x32xf32, #tpu.memory_space<vmem>>, vector<1x32xf32>
    %c2 = arith.constant 2 : index
    %c0_19 = arith.constant 0 : index
    %16 = vector.load %arg11[%c2, %c0_19] : memref<6x32xf32, #tpu.memory_space<vmem>>, vector<1x32xf32>
    %cst_20 = arith.constant dense<0.000000e+00> : vector<32xf32>
    %17 = vector.multi_reduction <add>, %14, %cst_20 [1] : vector<32x32xf32> to vector<32xf32>
    %18 = vector.shape_cast %17 : vector<32xf32> to vector<32x1xf32>
    %cst_21 = arith.constant 3.200000e+01 : f32
    %19 = vector.broadcast %cst_21 : f32 to vector<32x1xf32>
    %20 = arith.divf %18, %19 : vector<32x1xf32>
    %21 = vector.broadcast %20 : vector<32x1xf32> to vector<32x32xf32>
    %22 = arith.subf %14, %21 : vector<32x32xf32>
    %23 = arith.mulf %22, %22 : vector<32x32xf32>
    %cst_22 = arith.constant dense<0.000000e+00> : vector<32xf32>
    %24 = vector.multi_reduction <add>, %23, %cst_22 [1] : vector<32x32xf32> to vector<32xf32>
    %25 = vector.shape_cast %24 : vector<32xf32> to vector<32x1xf32>
    %cst_23 = arith.constant 3.200000e+01 : f32
    %26 = vector.broadcast %cst_23 : f32 to vector<32x1xf32>
    %27 = arith.divf %25, %26 : vector<32x1xf32>
    %28 = vector.broadcast %20 : vector<32x1xf32> to vector<32x32xf32>
    %29 = arith.subf %14, %28 : vector<32x32xf32>
    %cst_24 = arith.constant 9.99999974E-6 : f32
    %30 = vector.broadcast %cst_24 : f32 to vector<32x1xf32>
    %31 = arith.addf %27, %30 : vector<32x1xf32>
    %32 = math.rsqrt %31 : vector<32x1xf32>
    %33 = vector.broadcast %32 : vector<32x1xf32> to vector<32x32xf32>
    %34 = arith.mulf %29, %33 : vector<32x32xf32>
    %35 = vector.broadcast %15 : vector<1x32xf32> to vector<32x32xf32>
    %36 = arith.mulf %34, %35 : vector<32x32xf32>
    %37 = vector.broadcast %16 : vector<1x32xf32> to vector<32x32xf32>
    %38 = arith.addf %36, %37 : vector<32x32xf32>
    %cst_25 = arith.constant 0.000000e+00 : f32
    %39 = vector.broadcast %cst_25 : f32 to vector<32x32xf32>
    %40 = arith.maximumf %38, %39 : vector<32x32xf32>
    %c0_26 = arith.constant 0 : index
    %c0_27 = arith.constant 0 : index
    %41 = vector.load %arg10[%c0_26, %c0_27] : memref<32x32xbf16, #tpu.memory_space<vmem>>, vector<32x32xbf16>
    %42 = arith.truncf %40 : vector<32x32xf32> to vector<32x32xbf16>
    %cst_28 = arith.constant dense<0.000000e+00> : vector<32x32xf32>
    %43 = tpu.matmul %42, %41, %cst_28 {dimension_numbers = #tpu.dot_dimension_numbers<[1], [0], [0], [1], [0, 0, 1, 1], [], []>} : vector<32x32xbf16>, vector<32x32xbf16>, vector<32x32xf32> -> vector<32x32xf32>
    %c3 = arith.constant 3 : index
    %c0_29 = arith.constant 0 : index
    %44 = vector.load %arg11[%c3, %c0_29] : memref<6x32xf32, #tpu.memory_space<vmem>>, vector<1x32xf32>
    %45 = vector.broadcast %44 : vector<1x32xf32> to vector<32x32xf32>
    %46 = arith.addf %43, %45 : vector<32x32xf32>
    %c4 = arith.constant 4 : index
    %c0_30 = arith.constant 0 : index
    %47 = vector.load %arg11[%c4, %c0_30] : memref<6x32xf32, #tpu.memory_space<vmem>>, vector<1x32xf32>
    %c5 = arith.constant 5 : index
    %c0_31 = arith.constant 0 : index
    %48 = vector.load %arg11[%c5, %c0_31] : memref<6x32xf32, #tpu.memory_space<vmem>>, vector<1x32xf32>
    %cst_32 = arith.constant dense<0.000000e+00> : vector<32xf32>
    %49 = vector.multi_reduction <add>, %46, %cst_32 [1] : vector<32x32xf32> to vector<32xf32>
    %50 = vector.shape_cast %49 : vector<32xf32> to vector<32x1xf32>
    %cst_33 = arith.constant 3.200000e+01 : f32
    %51 = vector.broadcast %cst_33 : f32 to vector<32x1xf32>
    %52 = arith.divf %50, %51 : vector<32x1xf32>
    %53 = vector.broadcast %52 : vector<32x1xf32> to vector<32x32xf32>
    %54 = arith.subf %46, %53 : vector<32x32xf32>
    %55 = arith.mulf %54, %54 : vector<32x32xf32>
    %cst_34 = arith.constant dense<0.000000e+00> : vector<32xf32>
    %56 = vector.multi_reduction <add>, %55, %cst_34 [1] : vector<32x32xf32> to vector<32xf32>
    %57 = vector.shape_cast %56 : vector<32xf32> to vector<32x1xf32>
    %cst_35 = arith.constant 3.200000e+01 : f32
    %58 = vector.broadcast %cst_35 : f32 to vector<32x1xf32>
    %59 = arith.divf %57, %58 : vector<32x1xf32>
    %60 = vector.broadcast %52 : vector<32x1xf32> to vector<32x32xf32>
    %61 = arith.subf %46, %60 : vector<32x32xf32>
    %cst_36 = arith.constant 9.99999974E-6 : f32
    %62 = vector.broadcast %cst_36 : f32 to vector<32x1xf32>
    %63 = arith.addf %59, %62 : vector<32x1xf32>
    %64 = math.rsqrt %63 : vector<32x1xf32>
    %65 = vector.broadcast %64 : vector<32x1xf32> to vector<32x32xf32>
    %66 = arith.mulf %61, %65 : vector<32x32xf32>
    %67 = vector.broadcast %47 : vector<1x32xf32> to vector<32x32xf32>
    %68 = arith.mulf %66, %67 : vector<32x32xf32>
    %69 = vector.broadcast %48 : vector<1x32xf32> to vector<32x32xf32>
    %70 = arith.addf %68, %69 : vector<32x32xf32>
    %c0_i32 = arith.constant 0 : i32
    %c4_i32 = arith.constant 4 : i32
    %71 = arith.addi %c0_i32, %c4_i32 : i32
    %c1_i32 = arith.constant 1 : i32
    %72 = scf.for %arg24 = %c0_i32 to %71 step %c1_i32 iter_args(%arg25 = %70) -> (vector<32x32xf32>)  : i32 {
      %120 = arith.index_cast %arg24 : i32 to index
      %c0_63 = arith.constant 0 : index
      %c0_64 = arith.constant 0 : index
      %121 = vector.load %arg4[%120, %c0_63, %c0_64] : memref<4x32x64xbf16, #tpu.memory_space<vmem>>, vector<1x32x64xbf16>
      %122 = vector.shape_cast %121 : vector<1x32x64xbf16> to vector<32x64xbf16>
      %123 = arith.index_cast %arg24 : i32 to index
      %c0_65 = arith.constant 0 : index
      %c0_66 = arith.constant 0 : index
      %124 = vector.load %arg5[%123, %c0_65, %c0_66] : memref<4x32x32xbf16, #tpu.memory_space<vmem>>, vector<1x32x32xbf16>
      %125 = vector.shape_cast %124 : vector<1x32x32xbf16> to vector<32x32xbf16>
      %126 = arith.index_cast %arg24 : i32 to index
      %c0_67 = arith.constant 0 : index
      %c0_68 = arith.constant 0 : index
      %127 = vector.load %arg6[%126, %c0_67, %c0_68] : memref<4x512x128xbf16, #tpu.memory_space<vmem>>, vector<1x512x128xbf16>
      %128 = vector.shape_cast %127 : vector<1x512x128xbf16> to vector<512x128xbf16>
      %129 = arith.index_cast %arg24 : i32 to index
      %c0_69 = arith.constant 0 : index
      %c0_70 = arith.constant 0 : index
      %130 = vector.load %arg7[%129, %c0_69, %c0_70] : memref<4x1x64xf32, #tpu.memory_space<vmem>>, vector<1x1x64xf32>
      %131 = vector.shape_cast %130 : vector<1x1x64xf32> to vector<1x64xf32>
      %132 = arith.index_cast %arg24 : i32 to index
      %c0_71 = arith.constant 0 : index
      %c0_72 = arith.constant 0 : index
      %133 = vector.load %arg8[%132, %c0_71, %c0_72] : memref<4x4x32xf32, #tpu.memory_space<vmem>>, vector<1x4x32xf32>
      %134 = vector.shape_cast %133 : vector<1x4x32xf32> to vector<4x32xf32>
      %135 = arith.index_cast %arg24 : i32 to index
      %c0_73 = arith.constant 0 : index
      %c0_74 = arith.constant 0 : index
      %136 = vector.load %arg3[%135, %c0_73, %c0_74] : memref<4x16x512xf32, #tpu.memory_space<vmem>>, vector<1x16x512xf32>
      %137 = vector.shape_cast %136 : vector<1x16x512xf32> to vector<16x512xf32>
      %138 = arith.truncf %arg25 : vector<32x32xf32> to vector<32x32xbf16>
      %cst_75 = arith.constant dense<0.000000e+00> : vector<32x64xf32>
      %139 = tpu.matmul %138, %122, %cst_75 {dimension_numbers = #tpu.dot_dimension_numbers<[1], [0], [0], [1], [0, 0, 1, 1], [], []>} : vector<32x32xbf16>, vector<32x64xbf16>, vector<32x64xf32> -> vector<32x64xf32>
      %140 = vector.broadcast %131 : vector<1x64xf32> to vector<32x64xf32>
      %141 = arith.addf %139, %140 : vector<32x64xf32>
      %142 = vector.extract_strided_slice %141 {offsets = [0, 0], sizes = [16, 32], strides = [1, 1]} : vector<32x64xf32> to vector<16x32xf32>
      %143 = vector.extract_strided_slice %141 {offsets = [0, 32], sizes = [16, 32], strides = [1, 1]} : vector<32x64xf32> to vector<16x32xf32>
      %144 = arith.truncf %142 : vector<16x32xf32> to vector<16x32xbf16>
      %cst_76 = arith.constant dense<0.000000e+00> : vector<16x512xf32>
      %145 = tpu.matmul %144, %4, %cst_76 {dimension_numbers = #tpu.dot_dimension_numbers<[1], [0], [0], [1], [0, 0, 1, 1], [], []>} : vector<16x32xbf16>, vector<32x512xbf16>, vector<16x512xf32> -> vector<16x512xf32>
      %146 = arith.truncf %143 : vector<16x32xf32> to vector<16x32xbf16>
      %cst_77 = arith.constant dense<0.000000e+00> : vector<16x512xf32>
      %147 = tpu.matmul %146, %4, %cst_77 {dimension_numbers = #tpu.dot_dimension_numbers<[1], [0], [0], [1], [0, 0, 1, 1], [], []>} : vector<16x32xbf16>, vector<32x512xbf16>, vector<16x512xf32> -> vector<16x512xf32>
      %148 = arith.truncf %147 : vector<16x512xf32> to vector<16x512xbf16>
      %149 = arith.mulf %148, %5 : vector<16x512xbf16>
      %cst_78 = arith.constant dense<0.000000e+00> : vector<16x512xf32>
      %150 = tpu.matmul %8, %149, %cst_78 {dimension_numbers = #tpu.dot_dimension_numbers<[1], [0], [0], [1], [0, 0, 1, 1], [], []>} : vector<16x16xbf16>, vector<16x512xbf16>, vector<16x512xf32> -> vector<16x512xf32>
      %151 = arith.addf %145, %150 : vector<16x512xf32>
      %152 = arith.addf %151, %137 : vector<16x512xf32>
      %cst_79 = arith.constant 0.000000e+00 : f32
      %153 = vector.broadcast %cst_79 : f32 to vector<16x512xf32>
      %154 = arith.cmpf oge, %152, %153 : vector<16x512xf32>
      %cst_80 = arith.constant 2.000000e-01 : f32
      %155 = vector.broadcast %cst_80 : f32 to vector<16x512xf32>
      %156 = arith.mulf %155, %152 : vector<16x512xf32>
      %157 = arith.select %154, %152, %156 : vector<16x512xi1>, vector<16x512xf32>
      %158 = arith.truncf %157 : vector<16x512xf32> to vector<16x512xbf16>
      %cst_81 = arith.constant dense<0.000000e+00> : vector<16x128xf32>
      %159 = tpu.matmul %158, %128, %cst_81 {dimension_numbers = #tpu.dot_dimension_numbers<[1], [0], [0], [1], [0, 0, 1, 1], [], []>} : vector<16x512xbf16>, vector<512x128xbf16>, vector<16x128xf32> -> vector<16x128xf32>
      %cst_82 = arith.constant dense<0xFF800000> : vector<128xf32>
      %160 = vector.multi_reduction <maximumf>, %159, %cst_82 [0] : vector<16x128xf32> to vector<128xf32>
      %161 = vector.shape_cast %160 : vector<128xf32> to vector<1x128xf32>
      %162 = vector.broadcast %161 : vector<1x128xf32> to vector<16x128xf32>
      %163 = arith.subf %159, %162 : vector<16x128xf32>
      %164 = math.exp %163 : vector<16x128xf32>
      %cst_83 = arith.constant dense<0.000000e+00> : vector<128xf32>
      %165 = vector.multi_reduction <add>, %164, %cst_83 [0] : vector<16x128xf32> to vector<128xf32>
      %166 = vector.shape_cast %165 : vector<128xf32> to vector<1x128xf32>
      %167 = tpu.reciprocal %166 {approx = true} : vector<1x128xf32> -> vector<1x128xf32>
      %168 = vector.broadcast %167 : vector<1x128xf32> to vector<16x128xf32>
      %169 = arith.mulf %164, %168 : vector<16x128xf32>
      %170 = arith.truncf %169 : vector<16x128xf32> to vector<16x128xbf16>
      %171 = arith.truncf %142 : vector<16x32xf32> to vector<16x32xbf16>
      %cst_84 = arith.constant dense<0.000000e+00> : vector<128x32xf32>
      %172 = tpu.matmul %170, %171, %cst_84 {dimension_numbers = #tpu.dot_dimension_numbers<[0], [0], [1], [1], [0, 1, 1, 1], [], []>} : vector<16x128xbf16>, vector<16x32xbf16>, vector<128x32xf32> -> vector<128x32xf32>
      %173 = arith.truncf %172 : vector<128x32xf32> to vector<128x32xbf16>
      %174 = arith.mulf %173, %6 : vector<128x32xbf16>
      %cst_85 = arith.constant dense<0.000000e+00> : vector<16x32xf32>
      %175 = tpu.matmul %7, %174, %cst_85 {dimension_numbers = #tpu.dot_dimension_numbers<[1], [0], [0], [1], [0, 0, 1, 1], [], []>} : vector<16x128xbf16>, vector<128x32xbf16>, vector<16x32xf32> -> vector<16x32xf32>
      %176 = vector.extract_strided_slice %141 {offsets = [16, 0], sizes = [16, 32], strides = [1, 1]} : vector<32x64xf32> to vector<16x32xf32>
      %177 = vector.extract_strided_slice %141 {offsets = [16, 32], sizes = [16, 32], strides = [1, 1]} : vector<32x64xf32> to vector<16x32xf32>
      %178 = arith.truncf %176 : vector<16x32xf32> to vector<16x32xbf16>
      %cst_86 = arith.constant dense<0.000000e+00> : vector<16x512xf32>
      %179 = tpu.matmul %178, %4, %cst_86 {dimension_numbers = #tpu.dot_dimension_numbers<[1], [0], [0], [1], [0, 0, 1, 1], [], []>} : vector<16x32xbf16>, vector<32x512xbf16>, vector<16x512xf32> -> vector<16x512xf32>
      %180 = arith.truncf %177 : vector<16x32xf32> to vector<16x32xbf16>
      %cst_87 = arith.constant dense<0.000000e+00> : vector<16x512xf32>
      %181 = tpu.matmul %180, %4, %cst_87 {dimension_numbers = #tpu.dot_dimension_numbers<[1], [0], [0], [1], [0, 0, 1, 1], [], []>} : vector<16x32xbf16>, vector<32x512xbf16>, vector<16x512xf32> -> vector<16x512xf32>
      %182 = arith.truncf %181 : vector<16x512xf32> to vector<16x512xbf16>
      %183 = arith.mulf %182, %5 : vector<16x512xbf16>
      %cst_88 = arith.constant dense<0.000000e+00> : vector<16x512xf32>
      %184 = tpu.matmul %8, %183, %cst_88 {dimension_numbers = #tpu.dot_dimension_numbers<[1], [0], [0], [1], [0, 0, 1, 1], [], []>} : vector<16x16xbf16>, vector<16x512xbf16>, vector<16x512xf32> -> vector<16x512xf32>
      %185 = arith.addf %179, %184 : vector<16x512xf32>
      %186 = arith.addf %185, %137 : vector<16x512xf32>
      %cst_89 = arith.constant 0.000000e+00 : f32
      %187 = vector.broadcast %cst_89 : f32 to vector<16x512xf32>
      %188 = arith.cmpf oge, %186, %187 : vector<16x512xf32>
      %cst_90 = arith.constant 2.000000e-01 : f32
      %189 = vector.broadcast %cst_90 : f32 to vector<16x512xf32>
      %190 = arith.mulf %189, %186 : vector<16x512xf32>
      %191 = arith.select %188, %186, %190 : vector<16x512xi1>, vector<16x512xf32>
      %192 = arith.truncf %191 : vector<16x512xf32> to vector<16x512xbf16>
      %cst_91 = arith.constant dense<0.000000e+00> : vector<16x128xf32>
      %193 = tpu.matmul %192, %128, %cst_91 {dimension_numbers = #tpu.dot_dimension_numbers<[1], [0], [0], [1], [0, 0, 1, 1], [], []>} : vector<16x512xbf16>, vector<512x128xbf16>, vector<16x128xf32> -> vector<16x128xf32>
      %cst_92 = arith.constant dense<0xFF800000> : vector<128xf32>
      %194 = vector.multi_reduction <maximumf>, %193, %cst_92 [0] : vector<16x128xf32> to vector<128xf32>
      %195 = vector.shape_cast %194 : vector<128xf32> to vector<1x128xf32>
      %196 = vector.broadcast %195 : vector<1x128xf32> to vector<16x128xf32>
      %197 = arith.subf %193, %196 : vector<16x128xf32>
      %198 = math.exp %197 : vector<16x128xf32>
      %cst_93 = arith.constant dense<0.000000e+00> : vector<128xf32>
      %199 = vector.multi_reduction <add>, %198, %cst_93 [0] : vector<16x128xf32> to vector<128xf32>
      %200 = vector.shape_cast %199 : vector<128xf32> to vector<1x128xf32>
      %201 = tpu.reciprocal %200 {approx = true} : vector<1x128xf32> -> vector<1x128xf32>
      %202 = vector.broadcast %201 : vector<1x128xf32> to vector<16x128xf32>
      %203 = arith.mulf %198, %202 : vector<16x128xf32>
      %204 = arith.truncf %203 : vector<16x128xf32> to vector<16x128xbf16>
      %205 = arith.truncf %176 : vector<16x32xf32> to vector<16x32xbf16>
      %cst_94 = arith.constant dense<0.000000e+00> : vector<128x32xf32>
      %206 = tpu.matmul %204, %205, %cst_94 {dimension_numbers = #tpu.dot_dimension_numbers<[0], [0], [1], [1], [0, 1, 1, 1], [], []>} : vector<16x128xbf16>, vector<16x32xbf16>, vector<128x32xf32> -> vector<128x32xf32>
      %207 = arith.truncf %206 : vector<128x32xf32> to vector<128x32xbf16>
      %208 = arith.mulf %207, %6 : vector<128x32xbf16>
      %cst_95 = arith.constant dense<0.000000e+00> : vector<16x32xf32>
      %209 = tpu.matmul %7, %208, %cst_95 {dimension_numbers = #tpu.dot_dimension_numbers<[1], [0], [0], [1], [0, 0, 1, 1], [], []>} : vector<16x128xbf16>, vector<128x32xbf16>, vector<16x32xf32> -> vector<16x32xf32>
      %210 = tpu.concatenate %175, %209 in 0 : vector<16x32xf32>, vector<16x32xf32> -> vector<32x32xf32>
      %211 = vector.extract_strided_slice %134 {offsets = [0, 0], sizes = [1, 32], strides = [1, 1]} : vector<4x32xf32> to vector<1x32xf32>
      %212 = vector.broadcast %211 : vector<1x32xf32> to vector<32x32xf32>
      %213 = arith.addf %210, %212 : vector<32x32xf32>
      %214 = arith.truncf %213 : vector<32x32xf32> to vector<32x32xbf16>
      %cst_96 = arith.constant dense<0.000000e+00> : vector<32x32xf32>
      %215 = tpu.matmul %214, %125, %cst_96 {dimension_numbers = #tpu.dot_dimension_numbers<[1], [0], [0], [1], [0, 0, 1, 1], [], []>} : vector<32x32xbf16>, vector<32x32xbf16>, vector<32x32xf32> -> vector<32x32xf32>
      %216 = vector.extract_strided_slice %134 {offsets = [1, 0], sizes = [1, 32], strides = [1, 1]} : vector<4x32xf32> to vector<1x32xf32>
      %217 = vector.broadcast %216 : vector<1x32xf32> to vector<32x32xf32>
      %218 = arith.addf %215, %217 : vector<32x32xf32>
      %219 = vector.extract_strided_slice %134 {offsets = [2, 0], sizes = [1, 32], strides = [1, 1]} : vector<4x32xf32> to vector<1x32xf32>
      %220 = vector.extract_strided_slice %134 {offsets = [3, 0], sizes = [1, 32], strides = [1, 1]} : vector<4x32xf32> to vector<1x32xf32>
      %cst_97 = arith.constant dense<0.000000e+00> : vector<32xf32>
      %221 = vector.multi_reduction <add>, %218, %cst_97 [1] : vector<32x32xf32> to vector<32xf32>
      %222 = vector.shape_cast %221 : vector<32xf32> to vector<32x1xf32>
      %cst_98 = arith.constant 3.200000e+01 : f32
      %223 = vector.broadcast %cst_98 : f32 to vector<32x1xf32>
      %224 = arith.divf %222, %223 : vector<32x1xf32>
      %225 = vector.broadcast %224 : vector<32x1xf32> to vector<32x32xf32>
      %226 = arith.subf %218, %225 : vector<32x32xf32>
      %227 = arith.mulf %226, %226 : vector<32x32xf32>
      %cst_99 = arith.constant dense<0.000000e+00> : vector<32xf32>
      %228 = vector.multi_reduction <add>, %227, %cst_99 [1] : vector<32x32xf32> to vector<32xf32>
      %229 = vector.shape_cast %228 : vector<32xf32> to vector<32x1xf32>
      %cst_100 = arith.constant 3.200000e+01 : f32
      %230 = vector.broadcast %cst_100 : f32 to vector<32x1xf32>
      %231 = arith.divf %229, %230 : vector<32x1xf32>
      %232 = vector.broadcast %224 : vector<32x1xf32> to vector<32x32xf32>
      %233 = arith.subf %218, %232 : vector<32x32xf32>
      %cst_101 = arith.constant 9.99999974E-6 : f32
      %234 = vector.broadcast %cst_101 : f32 to vector<32x1xf32>
      %235 = arith.addf %231, %234 : vector<32x1xf32>
      %236 = math.rsqrt %235 : vector<32x1xf32>
      %237 = vector.broadcast %236 : vector<32x1xf32> to vector<32x32xf32>
      %238 = arith.mulf %233, %237 : vector<32x32xf32>
      %239 = vector.broadcast %219 : vector<1x32xf32> to vector<32x32xf32>
      %240 = arith.mulf %238, %239 : vector<32x32xf32>
      %241 = vector.broadcast %220 : vector<1x32xf32> to vector<32x32xf32>
      %242 = arith.addf %240, %241 : vector<32x32xf32>
      %cst_102 = arith.constant 0.000000e+00 : f32
      %243 = vector.broadcast %cst_102 : f32 to vector<32x32xf32>
      %244 = arith.maximumf %242, %243 : vector<32x32xf32>
      %245 = arith.addf %244, %arg25 : vector<32x32xf32>
      scf.yield %245 : vector<32x32xf32>
    }
    %c4_i32_37 = arith.constant 4 : i32
    %c0_38 = arith.constant 0 : index
    %c0_39 = arith.constant 0 : index
    %73 = vector.load %arg12[%c0_38, %c0_39] : memref<32x2xbf16, #tpu.memory_space<vmem>>, vector<32x2xbf16>
    %74 = arith.truncf %72 : vector<32x32xf32> to vector<32x32xbf16>
    %cst_40 = arith.constant dense<0.000000e+00> : vector<32x2xf32>
    %75 = tpu.matmul %74, %73, %cst_40 {dimension_numbers = #tpu.dot_dimension_numbers<[1], [0], [0], [1], [0, 0, 1, 1], [], []>} : vector<32x32xbf16>, vector<32x2xbf16>, vector<32x2xf32> -> vector<32x2xf32>
    %c0_41 = arith.constant 0 : index
    %c0_42 = arith.constant 0 : index
    %76 = vector.load %arg13[%c0_41, %c0_42] : memref<1x2xf32, #tpu.memory_space<vmem>>, vector<1x2xf32>
    %77 = vector.broadcast %76 : vector<1x2xf32> to vector<32x2xf32>
    %78 = arith.addf %75, %77 : vector<32x2xf32>
    %79 = vector.shape_cast %78 : vector<32x2xf32> to vector<2x16x2xf32>
    %c0_43 = arith.constant 0 : index
    %c0_44 = arith.constant 0 : index
    %c0_45 = arith.constant 0 : index
    %80 = vector.load %arg22[%c0_43, %c0_44, %c0_45] : memref<2x16x2xf32, #tpu.memory_space<vmem>>, vector<2x16x2xf32>
    tpu.vector_store %arg22[%c0_43, %c0_44, %c0_45], %79 {strides = array<i32>} : memref<2x16x2xf32, #tpu.memory_space<vmem>>, vector<2x16x2xf32>,
    %c0_46 = arith.constant 0 : index
    %c0_47 = arith.constant 0 : index
    %81 = vector.load %arg14[%c0_46, %c0_47] : memref<32x96xbf16, #tpu.memory_space<vmem>>, vector<32x96xbf16>
    %82 = arith.truncf %72 : vector<32x32xf32> to vector<32x32xbf16>
    %cst_48 = arith.constant dense<0.000000e+00> : vector<32x96xf32>
    %83 = tpu.matmul %82, %81, %cst_48 {dimension_numbers = #tpu.dot_dimension_numbers<[1], [0], [0], [1], [0, 0, 1, 1], [], []>} : vector<32x32xbf16>, vector<32x96xbf16>, vector<32x96xf32> -> vector<32x96xf32>
    %c0_49 = arith.constant 0 : index
    %c0_50 = arith.constant 0 : index
    %84 = vector.load %arg17[%c0_49, %c0_50] : memref<1x96xf32, #tpu.memory_space<vmem>>, vector<1x96xf32>
    %85 = vector.broadcast %84 : vector<1x96xf32> to vector<32x96xf32>
    %86 = arith.addf %83, %85 : vector<32x96xf32>
    %c0_51 = arith.constant 0 : index
    %c0_52 = arith.constant 0 : index
    %87 = vector.load %arg15[%c0_51, %c0_52] : memref<32x64xbf16, #tpu.memory_space<vmem>>, vector<32x64xbf16>
    %88 = arith.truncf %3 : vector<32x32xf32> to vector<32x32xbf16>
    %cst_53 = arith.constant dense<0.000000e+00> : vector<32x64xf32>
    %89 = tpu.matmul %88, %87, %cst_53 {dimension_numbers = #tpu.dot_dimension_numbers<[1], [0], [0], [1], [0, 0, 1, 1], [], []>} : vector<32x32xbf16>, vector<32x64xbf16>, vector<32x64xf32> -> vector<32x64xf32>
    %90 = vector.extract_strided_slice %86 {offsets = [0, 0], sizes = [32, 32], strides = [1, 1]} : vector<32x96xf32> to vector<32x32xf32>
    %91 = vector.extract_strided_slice %89 {offsets = [0, 0], sizes = [32, 32], strides = [1, 1]} : vector<32x64xf32> to vector<32x32xf32>
    %92 = arith.addf %90, %91 : vector<32x32xf32>
    %93 = arith.negf %92 : vector<32x32xf32>
    %94 = math.exp %93 : vector<32x32xf32>
    %cst_54 = arith.constant 1.000000e+00 : f32
    %95 = vector.broadcast %cst_54 : f32 to vector<32x32xf32>
    %96 = arith.addf %95, %94 : vector<32x32xf32>
    %97 = arith.divf %95, %96 : vector<32x32xf32>
    %98 = vector.extract_strided_slice %86 {offsets = [0, 32], sizes = [32, 32], strides = [1, 1]} : vector<32x96xf32> to vector<32x32xf32>
    %99 = vector.extract_strided_slice %89 {offsets = [0, 32], sizes = [32, 32], strides = [1, 1]} : vector<32x64xf32> to vector<32x32xf32>
    %100 = arith.addf %98, %99 : vector<32x32xf32>
    %101 = arith.negf %100 : vector<32x32xf32>
    %102 = math.exp %101 : vector<32x32xf32>
    %cst_55 = arith.constant 1.000000e+00 : f32
    %103 = vector.broadcast %cst_55 : f32 to vector<32x32xf32>
    %104 = arith.addf %103, %102 : vector<32x32xf32>
    %105 = arith.divf %103, %104 : vector<32x32xf32>
    %106 = vector.extract_strided_slice %86 {offsets = [0, 64], sizes = [32, 32], strides = [1, 1]} : vector<32x96xf32> to vector<32x32xf32>
    %107 = arith.mulf %97, %3 : vector<32x32xf32>
    %c0_56 = arith.constant 0 : index
    %c0_57 = arith.constant 0 : index
    %108 = vector.load %arg16[%c0_56, %c0_57] : memref<32x32xbf16, #tpu.memory_space<vmem>>, vector<32x32xbf16>
    %109 = arith.truncf %107 : vector<32x32xf32> to vector<32x32xbf16>
    %cst_58 = arith.constant dense<0.000000e+00> : vector<32x32xf32>
    %110 = tpu.matmul %109, %108, %cst_58 {dimension_numbers = #tpu.dot_dimension_numbers<[1], [0], [0], [1], [0, 0, 1, 1], [], []>} : vector<32x32xbf16>, vector<32x32xbf16>, vector<32x32xf32> -> vector<32x32xf32>
    %111 = arith.addf %106, %110 : vector<32x32xf32>
    %112 = math.tanh %111 : vector<32x32xf32>
    %113 = arith.mulf %105, %3 : vector<32x32xf32>
    %cst_59 = arith.constant 1.000000e+00 : f32
    %114 = vector.broadcast %cst_59 : f32 to vector<32x32xf32>
    %115 = arith.subf %114, %105 : vector<32x32xf32>
    %116 = arith.mulf %115, %112 : vector<32x32xf32>
    %117 = arith.addf %113, %116 : vector<32x32xf32>
    %118 = vector.shape_cast %117 : vector<32x32xf32> to vector<2x16x32xf32>
    %c0_60 = arith.constant 0 : index
    %c0_61 = arith.constant 0 : index
    %c0_62 = arith.constant 0 : index
    %119 = vector.load %arg23[%c0_60, %c0_61, %c0_62] : memref<2x16x32xf32, #tpu.memory_space<vmem>>, vector<2x16x32xf32>
    tpu.vector_store %arg23[%c0_60, %c0_61, %c0_62], %118 {strides = array<i32>} : memref<2x16x32xf32, #tpu.memory_space<vmem>>, vector<2x16x32xf32>,
    return
  }
  func.func @transform_0(%arg0: i32) -> (i32, i32, i32) {
    %c0_i32 = arith.constant 0 : i32
    %c0_i32_0 = arith.constant 0 : i32
    %c0_i32_1 = arith.constant 0 : i32
    %c0_i32_2 = arith.constant 0 : i32
    return %c0_i32, %c0_i32_0, %c0_i32_1 : i32, i32, i32
  }
  func.func @transform_1(%arg0: i32) -> (i32, i32, i32) {
    %c0_i32 = arith.constant 0 : i32
    %c0_i32_0 = arith.constant 0 : i32
    %c0_i32_1 = arith.constant 0 : i32
    %c0_i32_2 = arith.constant 0 : i32
    return %c0_i32, %c0_i32_0, %c0_i32_1 : i32, i32, i32
  }
  func.func @transform_2(%arg0: i32) -> (i32, i32, i32) {
    %c0_i32 = arith.constant 0 : i32
    %c0_i32_0 = arith.constant 0 : i32
    %c0_i32_1 = arith.constant 0 : i32
    %c0_i32_2 = arith.constant 0 : i32
    return %c0_i32, %c0_i32_0, %c0_i32_1 : i32, i32, i32
  }
  func.func @transform_3(%arg0: i32) -> (i32, i32, i32) {
    %c0_i32 = arith.constant 0 : i32
    %c0_i32_0 = arith.constant 0 : i32
    %c0_i32_1 = arith.constant 0 : i32
    %c0_i32_2 = arith.constant 0 : i32
    return %c0_i32, %c0_i32_0, %c0_i32_1 : i32, i32, i32
  }
  func.func @transform_4(%arg0: i32) -> (i32, i32, i32) {
    %c0_i32 = arith.constant 0 : i32
    %c0_i32_0 = arith.constant 0 : i32
    %c0_i32_1 = arith.constant 0 : i32
    %c0_i32_2 = arith.constant 0 : i32
    return %c0_i32, %c0_i32_0, %c0_i32_1 : i32, i32, i32
  }
  func.func @transform_5(%arg0: i32) -> (i32, i32, i32) {
    %c0_i32 = arith.constant 0 : i32
    %c0_i32_0 = arith.constant 0 : i32
    %c0_i32_1 = arith.constant 0 : i32
    %c0_i32_2 = arith.constant 0 : i32
    return %c0_i32, %c0_i32_0, %c0_i32_1 : i32, i32, i32
  }
  func.func @transform_6(%arg0: i32) -> (i32, i32, i32) {
    %c0_i32 = arith.constant 0 : i32
    %c0_i32_0 = arith.constant 0 : i32
    %c0_i32_1 = arith.constant 0 : i32
    %c0_i32_2 = arith.constant 0 : i32
    return %c0_i32, %c0_i32_0, %c0_i32_1 : i32, i32, i32
  }
  func.func @transform_7(%arg0: i32) -> (i32, i32, i32) {
    %c0_i32 = arith.constant 0 : i32
    %c0_i32_0 = arith.constant 0 : i32
    %c0_i32_1 = arith.constant 0 : i32
    %c0_i32_2 = arith.constant 0 : i32
    return %c0_i32, %c0_i32_0, %c0_i32_1 : i32, i32, i32
  }
  func.func @transform_8(%arg0: i32) -> (i32, i32) {
    %c0_i32 = arith.constant 0 : i32
    %c0_i32_0 = arith.constant 0 : i32
    %c0_i32_1 = arith.constant 0 : i32
    return %c0_i32, %c0_i32_0 : i32, i32
  }
  func.func @transform_9(%arg0: i32) -> (i32, i32) {
    %c0_i32 = arith.constant 0 : i32
    %c0_i32_0 = arith.constant 0 : i32
    %c0_i32_1 = arith.constant 0 : i32
    return %c0_i32, %c0_i32_0 : i32, i32
  }
  func.func @transform_10(%arg0: i32) -> (i32, i32) {
    %c0_i32 = arith.constant 0 : i32
    %c0_i32_0 = arith.constant 0 : i32
    %c0_i32_1 = arith.constant 0 : i32
    return %c0_i32, %c0_i32_0 : i32, i32
  }
  func.func @transform_11(%arg0: i32) -> (i32, i32) {
    %c0_i32 = arith.constant 0 : i32
    %c0_i32_0 = arith.constant 0 : i32
    %c0_i32_1 = arith.constant 0 : i32
    return %c0_i32, %c0_i32_0 : i32, i32
  }
  func.func @transform_12(%arg0: i32) -> (i32, i32) {
    %c0_i32 = arith.constant 0 : i32
    %c0_i32_0 = arith.constant 0 : i32
    %c0_i32_1 = arith.constant 0 : i32
    return %c0_i32, %c0_i32_0 : i32, i32
  }
  func.func @transform_13(%arg0: i32) -> (i32, i32) {
    %c0_i32 = arith.constant 0 : i32
    %c0_i32_0 = arith.constant 0 : i32
    %c0_i32_1 = arith.constant 0 : i32
    return %c0_i32, %c0_i32_0 : i32, i32
  }
  func.func @transform_14(%arg0: i32) -> (i32, i32) {
    %c0_i32 = arith.constant 0 : i32
    %c0_i32_0 = arith.constant 0 : i32
    %c0_i32_1 = arith.constant 0 : i32
    return %c0_i32, %c0_i32_0 : i32, i32
  }
  func.func @transform_15(%arg0: i32) -> (i32, i32) {
    %c0_i32 = arith.constant 0 : i32
    %c0_i32_0 = arith.constant 0 : i32
    %c0_i32_1 = arith.constant 0 : i32
    return %c0_i32, %c0_i32_0 : i32, i32
  }
  func.func @transform_16(%arg0: i32) -> (i32, i32) {
    %c0_i32 = arith.constant 0 : i32
    %c0_i32_0 = arith.constant 0 : i32
    %c0_i32_1 = arith.constant 0 : i32
    return %c0_i32, %c0_i32_0 : i32, i32
  }
  func.func @transform_17(%arg0: i32) -> (i32, i32) {
    %c0_i32 = arith.constant 0 : i32
    %c0_i32_0 = arith.constant 0 : i32
    %c0_i32_1 = arith.constant 0 : i32
    return %c0_i32, %c0_i32_0 : i32, i32
  }
  func.func @transform_18(%arg0: i32) -> (i32, i32) {
    %c0_i32 = arith.constant 0 : i32
    %c0_i32_0 = arith.constant 0 : i32
    %c0_i32_1 = arith.constant 0 : i32
    return %c0_i32, %c0_i32_0 : i32, i32
  }
  func.func @transform_19(%arg0: i32) -> (i32, i32) {
    %c0_i32 = arith.constant 0 : i32
    %c0_i32_0 = arith.constant 0 : i32
    %c0_i32_1 = arith.constant 0 : i32
    return %c0_i32, %c0_i32_0 : i32, i32
  }
  func.func @transform_20(%arg0: i32) -> (i32, i32) {
    %c0_i32 = arith.constant 0 : i32
    %c0_i32_0 = arith.constant 0 : i32
    %c0_i32_1 = arith.constant 0 : i32
    return %c0_i32, %c0_i32_0 : i32, i32
  }
  func.func @transform_21(%arg0: i32) -> (i32, i32, i32) {
    %c0_i32 = arith.constant 0 : i32
    %c0_i32_0 = arith.constant 0 : i32
    %c0_i32_1 = arith.constant 0 : i32
    %c0_i32_2 = arith.constant 0 : i32
    return %c0_i32, %c0_i32_0, %c0_i32_1 : i32, i32, i32
  }
  func.func @transform_22(%arg0: i32) -> (i32, i32, i32) {
    %c0_i32 = arith.constant 0 : i32
    %c0_i32_0 = arith.constant 0 : i32
    %c0_i32_1 = arith.constant 0 : i32
    %c0_i32_2 = arith.constant 0 : i32
    return %c0_i32, %c0_i32_0, %c0_i32_1 : i32, i32, i32
  }
}

</mosaic_0001>

<bundles_post_ra>
// kernel: step.1
= control target key start
LH: loop header
LB: loop body
LE: loop exit
PB: predicated region body
PF: predicated region fallthrough
CT: control target
= control target key end

     0   :  { %s5028_s0 = inlined_call_operand.vmem [shape: f32[2,16,6], index: 0, kind: input, shape index: {}]   ;;  %s5029_s1 = inlined_call_operand.hbm [shape: f32[2,16,32], index: 1, kind: input, shape index: {}]   ;;  %s5030_s2 = inlined_call_operand.vmem [shape: f32[4,16,512], index: 2, kind: input, shape index: {}]   ;;  %s5031_s3 = inlined_call_operand.hbm [shape: bf16[4,32,64], index: 3, kind: input, shape index: {}]   ;;  %s5032_s4 = inlined_call_operand.hbm [shape: bf16[4,32,32], index: 4, kind: input, shape index: {}]   ;;  %s5033_s5 = inlined_call_operand.hbm [shape: bf16[4,512,128], index: 5, kind: input, shape index: {}]   ;;  %s5034_s6 = inlined_call_operand.hbm [shape: f32[4,1,64], index: 6, kind: input, shape index: {}]   ;;  %s5035_s7 = inlined_call_operand.hbm [shape: f32[4,4,32], index: 7, kind: input, shape index: {}]   ;;  %s5036_s8 = inlined_call_operand.hbm [shape: bf16[6,32], index: 8, kind: input, shape index: {}]   ;;  %s5037_s9 = inlined_call_operand.hbm [shape: bf16[32,32], index: 9, kind: input, shape index: {}]   ;;  %s5038_s10 = inlined_call_operand.hbm [shape: f32[6,32], index: 10, kind: input, shape index: {}]   ;;  %s5039_s11 = inlined_call_operand.hbm [shape: bf16[32,2], index: 11, kind: input, shape index: {}]   ;;  %s5040_s12 = inlined_call_operand.hbm [shape: f32[1,2], index: 12, kind: input, shape index: {}]   ;;  %s5041_s13 = inlined_call_operand.hbm [shape: bf16[32,96], index: 13, kind: input, shape index: {}]   ;;  %s5042_s14 = inlined_call_operand.hbm [shape: bf16[32,64], index: 14, kind: input, shape index: {}]   ;;  %s5043_s15 = inlined_call_operand.vmem [shape: bf16[32,32], index: 15, kind: input, shape index: {}]   ;;  %s5044_s16 = inlined_call_operand.vmem [shape: f32[1,96], index: 16, kind: input, shape index: {}]   ;;  %s5045_s17 = inlined_call_operand.vmem [shape: bf16[32,512], index: 17, kind: input, shape index: {}]   ;;  %s5046_s18 = inlined_call_operand.vmem [shape: bf16[16,512], index: 18, kind: input, shape index: {}]   ;;  %s5047_s19 = inlined_call_operand.vmem [shape: bf16[128,32], index: 19, kind: input, shape index: {}]   ;;  %s5048_s20 = inlined_call_operand.vmem [shape: bf16[16,128], index: 20, kind: input, shape index: {}]   ;;  %s5049_s21 = inlined_call_operand.vmem [shape: f32[2,16,2], index: 21, kind: output, shape index: {0}]   ;;  %s5050_s22 = inlined_call_operand.hbm [shape: f32[2,16,32], index: 22, kind: output, shape index: {1}]  }
   0x1   :  { %5116 = sst [smem:[#allocation85_spill]] %s5028_s0 }
   0x2   :  { %5117 = sst [smem:[#allocation86_spill]] %s5029_s1 }
   0x3   :  { %5118 = sst [smem:[#allocation87_spill]] %s5030_s2 }
   0x4   :  { %5119 = sst [smem:[#allocation88_spill]] %s5031_s3 }
   0x5   :  { %5120 = sst [smem:[#allocation89_spill]] %s5032_s4 }
   0x6   :  { %5121 = sst [smem:[#allocation90_spill]] %s5033_s5 }
   0x7   :  { %5122 = sst [smem:[#allocation91_spill]] %s5034_s6 }
   0x8   :  { %5123 = sst [smem:[#allocation92_spill]] %s5044_s16 }
   0x9   :  { %5124 = sst [smem:[#allocation93_spill]] %s5049_s21 }
   0xa   :  { %5125 = sst [smem:[#allocation94_spill]] %s5050_s22 }
   0xb   :  { %28 = vsyncpa [#allocation3], 0 }
   0xc   :  { %29 = vsyncpa [#allocation6], 0 }
   0xd   :  { %30 = vsyncpa [#allocation9], 0 }
   0xe   :  { %31 = vsyncpa [#allocation12], 0 }
   0xf   :  { %32 = vsyncpa [#allocation15], 0 }
  0x10   :  { %33 = vsyncpa [#allocation18], 0 }
  0x11   :  { %34 = vsyncpa [#allocation21], 0 }
  0x12   :  { %35 = vsyncpa [#allocation4], 0  ;;  %s3908_s3 = smov [#allocation5]   ;;  %s5126_s4 = sld [smem:[#allocation88_spill]] }
  0x13   :  { %s57_s28 = sshll.u32 %s3908_s3, 4  ;;  %s58_s28 = int_to_ptr.vmem [resolvable:$true] %s57_s28 }
  0x18   :  { %s3544_s0 = scalar_lea.hbm %s5126_s4, 1024 }
  0x19   :  { %p3545_p0 = scmp.ne.s32.totalorder %s5126_s4, %s3544_s0  ;;  %p3548_p1 = scmp.lt.u32.totalorder %s3544_s0, %s5126_s4 }
  0x1b   :  { %p3550_p2 = pnand %p3548_p1, %p3545_p0 }
  0x1d   :  { %3553 = shalt.err (!%p3550_p2)
}
  0x1e   :  { %s3554_s6 = scalar_lea.vmem %s58_s28, 1024  ;;  %p3559_p4 = scmp.lt.s32.totalorder %s58_s28, %s58_s28 }
  0x1f   :  { %p3555_p3 = scmp.ne.s32.totalorder %s58_s28, %s3554_s6  ;;  %p3560_p5 = scmp.lt.s32.totalorder %s3554_s6, %s3554_s6 }
  0x21   :  { %p3561_p6 = por %p3560_p5, %p3559_p4 }
  0x23   :  { %p3562_p7 = pnand %p3561_p6, %p3555_p3 }
  0x25   :  { %3565 = shalt.err (!%p3562_p7)
}
  0x26   :  { %s3909_s25 = smov 64   ;;  %s3910_s26 = smov 4  }
  0x27   :  { %63 = dma.hbm_to_vmem [thread:$0]  %s5126_s4, 1024, %s58_s28, [#allocation6], %s3909_s25, %s3909_s25, %s3910_s26  }
  0x28   :  { %s3911_s3 = smov [#allocation8]   ;;  %s3912_s30 = smov [#allocation11]  }
  0x29   :  { %s81_s29 = sshll.u32 %s3911_s3, 4  ;;  %s105_s0 = sshll.u32 %s3912_s30, 4  ;;  %s82_s29 = int_to_ptr.vmem [resolvable:$true] %s81_s29  ;;  %s106_s0 = int_to_ptr.vmem [resolvable:$true] %s105_s0 }
  0x2a   :  { %s5127_s5 = sld [smem:[#allocation90_spill]] }
  0x30   :  { %s3566_s24 = scalar_lea.hbm %s5127_s5, 16384 }
  0x31   :  { %p3567_p8 = scmp.ne.s32.totalorder %s5127_s5, %s3566_s24  ;;  %p3570_p9 = scmp.lt.u32.totalorder %s3566_s24, %s5127_s5 }
  0x33   :  { %p3572_p10 = pnand %p3570_p9, %p3567_p8 }
  0x35   :  { %3575 = shalt.err (!%p3572_p10)
}
  0x36   :  { %s3576_s28 = scalar_lea.vmem %s82_s29, 16384  ;;  %p3581_p12 = scmp.lt.s32.totalorder %s82_s29, %s82_s29 }
  0x37   :  { %p3577_p11 = scmp.ne.s32.totalorder %s82_s29, %s3576_s28  ;;  %p3582_p13 = scmp.lt.s32.totalorder %s3576_s28, %s3576_s28 }
  0x39   :  { %p3583_p0 = por %p3582_p13, %p3581_p12 }
  0x3b   :  { %p3584_p1 = pnand %p3583_p0, %p3577_p11 }
  0x3d   :  { %3587 = shalt.err (!%p3584_p1)
}
  0x3e   :  { %87 = dma.hbm_to_vmem [thread:$0]  %s5127_s5, 16384, %s82_s29, [#allocation9], %s3909_s25, %s3909_s25, %s3910_s26  }
  0x3f   :  { %s3588_s21 = scalar_lea.hbm %s5035_s7, 256 }
  0x40   :  { %p3589_p2 = scmp.ne.s32.totalorder %s5035_s7, %s3588_s21  ;;  %p3592_p3 = scmp.lt.u32.totalorder %s3588_s21, %s5035_s7 }
  0x42   :  { %p3594_p4 = pnand %p3592_p3, %p3589_p2 }
  0x44   :  { %3597 = shalt.err (!%p3594_p4)
}
  0x45   :  { %s3598_s1 = scalar_lea.vmem %s106_s0, 256  ;;  %p3603_p6 = scmp.lt.s32.totalorder %s106_s0, %s106_s0 }
  0x46   :  { %p3599_p5 = scmp.ne.s32.totalorder %s106_s0, %s3598_s1  ;;  %p3604_p7 = scmp.lt.s32.totalorder %s3598_s1, %s3598_s1 }
  0x48   :  { %p3605_p8 = por %p3604_p7, %p3603_p6 }
  0x4a   :  { %p3606_p9 = pnand %p3605_p8, %p3599_p5 }
  0x4c   :  { %3609 = shalt.err (!%p3606_p9)
}
  0x4d   :  { %111 = dma.hbm_to_vmem [thread:$0]  %s5035_s7, 256, %s106_s0, [#allocation12], %s3909_s25, %s3909_s25, %s3910_s26  }
  0x4e   :  { %s3913_s24 = smov [#allocation14]   ;;  %s3914_s28 = smov [#allocation17]  }
  0x4f   :  { %s127_s6 = sshll.u32 %s3913_s24, 4  ;;  %s149_s4 = sshll.u32 %s3914_s28, 4  ;;  %s128_s6 = int_to_ptr.vmem [resolvable:$true] %s127_s6  ;;  %s150_s4 = int_to_ptr.vmem [resolvable:$true] %s149_s4 }
  0x50   :  { %s3610_s16 = scalar_lea.hbm %s5037_s9, 256 }
  0x51   :  { %p3611_p10 = scmp.ne.s32.totalorder %s5037_s9, %s3610_s16  ;;  %p3614_p11 = scmp.lt.u32.totalorder %s3610_s16, %s5037_s9 }
  0x53   :  { %p3616_p12 = pnand %p3614_p11, %p3611_p10 }
  0x55   :  { %3619 = shalt.err (!%p3616_p12)
}
  0x56   :  { %s3620_s7 = scalar_lea.vmem %s128_s6, 256  ;;  %p3625_p0 = scmp.lt.s32.totalorder %s128_s6, %s128_s6 }
  0x57   :  { %p3621_p13 = scmp.ne.s32.totalorder %s128_s6, %s3620_s7  ;;  %p3626_p1 = scmp.lt.s32.totalorder %s3620_s7, %s3620_s7 }
  0x59   :  { %p3627_p2 = por %p3626_p1, %p3625_p0 }
  0x5b   :  { %p3628_p3 = pnand %p3627_p2, %p3621_p13 }
  0x5d   :  { %3631 = shalt.err (!%p3628_p3)
}
  0x5e   :  { %133 = dma.hbm_to_vmem [thread:$0]  %s5037_s9, 256, %s128_s6, [#allocation15], %s3909_s25, %s3909_s25, %s3910_s26  }
  0x5f   :  { %s3632_s5 = scalar_lea.hbm %s5039_s11, 256 }
  0x60   :  { %p3633_p4 = scmp.ne.s32.totalorder %s5039_s11, %s3632_s5  ;;  %p3636_p5 = scmp.lt.u32.totalorder %s3632_s5, %s5039_s11 }
  0x62   :  { %p3638_p6 = pnand %p3636_p5, %p3633_p4 }
  0x64   :  { %3641 = shalt.err (!%p3638_p6)
}
  0x65   :  { %s3642_s16 = scalar_lea.vmem %s150_s4, 256  ;;  %p3647_p8 = scmp.lt.s32.totalorder %s150_s4, %s150_s4 }
  0x66   :  { %p3643_p7 = scmp.ne.s32.totalorder %s150_s4, %s3642_s16  ;;  %p3648_p9 = scmp.lt.s32.totalorder %s3642_s16, %s3642_s16 }
  0x68   :  { %p3649_p10 = por %p3648_p9, %p3647_p8 }
  0x6a   :  { %p3650_p11 = pnand %p3649_p10, %p3643_p7 }
  0x6c   :  { %3653 = shalt.err (!%p3650_p11)
}
  0x6d   :  { %155 = dma.hbm_to_vmem [thread:$0]  %s5039_s11, 256, %s150_s4, [#allocation18], %s3909_s25, %s3909_s25, %s3910_s26  }
  0x6e   :  { %s3915_s21 = smov [#allocation20]   ;;  %s3916_s3 = smov [#allocation2]  }
  0x6f   :  { %s171_s27 = sshll.u32 %s3915_s21, 4  ;;  %s43_s30 = sshll.u32 %s3916_s3, 4  ;;  %s172_s27 = int_to_ptr.vmem [resolvable:$true] %s171_s27  ;;  %s44_s30 = int_to_ptr.vmem [resolvable:$true] %s43_s30 }
  0x70   :  { %s3654_s23 = scalar_lea.hbm %s5041_s13, 256 }
  0x71   :  { %p3655_p12 = scmp.ne.s32.totalorder %s5041_s13, %s3654_s23  ;;  %p3658_p13 = scmp.lt.u32.totalorder %s3654_s23, %s5041_s13 }
  0x73   :  { %p3660_p0 = pnand %p3658_p13, %p3655_p12 }
  0x75   :  { %3663 = shalt.err (!%p3660_p0)
}
  0x76   :  { %s3664_s11 = scalar_lea.vmem %s172_s27, 256  ;;  %p3669_p2 = scmp.lt.s32.totalorder %s172_s27, %s172_s27 }
  0x77   :  { %p3665_p1 = scmp.ne.s32.totalorder %s172_s27, %s3664_s11  ;;  %p3670_p3 = scmp.lt.s32.totalorder %s3664_s11, %s3664_s11 }
  0x79   :  { %p3671_p4 = por %p3670_p3, %p3669_p2 }
  0x7b   :  { %p3672_p5 = pnand %p3671_p4, %p3665_p1 }
  0x7d   :  { %3675 = shalt.err (!%p3672_p5)
}
  0x7e   :  { %177 = dma.hbm_to_vmem [thread:$0]  %s5041_s13, 256, %s172_s27, [#allocation21], %s3909_s25, %s3909_s25, %s3910_s26  }
  0x7f   :  { %s5128_s16 = sld [smem:[#allocation86_spill]] }
  0x85   :  { %s3676_s9 = scalar_lea.hbm %s5128_s16, 512 }
  0x86   :  { %p3677_p6 = scmp.ne.s32.totalorder %s5128_s16, %s3676_s9  ;;  %p3680_p7 = scmp.lt.u32.totalorder %s3676_s9, %s5128_s16 }
  0x88   :  { %p3682_p8 = pnand %p3680_p7, %p3677_p6 }
  0x8a   :  { %3685 = shalt.err (!%p3682_p8)
}
  0x8b   :  { %s3686_s0 = scalar_lea.vmem %s44_s30, 512  ;;  %p3691_p10 = scmp.lt.s32.totalorder %s44_s30, %s44_s30 }
  0x8c   :  { %p3687_p9 = scmp.ne.s32.totalorder %s44_s30, %s3686_s0  ;;  %p3692_p11 = scmp.lt.s32.totalorder %s3686_s0, %s3686_s0 }
  0x8e   :  { %p3693_p12 = por %p3692_p11, %p3691_p10 }
  0x90   :  { %p3694_p13 = pnand %p3693_p12, %p3687_p9 }
  0x92   :  { %3697 = shalt.err (!%p3694_p13)
}
  0x93   :  { %s3917_s13 = smov 128   ;;  %s3918_s27 = smov 8  }
  0x94   :  { %49 = dma.hbm_to_vmem [thread:$0]  %s5128_s16, 512, %s44_s30, [#allocation3], %s3917_s13, %s3917_s13, %s3918_s27  }
  0x95   :  { %s3919_s29 = smov [#allocation7]   ;;  %s3920_s24 = smov [#allocation10]  }
  0x96   :  { %s69_s5 = sshll.u32 %s3919_s29, 4  ;;  %s93_s11 = sshll.u32 %s3920_s24, 4  ;;  %s70_s5 = int_to_ptr.vmem [resolvable:$true] %s69_s5  ;;  %s94_s11 = int_to_ptr.vmem [resolvable:$true] %s93_s11 }
  0x97   :  { %s5129_s2 = sld [smem:[#allocation89_spill]] }
  0x9d   :  { %s3698_s22 = scalar_lea.hbm %s5129_s2, 1024 }
  0x9e   :  { %p3699_p0 = scmp.ne.s32.totalorder %s5129_s2, %s3698_s22  ;;  %p3702_p1 = scmp.lt.u32.totalorder %s3698_s22, %s5129_s2 }
  0xa0   :  { %p3704_p2 = pnand %p3702_p1, %p3699_p0 }
  0xa2   :  { %3707 = shalt.err (!%p3704_p2)
}
  0xa3   :  { %s3708_s30 = scalar_lea.vmem %s70_s5, 1024  ;;  %p3713_p4 = scmp.lt.s32.totalorder %s70_s5, %s70_s5 }
  0xa4   :  { %p3709_p3 = scmp.ne.s32.totalorder %s70_s5, %s3708_s30  ;;  %p3714_p5 = scmp.lt.s32.totalorder %s3708_s30, %s3708_s30 }
  0xa6   :  { %p3715_p6 = por %p3714_p5, %p3713_p4 }
  0xa8   :  { %p3716_p7 = pnand %p3715_p6, %p3709_p3 }
  0xaa   :  { %3719 = shalt.err (!%p3716_p7)
}
  0xab   :  { %75 = dma.hbm_to_vmem [thread:$0]  %s5129_s2, 1024, %s70_s5, [#allocation6], %s3909_s25, %s3909_s25, %s3910_s26  }
  0xac   :  { %s5130_s1 = sld [smem:[#allocation91_spill]] }
  0xb2   :  { %s3720_s29 = scalar_lea.hbm %s5130_s1, 64 }
  0xb3   :  { %p3721_p8 = scmp.ne.s32.totalorder %s5130_s1, %s3720_s29  ;;  %p3724_p9 = scmp.lt.u32.totalorder %s3720_s29, %s5130_s1 }
  0xb5   :  { %p3726_p10 = pnand %p3724_p9, %p3721_p8 }
  0xb7   :  { %3729 = shalt.err (!%p3726_p10)
}
  0xb8   :  { %s3730_s9 = scalar_lea.vmem %s94_s11, 64  ;;  %p3735_p12 = scmp.lt.s32.totalorder %s94_s11, %s94_s11 }
  0xb9   :  { %p3731_p11 = scmp.ne.s32.totalorder %s94_s11, %s3730_s9  ;;  %p3736_p13 = scmp.lt.s32.totalorder %s3730_s9, %s3730_s9 }
  0xbb   :  { %p3737_p0 = por %p3736_p13, %p3735_p12 }
  0xbd   :  { %p3738_p1 = pnand %p3737_p0, %p3731_p11 }
  0xbf   :  { %3741 = shalt.err (!%p3738_p1)
}
  0xc0   :  { %s3921_s5 = smov 16   ;;  %s3922_s2 = smov 1  }
  0xc1   :  { %99 = dma.hbm_to_vmem [thread:$0]  %s5130_s1, 64, %s94_s11, [#allocation9], %s3921_s5, %s3921_s5, %s3922_s2  }
  0xc2   :  { %s3923_s3 = smov [#allocation13]   ;;  %s3924_s16 = smov [#allocation16]  }
  0xc3   :  { %s118_s30 = sshll.u32 %s3923_s3, 4  ;;  %s140_s7 = sshll.u32 %s3924_s16, 4  ;;  %s119_s30 = int_to_ptr.vmem [resolvable:$true] %s118_s30  ;;  %s141_s7 = int_to_ptr.vmem [resolvable:$true] %s140_s7 }
  0xc4   :  { %s3742_s29 = scalar_lea.hbm %s5036_s8, 64 }
  0xc5   :  { %p3743_p2 = scmp.ne.s32.totalorder %s5036_s8, %s3742_s29  ;;  %p3746_p3 = scmp.lt.u32.totalorder %s3742_s29, %s5036_s8 }
  0xc7   :  { %p3748_p4 = pnand %p3746_p3, %p3743_p2 }
  0xc9   :  { %3751 = shalt.err (!%p3748_p4)
}
  0xca   :  { %s3752_s11 = scalar_lea.vmem %s119_s30, 64  ;;  %p3757_p6 = scmp.lt.s32.totalorder %s119_s30, %s119_s30 }
  0xcb   :  { %p3753_p5 = scmp.ne.s32.totalorder %s119_s30, %s3752_s11  ;;  %p3758_p7 = scmp.lt.s32.totalorder %s3752_s11, %s3752_s11 }
  0xcd   :  { %p3759_p8 = por %p3758_p7, %p3757_p6 }
  0xcf   :  { %p3760_p9 = pnand %p3759_p8, %p3753_p5 }
  0xd1   :  { %3763 = shalt.err (!%p3760_p9)
}
  0xd2   :  { %121 = dma.hbm_to_vmem [thread:$0]  %s5036_s8, 64, %s119_s30, [#allocation12]  }
  0xd3   :  { %s3764_s6 = scalar_lea.hbm %s5038_s10, 128 }
  0xd4   :  { %p3765_p10 = scmp.ne.s32.totalorder %s5038_s10, %s3764_s6  ;;  %p3768_p11 = scmp.lt.u32.totalorder %s3764_s6, %s5038_s10 }
  0xd6   :  { %p3770_p12 = pnand %p3768_p11, %p3765_p10 }
  0xd8   :  { %3773 = shalt.err (!%p3770_p12)
}
  0xd9   :  { %s3774_s23 = scalar_lea.vmem %s141_s7, 128  ;;  %p3779_p0 = scmp.lt.s32.totalorder %s141_s7, %s141_s7 }
  0xda   :  { %p3775_p13 = scmp.ne.s32.totalorder %s141_s7, %s3774_s23  ;;  %p3780_p1 = scmp.lt.s32.totalorder %s3774_s23, %s3774_s23 }
  0xdc   :  { %p3781_p2 = por %p3780_p1, %p3779_p0 }
  0xde   :  { %p3782_p3 = pnand %p3781_p2, %p3775_p13 }
  0xe0   :  { %3785 = shalt.err (!%p3782_p3)
}
  0xe1   :  { %143 = dma.hbm_to_vmem [thread:$0]  %s5038_s10, 128, %s141_s7, [#allocation15]  }
  0xe2   :  { %s3925_s29 = smov [#allocation19]   ;;  %s3926_s4 = smov [#allocation22]  }
  0xe3   :  { %s162_s24 = sshll.u32 %s3925_s29, 4  ;;  %s183_s28 = sshll.u32 %s3926_s4, 4  ;;  %s163_s24 = int_to_ptr.vmem [resolvable:$true] %s162_s24  ;;  %s184_s28 = int_to_ptr.vmem [resolvable:$true] %s183_s28 }
  0xe4   :  { %s3786_s1 = scalar_lea.hbm %s5040_s12, 16 }
  0xe5   :  { %p3787_p4 = scmp.ne.s32.totalorder %s5040_s12, %s3786_s1  ;;  %p3790_p5 = scmp.lt.u32.totalorder %s3786_s1, %s5040_s12 }
  0xe7   :  { %p3792_p6 = pnand %p3790_p5, %p3787_p4 }
  0xe9   :  { %3795 = shalt.err (!%p3792_p6)
}
  0xea   :  { %s3796_s10 = scalar_lea.vmem %s163_s24, 16  ;;  %s3800_s7 = scalar_lea.vmem %s163_s24, 32 }
  0xeb   :  { %p3797_p7 = scmp.ne.s32.totalorder %s163_s24, %s3796_s10  ;;  %p3801_p8 = scmp.lt.s32.totalorder %s163_s24, %s163_s24 }
  0xec   :  { %p3802_p9 = scmp.lt.s32.totalorder %s3800_s7, %s3796_s10 }
  0xee   :  { %p3803_p10 = por %p3802_p9, %p3801_p8 }
  0xf0   :  { %p3804_p11 = pnand %p3803_p10, %p3797_p7 }
  0xf2   :  { %3807 = shalt.err (!%p3804_p11)
}
  0xf3   :  { %165 = dma.hbm_to_vmem [thread:$0]  %s5040_s12, 16, %s163_s24, [#allocation18]  }
  0xf4   :  { %s3808_s23 = scalar_lea.hbm %s5042_s14, 256 }
  0xf5   :  { %p3809_p12 = scmp.ne.s32.totalorder %s5042_s14, %s3808_s23  ;;  %p3812_p13 = scmp.lt.u32.totalorder %s3808_s23, %s5042_s14 }
  0xf7   :  { %p3814_p0 = pnand %p3812_p13, %p3809_p12 }
  0xf9   :  { %3817 = shalt.err (!%p3814_p0)
}
  0xfa   :  { %s3818_s22 = scalar_lea.vmem %s184_s28, 256  ;;  %p3823_p2 = scmp.lt.s32.totalorder %s184_s28, %s184_s28 }
  0xfb   :  { %p3819_p1 = scmp.ne.s32.totalorder %s184_s28, %s3818_s22  ;;  %p3824_p3 = scmp.lt.s32.totalorder %s3818_s22, %s3818_s22 }
  0xfd   :  { %p3825_p4 = por %p3824_p3, %p3823_p2 }
  0xff   :  { %p3826_p5 = pnand %p3825_p4, %p3819_p1 }
 0x101   :  { %3829 = shalt.err (!%p3826_p5)
}
 0x102   :  { %189 = dma.hbm_to_vmem [thread:$0]  %s5042_s14, 256, %s184_s28, [#allocation21], %s3909_s25, %s3909_s25, %s3910_s26  }
 0x103   :  { %3872 = dma.done.wait [#allocation3], 512  }
 0x104   :  { %3873 = vsyncadd [#allocation3], 4294966784 }
 0x105   :  { %3874 = dma.done.wait [#allocation6], 2048  }
 0x106   :  { %3875 = vsyncadd [#allocation6], 4294965248 }
 0x107   :  { %3876 = dma.done.wait [#allocation9], 16448  }
 0x108   :  { %3877 = vsyncadd [#allocation9], 4294950848 }
 0x109   :  { %3878 = dma.done.wait [#allocation12], 320  }
 0x10a   :  { %3879 = vsyncadd [#allocation12], 4294966976 }
 0x10b   :  { %3880 = dma.done.wait [#allocation15], 384  }
 0x10c   :  { %3881 = vsyncadd [#allocation15], 4294966912 }
 0x10d   :  { %3882 = dma.done.wait [#allocation18], 272  }
 0x10e   :  { %3883 = vsyncadd [#allocation18], 4294967024 }
 0x10f   :  { %3884 = dma.done.wait [#allocation21], 512  }
 0x110   :  { %3885 = vsyncadd [#allocation21], 4294966784  ;;  %v4233_v0 = vld [vmem:[#allocation2] sm:$0xff]  ;;  %v4235_v1 = vld [vmem:[#allocation2 + $0x8] sm:$0xff]  ;;  %vm296_vm0 = vcmask 1042432   ;;  %s5147_s3 = sld [smem:[#allocation85_spill]] }
 0x111   :  { %5131 = vst [vmem:[#allocation32_spill] sm:$0xff] %v4233_v0  ;;  %5132 = vst [vmem:[#allocation33_spill] sm:$0xff] %v4235_v1  ;;  %v4237_v2 = vld [vmem:[#allocation2 + $0x10] sm:$0xff]  ;;  %v4239_v3 = vld [vmem:[#allocation2 + $0x18] sm:$0xff]  ;;  %vm289_vm1 = vcmask 48128   ;;  %vm351_vm2 = vcmask 261120  }
 0x112   :  { %5133 = vst [vmem:[#allocation34_spill] sm:$0xff] %v4237_v2  ;;  %5134 = vst [vmem:[#allocation35_spill] sm:$0xff] %v4239_v3  ;;  %v4244_v4 = vld [vmem:[%s5045_s17] sm:$0xff]  ;;  %v4249_v5 = vld [vmem:[%s5045_s17 + $0x8] sm:$0xff]  ;;  %s4431_s30 = smov 0  }
 0x113   :  { %5135 = vst [vmem:[#allocation36_spill] sm:$0xff] %v4244_v4  ;;  %5136 = vst [vmem:[#allocation37_spill] sm:$0xff] %v4249_v5  ;;  %v4254_v6 = vld [vmem:[%s5045_s17 + $0x10] sm:$0xff]  ;;  %v4259_v7 = vld [vmem:[%s5045_s17 + $0x18] sm:$0xff] }
 0x114   :  { %5137 = vst [vmem:[#allocation38_spill] sm:$0xff] %v4254_v6  ;;  %5138 = vst [vmem:[#allocation39_spill] sm:$0xff] %v4259_v7  ;;  %v4264_v8 = vld [vmem:[%s5045_s17 + $0x20] sm:$0xff]  ;;  %v4269_v9 = vld [vmem:[%s5045_s17 + $0x28] sm:$0xff] }
 0x115   :  { %5139 = vst [vmem:[#allocation40_spill] sm:$0xff] %v4264_v8  ;;  %5140 = vst [vmem:[#allocation41_spill] sm:$0xff] %v4269_v9  ;;  %v4274_v10 = vld [vmem:[%s5045_s17 + $0x30] sm:$0xff]  ;;  %v4279_v11 = vld [vmem:[%s5045_s17 + $0x38] sm:$0xff] }
 0x116   :  { %5141 = vst [vmem:[#allocation42_spill] sm:$0xff] %v4274_v10  ;;  %5142 = vst [vmem:[#allocation43_spill] sm:$0xff] %v4279_v11  ;;  %v4284_v12 = vld [vmem:[%s5046_s18] sm:$0xff]  ;;  %v4289_v13 = vld [vmem:[%s5046_s18 + $0x8] sm:$0xff] }
 0x117   :  { %5143 = vst [vmem:[#allocation44_spill] sm:$0xff] %v4284_v12  ;;  %5144 = vst [vmem:[#allocation45_spill] sm:$0xff] %v4289_v13  ;;  %v4294_v14 = vld [vmem:[%s5046_s18 + $0x10] sm:$0xff]  ;;  %v4299_v15 = vld [vmem:[%s5046_s18 + $0x18] sm:$0xff] }
 0x118   :  { %5145 = vst [vmem:[#allocation46_spill] sm:$0xff] %v4294_v14  ;;  %5146 = vst [vmem:[#allocation47_spill] sm:$0xff] %v4299_v15  ;;  %v4304_v16 = vld [vmem:[%s5047_s19] sm:$0xf]  ;;  %v4309_v17 = vld [vmem:[%s5047_s19 + $0x4] sm:$0xf] }
 0x119   :  { %v4314_v18 = vld [vmem:[%s5047_s19 + $0x8] sm:$0xf]  ;;  %v4319_v19 = vld [vmem:[%s5047_s19 + $0xc] sm:$0xf]  ;;  %v4324_v20 = vld [vmem:[%s5047_s19 + $0x10] sm:$0xf] }
 0x11a   :  { %v4329_v21 = vld [vmem:[%s5047_s19 + $0x14] sm:$0xf]  ;;  %v4334_v22 = vld [vmem:[%s5047_s19 + $0x18] sm:$0xf]  ;;  %v4339_v23 = vld [vmem:[%s5047_s19 + $0x1c] sm:$0xf] }
 0x11b   :  { %v4344_v24 = vld [vmem:[%s5047_s19 + $0x20] sm:$0xf]  ;;  %v4349_v25 = vld [vmem:[%s5047_s19 + $0x24] sm:$0xf]  ;;  %v4354_v26 = vld [vmem:[%s5047_s19 + $0x28] sm:$0xf] }
 0x11c   :  { %v4359_v27 = vld [vmem:[%s5047_s19 + $0x2c] sm:$0xf]  ;;  %v4364_v28 = vld [vmem:[%s5047_s19 + $0x30] sm:$0xf]  ;;  %v4369_v29 = vld [vmem:[%s5047_s19 + $0x34] sm:$0xf] }
 0x11d   :  { %v4374_v30 = vld [vmem:[%s5047_s19 + $0x38] sm:$0xf]  ;;  %v4379_v31 = vld [vmem:[%s5047_s19 + $0x3c] sm:$0xf]  ;;  %v4384_v32 = vld [vmem:[%s5048_s20] sm:$0xf] }
 0x11e   :  { %v4389_v33 = vld [vmem:[%s5048_s20 + $0x4] sm:$0xf]  ;;  %v281_v34 = vld [vmem:[#allocation13] sm:$0x7]  ;;  %v244_v37 = vld [vmem:[%s5147_s3 + $0x8] sm:$0xff] }
 0x11f   :  { %v243_v35 = vld [vmem:[%s5147_s3] sm:$0xff]  ;;  %3370 = vmatprep.subr.msk.bf16.mxu0 %vm296_vm0, %v281_v34  ;;  %v298_v36 = vsel %vm296_vm0, %v281_v34, 0  ;;  %v245_v38 = vld [vmem:[%s5147_s3 + $0x10] sm:$0xff]  ;;  %v246_v39 = vld [vmem:[%s5147_s3 + $0x18] sm:$0xff] }
 0x120   :  { %3217 = vmatpush3.bf16.msra.mxu0 %v298_v36  ;;  %v282_v40 = vpack.c.bf16 %v244_v37, %v243_v35  ;;  %v283_v41 = vpack.c.bf16 %v246_v39, %v245_v38  ;;  %v2926_v42 = vld [vmem:[#allocation16] ss:$0 sm:$0xff] }
 0x122   :  { %3218 = vmatprep.mubr.msk.bf16.mxu0 %vm289_vm1, %v282_v40 }
 0x123   :  { %3219 = vmatmul.mubr.msk.bf16.vlgmr.msra.gmra.mrb[0].mxu0 %vm289_vm1, %v283_v41 }
 0x1f6   :  { %v3220_v43 = vpop.f32.mrb[0].mxu0 }
 0x1f7   :  { %v343_v44 = vadd.f32 %v3220_v43, %v2926_v42  ;;  %v334_v45 = vpop.f32.mrb[1].mxu0 }
 0x1f8   :  { %v335_v46 = vadd.f32 %v2926_v42, %v334_v45  ;;  %v3221_v47 = vpop.f32.mrb[2].mxu0  ;;  %v3438_v45 = vld [vmem:[#allocation14] sm:$0xff]  }
 0x1f9   :  { %v346_v48 = vadd.f32 %v3221_v47, %v2926_v42  ;;  %v337_v49 = vpop.f32.mrb[3].mxu0  ;;  %v358_v50 = vsel %vm351_vm2, %v343_v44, 0.0  ;;  %3222 = vmatprep.subr.bf16.mxu1 %v3438_v45 }
 0x1fa   :  { %v338_v51 = vadd.f32 %v2926_v42, %v337_v49  ;;  %359 = vadd.xlane.f32.xlu1 %v358_v50  ;;  %v352_v52 = vsel %vm351_vm2, %v335_v46, 0.0  ;;  %3223 = vmatpush3.bf16.msra.mxu1 %v3438_v45 }
 0x1fb   :  { %353 = vadd.xlane.f32.xlu0 %v352_v52  ;;  %v361_v53 = vsel %vm351_vm2, %v346_v48, 0.0 }
 0x1fc   :  { %v355_v54 = vsel %vm351_vm2, %v338_v51, 0.0 }
 0x1fe   :  { %362 = vadd.xlane.f32.xlu1 %v361_v53 }
 0x1ff   :  { %356 = vadd.xlane.f32.xlu0 %v355_v54 }
 0x287   :  { %v360_v55 = vpop.xlane.xlu1 %359 }
 0x288   :  { %v367_v56 = vmul.f32 0.03125, %v360_v55  ;;  %v354_v57 = vpop.xlane.xlu0 %353 }
 0x289   :  { %v365_v58 = vmul.f32 0.03125, %v354_v57 }
 0x28a   :  { %v371_v59 = vsub.f32 %v343_v44, %v367_v56 }
 0x28b   :  { %v369_v60 = vsub.f32 %v335_v46, %v365_v58  ;;  %v363_v61 = vpop.xlane.xlu1 %362  ;;  %v3439_v46 = vld [vmem:[#allocation14 + $0x8] sm:$0xff]  }
 0x28c   :  { %v368_v62 = vmul.f32 0.03125, %v363_v61  ;;  %v357_v63 = vpop.xlane.xlu0 %356  ;;  %v375_v39 = vmul.f32 %v371_v59, %v371_v59  ;;  %3224 = vmatprep.subr.bf16.mxu1 %v3439_v46 }
 0x28d   :  { %v366_v34 = vmul.f32 0.03125, %v357_v63  ;;  %v373_v35 = vmul.f32 %v369_v60, %v369_v60  ;;  %3225 = vmatpush3.bf16.msra.mxu1 %v3439_v46 }
 0x28e   :  { %v372_v36 = vsub.f32 %v346_v48, %v368_v62  ;;  %v383_v41 = vsel %vm351_vm2, %v375_v39, 0.0  ;;  %v2929_v62 = vld [vmem:[#allocation16 + $0x1] ss:$0 sm:$0xff] }
 0x28f   :  { %v370_v37 = vsub.f32 %v338_v51, %v366_v34  ;;  %v377_v38 = vsel %vm351_vm2, %v373_v35, 0.0 }
 0x290   :  { %378 = vadd.xlane.f32.xlu0 %v377_v38  ;;  %v376_v43 = vmul.f32 %v372_v36, %v372_v36  ;;  %v2930_v38 = vld [vmem:[#allocation16 + $0x2] ss:$0 sm:$0xff] }
 0x291   :  { %v374_v40 = vmul.f32 %v370_v37, %v370_v37 }
 0x292   :  { %v386_v44 = vsel %vm351_vm2, %v376_v43, 0.0 }
 0x293   :  { %v380_v42 = vsel %vm351_vm2, %v374_v40, 0.0 }
 0x294   :  { %384 = vadd.xlane.f32.xlu0 %v383_v41  ;;  %381 = vadd.xlane.f32.xlu1 %v380_v42 }
 0x298   :  { %387 = vadd.xlane.f32.xlu1 %v386_v44 }
 0x31d   :  { %v379_v47 = vpop.xlane.xlu0 %378 }
 0x31e   :  { %v389_v48 = vmul.f32 0.03125, %v379_v47 }
 0x320   :  { %v393_v49 = vadd.f32 1e-05, %v389_v48 }
 0x321   :  { %v382_v50 = vpop.xlane.xlu1 %381  ;;  %v385_v51 = vpop.xlane.xlu0 %384 }
 0x322   :  { %3440 = vrsqrt.f32 %v393_v49  ;;  %v390_v52 = vmul.f32 0.03125, %v382_v50  ;;  %v391_v53 = vmul.f32 0.03125, %v385_v51 }
 0x324   :  { %v394_v54 = vadd.f32 1e-05, %v390_v52  ;;  %v395_v55 = vadd.f32 1e-05, %v391_v53 }
 0x325   :  { %v388_v56 = vpop.xlane.xlu1 %387 }
 0x326   :  { %3442 = vrsqrt.f32 %v394_v54  ;;  %v392_v57 = vmul.f32 0.03125, %v388_v56 }
 0x327   :  { %3444 = vrsqrt.f32 %v395_v55 }
 0x328   :  { %v396_v58 = vadd.f32 1e-05, %v392_v57 }
 0x32a   :  { %3446 = vrsqrt.f32 %v396_v58 }
 0x32c   :  { %v3441_v61 = vpop.eup %3440 }
 0x32d   :  { %v401_v63 = vmul.f32 %v3441_v61, %v369_v60 }
 0x32f   :  { %v409_v34 = vmul.f32 %v2929_v62, %v401_v63 }
 0x330   :  { %v3443_v35 = vpop.eup %3442 }
 0x331   :  { %v3445_v39 = vpop.eup %3444  ;;  %v402_v40 = vmul.f32 %v3443_v35, %v370_v37  ;;  %v417_v43 = vadd.f32 %v2930_v38, %v409_v34 }
 0x332   :  { %v403_v41 = vmul.f32 %v3445_v39, %v371_v59  ;;  %v2931_v59 = vld [vmem:[#allocation16 + $0x3] ss:$0 sm:$0xff] }
 0x333   :  { %v410_v42 = vmul.f32 %v2929_v62, %v402_v40  ;;  %v421_v48 = vmax.f32 %v417_v43, 0.0 }
 0x334   :  { %v3447_v44 = vpop.eup %3446  ;;  %v411_v45 = vmul.f32 %v2929_v62, %v403_v41 }
 0x335   :  { %v404_v46 = vmul.f32 %v3447_v44, %v372_v36  ;;  %v418_v47 = vadd.f32 %v2930_v38, %v410_v42 }
 0x336   :  { %v419_v51 = vadd.f32 %v2930_v38, %v411_v45 }
 0x337   :  { %v422_v49 = vmax.f32 %v418_v47, 0.0  ;;  %v412_v50 = vmul.f32 %v2929_v62, %v404_v46 }
 0x338   :  { %v423_v60 = vmax.f32 %v419_v51, 0.0 }
 0x339   :  { %v429_v52 = vpack.c.bf16 %v422_v49, %v421_v48  ;;  %v420_v53 = vadd.f32 %v2930_v38, %v412_v50 }
 0x33b   :  { %3226 = vmatprep.mubr.msk.bf16.mxu1 %vm351_vm2, %v429_v52  ;;  %v424_v54 = vmax.f32 %v420_v53, 0.0 }
 0x33d   :  { %v430_v55 = vpack.c.bf16 %v424_v54, %v423_v60 }
 0x33f   :  { %3227 = vmatmul.mubr.msk.bf16.vlgmr.msra.gmra.mrb[0].mxu1 %vm351_vm2, %v430_v55 }
 0x412   :  { %v3228_v37 = vpop.f32.mrb[0].mxu1 }
 0x413   :  { %v488_v56 = vpop.f32.mrb[1].mxu1  ;;  %v497_v61 = vadd.f32 %v3228_v37, %v2931_v59 }
 0x414   :  { %v489_v57 = vadd.f32 %v2931_v59, %v488_v56  ;;  %v3229_v58 = vpop.f32.mrb[2].mxu1 }
 0x415   :  { %v491_v36 = vpop.f32.mrb[3].mxu1  ;;  %v500_v34 = vadd.f32 %v3229_v58, %v2931_v59  ;;  %v511_v38 = vsel %vm351_vm2, %v497_v61, 0.0 }
 0x416   :  { %v492_v63 = vadd.f32 %v2931_v59, %v491_v36  ;;  %v505_v62 = vsel %vm351_vm2, %v489_v57, 0.0 }
 0x417   :  { %506 = vadd.xlane.f32.xlu0 %v505_v62  ;;  %v514_v39 = vsel %vm351_vm2, %v500_v34, 0.0 }
 0x418   :  { %v508_v35 = vsel %vm351_vm2, %v492_v63, 0.0 }
 0x419   :  { %509 = vadd.xlane.f32.xlu1 %v508_v35 }
 0x41b   :  { %512 = vadd.xlane.f32.xlu0 %v511_v38 }
 0x41d   :  { %515 = vadd.xlane.f32.xlu1 %v514_v39 }
 0x4a4   :  { %v507_v40 = vpop.xlane.xlu0 %506 }
 0x4a5   :  { %v517_v41 = vmul.f32 0.03125, %v507_v40 }
 0x4a6   :  { %v510_v42 = vpop.xlane.xlu1 %509 }
 0x4a7   :  { %v521_v43 = vsub.f32 %v489_v57, %v517_v41  ;;  %v518_v44 = vmul.f32 0.03125, %v510_v42 }
 0x4a8   :  { %v513_v45 = vpop.xlane.xlu0 %512 }
 0x4a9   :  { %v522_v46 = vsub.f32 %v492_v63, %v518_v44  ;;  %v519_v47 = vmul.f32 0.03125, %v513_v45  ;;  %v525_v48 = vmul.f32 %v521_v43, %v521_v43  ;;  %v2936_v44 = vld [vmem:[#allocation16 + $0x4] ss:$0 sm:$0xff] }
 0x4aa   :  { %v516_v49 = vpop.xlane.xlu1 %515 }
 0x4ab   :  { %v523_v50 = vsub.f32 %v497_v61, %v519_v47  ;;  %v520_v51 = vmul.f32 0.03125, %v516_v49  ;;  %v529_v52 = vsel %vm351_vm2, %v525_v48, 0.0  ;;  %v526_v53 = vmul.f32 %v522_v46, %v522_v46  ;;  %v2937_v48 = vld [vmem:[#allocation16 + $0x5] ss:$0 sm:$0xff] }
 0x4ac   :  { %530 = vadd.xlane.f32.xlu0 %v529_v52 }
 0x4ad   :  { %v524_v60 = vsub.f32 %v500_v34, %v520_v51  ;;  %v532_v54 = vsel %vm351_vm2, %v526_v53, 0.0  ;;  %v527_v55 = vmul.f32 %v523_v50, %v523_v50 }
 0x4ae   :  { %533 = vadd.xlane.f32.xlu1 %v532_v54 }
 0x4af   :  { %v535_v59 = vsel %vm351_vm2, %v527_v55, 0.0  ;;  %v528_v37 = vmul.f32 %v524_v60, %v524_v60 }
 0x4b0   :  { %536 = vadd.xlane.f32.xlu0 %v535_v59 }
 0x4b1   :  { %v538_v56 = vsel %vm351_vm2, %v528_v37, 0.0 }
 0x4b2   :  { %539 = vadd.xlane.f32.xlu1 %v538_v56 }
 0x539   :  { %v531_v57 = vpop.xlane.xlu0 %530 }
 0x53a   :  { %v541_v58 = vmul.f32 0.03125, %v531_v57 }
 0x53b   :  { %v534_v36 = vpop.xlane.xlu1 %533 }
 0x53c   :  { %v545_v61 = vadd.f32 1e-05, %v541_v58  ;;  %v542_v63 = vmul.f32 0.03125, %v534_v36 }
 0x53d   :  { %v537_v62 = vpop.xlane.xlu0 %536 }
 0x53e   :  { %3448 = vrsqrt.f32 %v545_v61  ;;  %v546_v35 = vadd.f32 1e-05, %v542_v63  ;;  %v543_v34 = vmul.f32 0.03125, %v537_v62 }
 0x53f   :  { %v540_v38 = vpop.xlane.xlu1 %539 }
 0x540   :  { %3450 = vrsqrt.f32 %v546_v35  ;;  %v547_v39 = vadd.f32 1e-05, %v543_v34  ;;  %v544_v40 = vmul.f32 0.03125, %v540_v38 }
 0x542   :  { %3452 = vrsqrt.f32 %v547_v39  ;;  %v548_v41 = vadd.f32 1e-05, %v544_v40 }
 0x544   :  { %3454 = vrsqrt.f32 %v548_v41 }
 0x548   :  { %v3449_v42 = vpop.eup %3448 }
 0x549   :  { %v553_v45 = vmul.f32 %v3449_v42, %v521_v43 }
 0x54a   :  { %v3451_v47 = vpop.eup %3450 }
 0x54b   :  { %v561_v49 = vmul.f32 %v2936_v44, %v553_v45  ;;  %v554_v51 = vmul.f32 %v3451_v47, %v522_v46 }
 0x54c   :  { %v3453_v52 = vpop.eup %3452 }
 0x54d   :  { %v569_v53 = vadd.f32 %v2937_v48, %v561_v49   ;;  %v562_v54 = vmul.f32 %v2936_v44, %v554_v51  ;;  %v555_v55 = vmul.f32 %v3453_v52, %v523_v50 }
 0x54e   :  { %v3455_v59 = vpop.eup %3454 }
 0x54f   :  { %v570_v37 = vadd.f32 %v2937_v48, %v562_v54   ;;  %v563_v56 = vmul.f32 %v2936_v44, %v555_v55  ;;  %v556_v57 = vmul.f32 %v3455_v59, %v524_v60 }
 0x551   :  { %v571_v58 = vadd.f32 %v2937_v48, %v563_v56   ;;  %v564_v36 = vmul.f32 %v2936_v44, %v556_v57 }
 0x553   :  { %v572_v61 = vadd.f32 %v2937_v48, %v564_v36  }
 0x554 LB: > { %v5148_v15 = vld [vmem:[#allocation47_spill] sm:$0xff]  ;;  %v5149_v14 = vld [vmem:[#allocation46_spill] sm:$0xff]  ;;  %v5150_v13 = vld [vmem:[#allocation45_spill] sm:$0xff]  ;;  %5160 = vst [vmem:[#allocation48_spill] sm:$0xff] %v3890_v61  ;;  %s3057_s29 = sshll.u32 %s3906_s30, 4  ;;  %s3059_s4 = sshll.u32 %s3906_s30, 8  ;;  %v678_v43 = vpack.c.bf16 %v3898_v37, %v3902_v53  ;;  %v679_v60 = vpack.c.bf16 %v3890_v61, %v3894_v58  ;;  %v3894_v58 = vphi %v571_v58, %v5238_v58   ;;  %v3890_v61 = vphi %v572_v61, %v5237_v61   ;;  %s3906_s30 = sphi %s4431_s30, %s578_s30   ;;  %v3902_v53 = vphi %v569_v53, %v5240_v53   ;;  %v3898_v37 = vphi %v570_v37, %v5239_v37  }
 0x555   : > { %v5151_v12 = vld [vmem:[#allocation44_spill] sm:$0xff]  ;;  %v5152_v11 = vld [vmem:[#allocation43_spill] sm:$0xff]  ;;  %v5153_v10 = vld [vmem:[#allocation42_spill] sm:$0xff]  ;;  %5161 = vst [vmem:[#allocation49_spill] sm:$0xff] %v3894_v58  ;;  %s585_s22 = scalar_lea.vmem [#allocation5], %s3057_s29  ;;  %s4453_s12 = scalar_lea.vmem [#allocation8], %s3059_s4 }
 0x556   : > { %v5154_v9 = vld [vmem:[#allocation41_spill] sm:$0xff]  ;;  %v5155_v8 = vld [vmem:[#allocation40_spill] sm:$0xff]  ;;  %v5156_v7 = vld [vmem:[#allocation39_spill] sm:$0xff]  ;;  %5162 = vst [vmem:[#allocation50_spill] sm:$0xff] %v3898_v37  ;;  %3234 = vmatprep.mubr.msk.bf16.mxu0 %vm351_vm2, %v678_v43  ;;  %s4458_s24 = scalar_lea.vmem [#allocation7], %s3057_s29  ;;  %v5059_v42 = vmov 0  }
 0x557   : > { %v5157_v6 = vld [vmem:[#allocation38_spill] sm:$0xff]  ;;  %v5158_v5 = vld [vmem:[#allocation37_spill] sm:$0xff]  ;;  %v5159_v4 = vld [vmem:[#allocation36_spill] sm:$0xff]  ;;  %5163 = vst [vmem:[#allocation51_spill] sm:$0xff] %v3902_v53  ;;  %v4478_v38 = vcombine.high %v5155_v8, %v5153_v10  ;;  %v4482_v39 = vcombine.high %v5154_v9, %v5152_v11  ;;  %v4490_v40 = vcombine.low %v5155_v8, %v5153_v10  ;;  %v4494_v41 = vcombine.low %v5154_v9, %v5152_v11  ;;  %s663_s14 = scalar_lea.vmem [#allocation10], %s3906_s30  ;;  %s3928_s17 = smov 96  }
 0x558   : > { %v3456_v46 = vld [vmem:[%s585_s22] sm:$0xff]   ;;  %v3457_v50 = vld [vmem:[%s585_s22 + $0x8] sm:$0xff]   ;;  %v4462_v63 = vcombine.high %v5159_v4, %v5157_v6  ;;  %v4466_v62 = vcombine.high %v5158_v5, %v5156_v7  ;;  %v4470_v35 = vcombine.low %v5159_v4, %v5157_v6  ;;  %v4474_v34 = vcombine.low %v5158_v5, %v5156_v7  ;;  %832 = vmatprep.mubr.bf16.mxu1 %v5059_v42  ;;  %v4605_v7 = vld [vmem:[%s4453_s12 + $0x18] sm:$0xff]   ;;  %s3060_s26 = sshll.u32 %s3906_s30, 6  ;;  %s5193_s1 = sld [smem:[#allocation87_spill]] }
 0x559   : > { %3230 = vmatprep.subr.bf16.mxu0 %v3456_v46  ;;  %v2945_v45 = vld [vmem:[%s663_s14] ss:$0 sm:$0xff]  ;;  %vm914_vm3 = vcmask 130048   ;;  %5175 = vst [vmem:[#allocation62_spill] sm:$0xff] %v4605_v7  ;;  %v4609_v8 = vld [vmem:[%s4453_s12 + $0x98] sm:$0xff]   ;;  %v4643_v3 = vld [vmem:[%s4453_s12 + $0x30] sm:$0xff]  }
 0x55a   : > { %3231 = vmatpush3.bf16.msra.mxu0 %v3456_v46  ;;  %800 = vmatprep.subr.bf16.mxu1 %v4462_v63  ;;  %5176 = vst [vmem:[#allocation63_spill] sm:$0xff] %v4609_v8  ;;  %v4613_v9 = vld [vmem:[%s4453_s12 + $0x60] sm:$0xff]   ;;  %5184 = vst [vmem:[#allocation71_spill] sm:$0xff] %v4643_v3  ;;  %v4647_v2 = vld [vmem:[%s4453_s12 + $0x78] sm:$0xff]   ;;  %vm3931_vm12 = vmmov 0   ;;  %s2938_s5 = sshll.u32 %s3906_s30, 2 }
 0x55b   : > { %3232 = vmatprep.subr.bf16.mxu0 %v3457_v50  ;;  %801 = vmatpush1.bf16.msra.mxu1 %v4470_v35  ;;  %5177 = vst [vmem:[#allocation64_spill] sm:$0xff] %v4613_v9  ;;  %v4617_v10 = vld [vmem:[%s4453_s12 + $0xe0] sm:$0xff]   ;;  %5185 = vst [vmem:[#allocation72_spill] sm:$0xff] %v4647_v2  ;;  %v4651_v1 = vld [vmem:[%s4453_s12 + $0x38] sm:$0xff]   ;;  %s665_s2 = scalar_lea.vmem [#allocation11], %s2938_s5  ;;  %s578_s30 = sadd.s32 1, %s3906_s30  }
 0x55c   : > { %802 = vmatprep.subr.bf16.mxu1 %v4478_v38  ;;  %5178 = vst [vmem:[#allocation65_spill] sm:$0xff] %v4617_v10  ;;  %v4621_v11 = vld [vmem:[%s4453_s12 + $0x20] sm:$0xff]   ;;  %5186 = vst [vmem:[#allocation73_spill] sm:$0xff] %v4651_v1  ;;  %v4657_v0 = vld [vmem:[%s4453_s12 + $0xe8] sm:$0xff]   ;;  %p575_p6 = scmp.ge.s32.totalorder %s578_s30, 4  }
 0x55d   : > { %5179 = vst [vmem:[#allocation66_spill] sm:$0xff] %v4621_v11  ;;  %5187 = vst [vmem:[#allocation74_spill] sm:$0xff] %v4657_v0  ;;  %v4660_v61 = vld [vmem:[%s4453_s12 + $0xa8] sm:$0xff]   ;;  %v4665_v58 = vld [vmem:[%s4453_s12 + $0xf0] sm:$0xff]   ;;  %s5245_s19 = sld [smem:[#allocation92_spill]] (%p575_p6)  ;;  %s3932_s22 = smov (%p575_p6), 32  }
 0x55e   : > { %3233 = vmatpush3.bf16.msra.mxu0 %v3457_v50  ;;  %5188 = vst [vmem:[#allocation75_spill] sm:$0xff] %v4660_v61  ;;  %5189 = vst [vmem:[#allocation76_spill] sm:$0xff] %v4665_v58  ;;  %v4668_v37 = vld [vmem:[%s4453_s12 + $0xb0] sm:$0xff]   ;;  %v4673_v53 = vld [vmem:[%s4453_s12 + $0xf8] sm:$0xff]   ;;  %s669_s9 = scalar_lea.vmem %s5193_s1, %s3060_s26 }
 0x55f   : > { %843 = vmatprep.subr.bf16.mxu0 %v4466_v62  ;;  %803 = vmatpush1.bf16.msra.mxu1 %v4490_v40  ;;  %5190 = vst [vmem:[#allocation77_spill] sm:$0xff] %v4668_v37  ;;  %5191 = vst [vmem:[#allocation78_spill] sm:$0xff] %v4673_v53 }
 0x561   : > { %3235 = vmatmul.mubr.msk.bf16.vlgmr.msra.gmra.mrb[0].mxu0 %vm351_vm2, %v679_v60 }
 0x562   : > { %844 = vmatpush1.bf16.msra.mxu0 %v4474_v34  ;;  %875 = vmatprep.mubr.bf16.mxu0 %v5059_v42 }
 0x563   : > { %845 = vmatprep.subr.bf16.mxu0 %v4482_v39 }
 0x566   : > { %846 = vmatpush1.bf16.msra.mxu0 %v4494_v41 }
 0x634   : > { %v3236_v44 = vpop.f32.mrb[0].mxu0 }
 0x635   : > { %v738_v47 = vpop.f32.mrb[1].mxu0  ;;  %v747_v49 = vadd.f32 %v3236_v44, %v2945_v45 }
 0x636   : > { %v3237_v48 = vpop.f32.mrb[2].mxu0  ;;  %v739_v54 = vadd.f32 %v2945_v45, %v738_v47  ;;  %v4519_v47 = vcombine.high %v5150_v13, %v5148_v15 }
 0x637   : > { %v750_v51 = vadd.f32 %v3237_v48, %v2945_v45  ;;  %v741_v52 = vpop.f32.mrb[3].mxu0 }
 0x638   : > { %v742_v55 = vadd.f32 %v2945_v45, %v741_v52  ;;  %v4515_v45 = vcombine.high %v5151_v12, %v5149_v14  ;;  %5164 = vst [vmem:[#allocation52_spill] sm:$0xff] %v4519_v47  ;;  %v4527_v52 = vcombine.low %v5150_v13, %v5148_v15  ;;  %v4629_v13 = vld [vmem:[%s4453_s12 + $0x68] sm:$0xff]   ;;  %v4639_v15 = vld [vmem:[%s4453_s12 + $0x70] sm:$0xff]  }
 0x639   : > { %v4503_v59 = vpack.c.bf16 %v750_v51, %v747_v49  ;;  %v4523_v49 = vcombine.low %v5151_v12, %v5149_v14  ;;  %v4625_v12 = vld [vmem:[%s4453_s12 + $0xa0] sm:$0xff]   ;;  %5181 = vst [vmem:[#allocation68_spill] sm:$0xff] %v4629_v13  ;;  %v4634_v14 = vld [vmem:[%s4453_s12 + $0x28] sm:$0xff]   ;;  %5183 = vst [vmem:[#allocation70_spill] sm:$0xff] %v4639_v15 }
 0x63a   : > { %v4505_v56 = vpack.c.bf16 %v742_v55, %v739_v54  ;;  %5165 = vst [vmem:[#allocation53_spill] sm:$0xff] %v4527_v52  ;;  %5180 = vst [vmem:[#allocation67_spill] sm:$0xff] %v4625_v12 }
 0x63b   : > { %1677 = vrot.lane.b32.xlu1 %v4503_v59, %s3928_s17  ;;  %5182 = vst [vmem:[#allocation69_spill] sm:$0xff] %v4634_v14 }
 0x63c   : > { %755 = vrot.lane.b32.xlu0 %v4505_v56, %s3928_s17 }
 0x6ae   : > { %v756_v57 = vpop.permute.xlu0 %755 }
 0x6af   : > { %2958 = vmatmul.mubr.msk.bf16.vlgmr.msra.gmra.mrb[0].mxu1 %vm351_vm2, %v756_v57  ;;  %2959 = vmatmul.mubr.msk.bf16.vlgmr.msra.gmra.mrb[4].mxu0 %vm351_vm2, %v756_v57 }
 0x6b0   : > { %950 = vmatprep.mubr.bf16.mxu1 %v5059_v42  ;;  %993 = vmatprep.mubr.bf16.mxu0 %v5059_v42 }
 0x782   : > { %v834_v36 = vpop.f32.mrb[0].mxu1  ;;  %v877_v43 = vpop.f32.mrb[4].mxu0 }
 0x783   : > { %v836_v46 = vpop.f32.mrb[1].mxu1  ;;  %v879_v50 = vpop.f32.mrb[5].mxu0 }
 0x784   : > { %v838_v60 = vpop.f32.mrb[2].mxu1  ;;  %v881_v44 = vpop.f32.mrb[6].mxu0 }
 0x785   : > { %v886_v48 = vpack.c.bf16 %v838_v60, %v834_v36  ;;  %v888_v51 = vpack.c.bf16 %v881_v44, %v877_v43  ;;  %v840_v54 = vpop.f32.mrb[3].mxu1  ;;  %v883_v55 = vpop.f32.mrb[7].mxu0  ;;  %v5064_v43 = vmov 1065369472   ;;  %v4565_v60 = vld [vmem:[%s4453_s12 + $0xc8] sm:$0xff]  }
 0x786   : > { %v887_v57 = vpack.c.bf16 %v840_v54, %v836_v46  ;;  %v889_v42 = vpack.c.bf16 %v883_v55, %v879_v50  ;;  %v4559_v46 = vld [vmem:[%s4453_s12 + $0x80] sm:$0xff]   ;;  %v4562_v50 = vld [vmem:[%s4453_s12 + $0x48] sm:$0xff]   ;;  %5169 = vst [vmem:[#allocation56_spill] sm:$0xff] %v4565_v60  ;;  %v4585_v54 = vld [vmem:[%s4453_s12 + $0xd0] sm:$0xff]  }
 0x787   : > { %v910_v6 = vmul.bf16 %v4523_v49, %v886_v48  ;;  %v912_v36 = vmul.bf16 %v4527_v52, %v888_v51  ;;  %5168 = vst [vmem:[#allocation55_spill] sm:$0xff] %v4559_v46  ;;  %v4573_v44 = vld [vmem:[%s4453_s12 + $0x8] sm:$0xff]   ;;  %v4581_v51 = vld [vmem:[%s4453_s12 + $0x50] sm:$0xff]   ;;  %5171 = vst [vmem:[#allocation58_spill] sm:$0xff] %v4585_v54 }
 0x788   : > { %v911_v4 = vmul.bf16 %v4515_v45, %v887_v57  ;;  %v913_v5 = vmul.bf16 %v4519_v47, %v889_v42  ;;  %v4556_v42 = vld [vmem:[%s4453_s12] sm:$0xff]   ;;  %v4577_v48 = vld [vmem:[%s4453_s12 + $0x88] sm:$0xff]   ;;  %v4589_v55 = vld [vmem:[%s4453_s12 + $0x10] sm:$0xff]  }
 0x789   : > { %5170 = vst [vmem:[#allocation57_spill] sm:$0xff] %v4577_v48  ;;  %v4593_v57 = vld [vmem:[%s4453_s12 + $0x90] sm:$0xff]   ;;  %v4700_v47 = vld [vmem:[%s669_s9 + $0x28] sm:$0xff] }
 0x78a   : > { %918 = vmatprep.subr.bf16.mxu1 %v911_v4  ;;  %961 = vmatprep.subr.bf16.mxu0 %v913_v5  ;;  %v4544_v4 = vld [vmem:[%s4453_s12 + $0x40] sm:$0xff]   ;;  %5172 = vst [vmem:[#allocation59_spill] sm:$0xff] %v4593_v57 }
 0x78b   : > { %919 = vmatpush1.bf16.msra.mxu1 %v910_v6  ;;  %962 = vmatpush1.bf16.msra.mxu0 %v912_v36  ;;  %v4547_v5 = vld [vmem:[%s4453_s12 + $0xc0] sm:$0xff]   ;;  %v5167_v6 = vmov 0   ;;  %v4597_v36 = vld [vmem:[%s4453_s12 + $0x58] sm:$0xff]  }
 0x78c   : > { %1007 = vmatprep.subr.bf16.mxu1 %v4462_v63  ;;  %1050 = vmatprep.subr.bf16.mxu0 %v4466_v62  ;;  %5166 = vst [vmem:[#allocation54_spill] sm:$0xff] %v4547_v5  ;;  %5173 = vst [vmem:[#allocation60_spill] sm:$0xff] %v4597_v36 }
 0x78e   : > { %2964 = vmatmul.mubr.msk.bf16.vlgmr.msra.gmra.mrb[4].mxu1 %vm914_vm3, %v5064_v43  ;;  %2965 = vmatmul.mubr.msk.bf16.vlgmr.msra.gmra.mrb[8].mxu0 %vm914_vm3, %v5064_v43  ;;  %v4601_v43 = vld [vmem:[%s4453_s12 + $0xd8] sm:$0xff]  }
 0x78f   : > { %1008 = vmatpush1.bf16.msra.mxu1 %v4470_v35  ;;  %1051 = vmatpush1.bf16.msra.mxu0 %v4474_v34  ;;  %5174 = vst [vmem:[#allocation61_spill] sm:$0xff] %v4601_v43 }
 0x790   : > { %1009 = vmatprep.subr.bf16.mxu1 %v4478_v38  ;;  %1052 = vmatprep.subr.bf16.mxu0 %v4482_v39 }
 0x791   : > { %1039 = vmatprep.mubr.bf16.mxu1 %v5167_v6  ;;  %1082 = vmatprep.mubr.bf16.mxu0 %v5167_v6 }
 0x793   : > { %1010 = vmatpush1.bf16.msra.mxu1 %v4490_v40  ;;  %1053 = vmatpush1.bf16.msra.mxu0 %v4494_v41 }
 0x794   : > { %3072 = vmatprep.subr.bf16.mxu1 %v4544_v4  ;;  %3094 = vmatprep.subr.bf16.mxu0 %v4547_v5  ;;  %v4698_v5 = vld [vmem:[%s669_s9 + $0x30] sm:$0xff] }
 0x795   : > { %5198 = vst [vmem:[#allocation84_spill] sm:$0xff] %v4698_v5 }
 0x79a   : > { %2966 = vmatmul.mubr.msk.bf16.vlgmr.msra.gmra.mrb[4].mxu1 %vm351_vm2, %v4505_v56  ;;  %2967 = vmatmul.mubr.msk.bf16.vlgmr.msra.gmra.mrb[8].mxu0 %vm351_vm2, %v4505_v56 }
 0x79b   : > { %3073 = vmatpush3.bf16.msra.mxu1 %v4556_v42  ;;  %3095 = vmatpush3.bf16.msra.mxu0 %v4559_v46 }
 0x79c   : > { %3074 = vmatprep.subr.bf16.mxu1 %v4562_v50  ;;  %3096 = vmatprep.subr.bf16.mxu0 %v4565_v60 }
 0x79f   : > { %3075 = vmatpush3.bf16.msra.mxu1 %v4573_v44  ;;  %3097 = vmatpush3.bf16.msra.mxu0 %v4577_v48 }
 0x7a0   : > { %3076 = vmatprep.subr.bf16.mxu1 %v4581_v51  ;;  %3098 = vmatprep.subr.bf16.mxu0 %v4585_v54  ;;  %v4694_v54 = vld [vmem:[%s669_s9 + $0x20] sm:$0xff] }
 0x7a3   : > { %3077 = vmatpush3.bf16.msra.mxu1 %v4589_v55  ;;  %3099 = vmatpush3.bf16.msra.mxu0 %v4593_v57 }
 0x7a4   : > { %3078 = vmatprep.subr.bf16.mxu1 %v4597_v36  ;;  %3100 = vmatprep.subr.bf16.mxu0 %v4601_v43 }
 0x7a7   : > { %3079 = vmatpush3.bf16.msra.mxu1 %v4605_v7  ;;  %3101 = vmatpush3.bf16.msra.mxu0 %v4609_v8 }
 0x7a8   : > { %3080 = vmatprep.subr.bf16.mxu1 %v4613_v9  ;;  %3102 = vmatprep.subr.bf16.mxu0 %v4617_v10 }
 0x7ab   : > { %3081 = vmatpush3.bf16.msra.mxu1 %v4621_v11  ;;  %3103 = vmatpush3.bf16.msra.mxu0 %v4625_v12  ;;  %v4676_v12 = vld [vmem:[%s4453_s12 + $0xb8] sm:$0xff]   ;;  %s3934_s12 = smov (%p575_p6), [#allocation23]  }
 0x7ac   : > { %3082 = vmatprep.subr.bf16.mxu1 %v4629_v13  ;;  %3104 = vmatprep.subr.bf16.mxu0 %v4657_v0  ;;  %5192 = vst [vmem:[#allocation79_spill] sm:$0xff] %v4676_v12  ;;  %v4686_v0 = vld [vmem:[%s669_s9 + $0x10] sm:$0xff] }
 0x7ad   : > { %5195 = vst [vmem:[#allocation81_spill] sm:$0xff] %v4686_v0 }
 0x7af   : > { %3083 = vmatpush3.bf16.msra.mxu1 %v4634_v14  ;;  %3105 = vmatpush3.bf16.msra.mxu0 %v4660_v61  ;;  %v4684_v61 = vld [vmem:[%s669_s9] sm:$0xff] }
 0x7b0   : > { %3084 = vmatprep.subr.bf16.mxu1 %v4639_v15  ;;  %3106 = vmatprep.subr.bf16.mxu0 %v4665_v58  ;;  %5194 = vst [vmem:[#allocation80_spill] sm:$0xff] %v4684_v61  ;;  %v4688_v58 = vld [vmem:[%s669_s9 + $0x8] sm:$0xff] }
 0x7b1   : > { %5196 = vst [vmem:[#allocation82_spill] sm:$0xff] %v4688_v58 }
 0x7b3   : > { %3085 = vmatpush3.bf16.msra.mxu1 %v4643_v3  ;;  %3107 = vmatpush3.bf16.msra.mxu0 %v4668_v37  ;;  %v4690_v37 = vld [vmem:[%s669_s9 + $0x18] sm:$0xff] }
 0x7b4   : > { %3086 = vmatprep.subr.bf16.mxu1 %v4647_v2  ;;  %3108 = vmatprep.subr.bf16.mxu0 %v4673_v53  ;;  %5197 = vst [vmem:[#allocation83_spill] sm:$0xff] %v4690_v37 }
 0x7b7   : > { %3087 = vmatpush3.bf16.msra.mxu1 %v4651_v1  ;;  %3109 = vmatpush3.bf16.msra.mxu0 %v4676_v12  ;;  %v4702_v1 = vld [vmem:[%s669_s9 + $0x38] sm:$0xff] }
 0x7b8   : > { %3238 = vmatprep.subr.bf16.mxu1 %v4505_v56 }
 0x86d   : > { %v1041_v10 = vpop.f32.mrb[4].mxu1  ;;  %v1084_v8 = vpop.f32.mrb[8].mxu0 }
 0x86e   : > { %v1093_v43 = vadd.f32 %v1041_v10, %v4684_v61  ;;  %v1095_v53 = vadd.f32 %v1084_v8, %v4686_v0  ;;  %v1043_v12 = vpop.f32.mrb[5].mxu1  ;;  %v1086_v57 = vpop.f32.mrb[9].mxu0 }
 0x86f   : > { %v1094_v48 = vadd.f32 %v1043_v12, %v4688_v58  ;;  %v1096_v60 = vadd.f32 %v1086_v57, %v4690_v37  ;;  %v1045_v46 = vpop.f32.mrb[6].mxu1  ;;  %v1088_v52 = vpop.f32.mrb[10].mxu0 }
 0x870   : > { %vm1101_vm4 = vcmp.ge.f32.partialorder %v1093_v43, 0.0  ;;  %v1109_v10 = vmul.f32 0.2, %v1093_v43  ;;  %vm1103_vm5 = vcmp.ge.f32.partialorder %v1095_v53, 0.0  ;;  %v1111_v8 = vmul.f32 0.2, %v1095_v53 }
 0x871   : > { %vm1102_vm6 = vcmp.ge.f32.partialorder %v1094_v48, 0.0  ;;  %v1110_v0 = vmul.f32 0.2, %v1094_v48  ;;  %vm1104_vm7 = vcmp.ge.f32.partialorder %v1096_v60, 0.0  ;;  %v1112_v61 = vmul.f32 0.2, %v1096_v60 }
 0x872   : > { %v1097_v12 = vadd.f32 %v1045_v46, %v4694_v54  ;;  %v1099_v57 = vadd.f32 %v1088_v52, %v4698_v5  ;;  %v1047_v37 = vpop.f32.mrb[7].mxu1  ;;  %v1090_v58 = vpop.f32.mrb[11].mxu0  ;;  %v1117_v2 = vsel %vm1101_vm4, %v1093_v43, %v1109_v10  ;;  %v1119_v3 = vsel %vm1103_vm5, %v1095_v53, %v1111_v8 }
 0x873   : > { %v1098_v15 = vadd.f32 %v1047_v37, %v4700_v47  ;;  %v1100_v14 = vadd.f32 %v1090_v58, %v4702_v1  ;;  %v1118_v52 = vsel %vm1102_vm6, %v1094_v48, %v1110_v0  ;;  %v1120_v5 = vsel %vm1104_vm7, %v1096_v60, %v1112_v61 }
 0x874   : > { %vm1105_vm8 = vcmp.ge.f32.partialorder %v1097_v12, 0.0  ;;  %v1113_v13 = vmul.f32 0.2, %v1097_v12  ;;  %vm1107_vm9 = vcmp.ge.f32.partialorder %v1099_v57, 0.0  ;;  %v1115_v11 = vmul.f32 0.2, %v1099_v57 }
 0x875   : > { %vm1106_vm10 = vcmp.ge.f32.partialorder %v1098_v15, 0.0  ;;  %v1114_v9 = vmul.f32 0.2, %v1098_v15  ;;  %vm1108_vm11 = vcmp.ge.f32.partialorder %v1100_v14, 0.0  ;;  %v1116_v7 = vmul.f32 0.2, %v1100_v14 }
 0x876   : > { %v1121_v36 = vsel %vm1105_vm8, %v1097_v12, %v1113_v13  ;;  %v1123_v46 = vsel %vm1107_vm9, %v1099_v57, %v1115_v11 }
 0x877   : > { %v1125_v43 = vpack.c.bf16 %v1121_v36, %v1117_v2  ;;  %v1127_v53 = vpack.c.bf16 %v1123_v46, %v1119_v3  ;;  %v1122_v10 = vsel %vm1106_vm10, %v1098_v15, %v1114_v9  ;;  %v1124_v37 = vsel %vm1108_vm11, %v1100_v14, %v1116_v7 }
 0x878   : > { %v1126_v8 = vpack.c.bf16 %v1122_v10, %v1118_v52  ;;  %v1128_v58 = vpack.c.bf16 %v1124_v37, %v1120_v5 }
 0x87a   : > { %1353 = vmatprep.mubr.bf16.mxu1 %v1126_v8  ;;  %1394 = vmatprep.mubr.bf16.mxu0 %v1128_v58 }
 0x87b   : > { %1354 = vmatmul.mubr.bf16.vlgmr.msra.gmra.mrb[8].mxu1 %v1125_v43  ;;  %1395 = vmatmul.mubr.bf16.vlgmr.msra.gmra.mrb[12].mxu0 %v1127_v53 }
 0x87c   : > { %3239 = vmatpush3.bf16.msra.mxu1 %v4505_v56 }
 0x87d   : > { %1682 = vmatprep.subr.bf16.mxu1 %v4462_v63 }
 0x94e   : > { %v3088_v13 = vpop.f32.mrb[8].mxu1  ;;  %v3110_v11 = vpop.f32.mrb[12].mxu0 }
 0x94f   : > { %v3089_v12 = vpop.f32.mrb[9].mxu1  ;;  %v3111_v0 = vpop.f32.mrb[13].mxu0 }
 0x950   : > { %v3090_v48 = vadd.f32 %v3089_v12, %v3088_v13  ;;  %v3112_v61 = vadd.f32 %v3111_v0, %v3110_v11  ;;  %v3091_v2 = vpop.f32.mrb[10].mxu1  ;;  %v3113_v3 = vpop.f32.mrb[14].mxu0 }
 0x951   : > { %v3092_v9 = vpop.f32.mrb[11].mxu1  ;;  %v3114_v7 = vpop.f32.mrb[15].mxu0 }
 0x952   : > { %v1397_v14 = vadd.f32 %v3112_v61, %v3090_v48  ;;  %v3093_v15 = vadd.f32 %v3092_v9, %v3091_v2  ;;  %v3115_v5 = vadd.f32 %v3114_v7, %v3113_v3 }
 0x954   : > { %v1400_v60 = vadd.f32 %v3115_v5, %v3093_v15 }
 0x956   : > { %v1403_v36 = vmax.f32 %v1397_v14, %v1400_v60 }
 0x958   : > { %v1404_v57 = vrot.slane %v1403_v36, 4 }
 0x95a   : > { %v1405_v46 = vmax.f32 %v1403_v36, %v1404_v57 }
 0x95c   : > { %v1406_v56 = vrot.slane %v1405_v46, 2 }
 0x95e   : > { %v1407_v52 = vmax.f32 %v1405_v46, %v1406_v56 }
 0x960   : > { %v1408_v43 = vrot.slane %v1407_v52, 1 }
 0x962   : > { %v1409_v53 = vmax.f32 %v1407_v52, %v1408_v43 }
 0x964   : > { %v1410_v10 = vsub.f32 %v1397_v14, %v1409_v53  ;;  %v1411_v37 = vsub.f32 %v1400_v60, %v1409_v53 }
 0x966   : > { %v1412_v8 = vmul.f32 1.442695, %v1410_v10  ;;  %v1414_v58 = vmul.f32 1.442695, %v1411_v37  ;;  %v4724_v10 = vpop.permute.xlu1 %1677  ;;  %v3930_v37 = vmov 0.0  }
 0x967   : > { %3256 = vmatprep.subr.bf16.mxu0 %v3930_v37  ;;  %3272 = vmatprep.mubr.msk.bf16.mxu0 %vm3931_vm12, %v3930_v37 }
 0x968   : > { %3492 = vpow2.f32 %v1412_v8 }
 0x969   : > { %3494 = vpow2.f32 %v1414_v58 }
 0x972   : > { %v3493_v13 = vpop.eup %3492 }
 0x973   : > { %v3495_v11 = vpop.eup %3494 }
 0x974   : > { %v1416_v12 = vadd.f32 %v3495_v11, %v3493_v13 }
 0x976   : > { %v1417_v0 = vrot.slane %v1416_v12, 4 }
 0x978   : > { %v1418_v48 = vadd.f32 %v1417_v0, %v1416_v12 }
 0x97a   : > { %v1419_v61 = vrot.slane %v1418_v48, 2 }
 0x97c   : > { %v1420_v2 = vadd.f32 %v1419_v61, %v1418_v48  ;;  %v4738_v61 = vcombine.low %v4314_v18, %v4319_v19  ;;  %v5243_v18 = vld [vmem:[#allocation34_spill] sm:$0xff] (%p575_p6)  ;;  %v5244_v19 = vld [vmem:[#allocation35_spill] sm:$0xff] (%p575_p6) }
 0x97e   : > { %v1421_v3 = vrot.slane %v1420_v2, 1 }
 0x980   : > { %v1422_v9 = vadd.f32 %v1421_v3, %v1420_v2 }
 0x982   : > { %3496 = vrcp.f32 %v1422_v9 }
 0x98c   : > { %v3497_v7 = vpop.eup %3496 }
 0x98d   : > { %v1424_v15 = vmul.f32 %v3497_v7, %v3493_v13  ;;  %v1425_v5 = vmul.f32 %v3497_v7, %v3495_v11  ;;  %v4734_v11 = vcombine.low %v4304_v16, %v4309_v17  ;;  %v3517_v17 = vld [vmem:[#allocation22 + $0x8] sm:$0xff] (%p575_p6)  }
 0x98f   : > { %v1426_v36 = vpack.c.bf16 %v1425_v5, %v1424_v15  ;;  %v4745_v5 = vcombine.low %v4324_v20, %v4329_v21  ;;  %v2606_v20 = vpack.c.bf16 (%p575_p6), %v5244_v19, %v5243_v18  ;;  %v3518_v21 = vld [vmem:[%s5043_s15] sm:$0xff] (%p575_p6)  }
 0x991   : > { %1427 = vxpose.xlu0.c.b16.start.end [1/1] (short) %v1426_v36, 128 }
 0x9f7   : > { %v1435_v14 = vpop.trf.xlu0 }
 0x9f8   : > { %3240 = vmatprep.mubr.msk.bf16.mxu1 %vm914_vm3, %v1435_v14 }
 0x9fb   : > { %v1436_v60 = vpop.trf.xlu0 }
 0x9fc   : > { %3241 = vmatmul.mubr.msk.bf16.vlgmr.msra.gmra.mrb[12].mxu1 %vm914_vm3, %v1436_v60 }
 0x9fd   : > { %1683 = vmatpush1.bf16.msra.mxu1 %v4470_v35 }
 0x9fe   : > { %1684 = vmatprep.subr.bf16.mxu1 %v4478_v38 }
 0x9ff   : > { %v1437_v57 = vpop.trf.xlu0 }
 0xa00   : > { %3244 = vmatprep.mubr.msk.bf16.mxu1 %vm914_vm3, %v1437_v57  ;;  %v4750_v57 = vcombine.low %v4334_v22, %v4339_v23  ;;  %v3519_v22 = vld [vmem:[%s5043_s15 + $0x8] sm:$0xff] (%p575_p6)   ;;  %v3035_v23 = vld [vmem:[#allocation19] ss:$0 sm:$0xff] (%p575_p6)  ;;  %s5246_s15 = sld [smem:[#allocation93_spill]] (%p575_p6) }
 0xa01   : > { %1685 = vmatpush1.bf16.msra.mxu1 %v4490_v40 }
 0xa03   : > { %v1438_v46 = vpop.trf.xlu0 }
 0xa04   : > { %3245 = vmatmul.mubr.msk.bf16.gmra.mrb[16].mxu1 %vm914_vm3, %v1438_v46 }
 0xa07   : > { %v1439_v56 = vpop.trf.xlu0 }
 0xa08   : > { %3248 = vmatprep.mubr.msk.bf16.mxu1 %vm914_vm3, %v1439_v56 }
 0xa0b   : > { %v1440_v52 = vpop.trf.xlu0 }
 0xa0c   : > { %3249 = vmatmul.mubr.msk.bf16.gmra.mrb[20].mxu1 %vm914_vm3, %v1440_v52 }
 0xa0f   : > { %v1441_v43 = vpop.trf.xlu0 }
 0xa10   : > { %3252 = vmatprep.mubr.msk.bf16.mxu1 %vm914_vm3, %v1441_v43 }
 0xa13   : > { %v1442_v53 = vpop.trf.xlu0 }
 0xa14   : > { %3253 = vmatmul.mubr.msk.bf16.gmra.mrb[24].mxu1 %vm914_vm3, %v1442_v53 }
 0xa15   : > { %1714 = vmatprep.mubr.bf16.mxu1 %v5167_v6 }
 0xa1c   : > { %3017 = vmatmul.mubr.msk.bf16.vlgmr.msra.gmra.mrb[28].mxu1 %vm351_vm2, %v4724_v10 }
 0xa1d   : > { %1808 = vmatprep.mubr.bf16.mxu1 %v5167_v6 }
 0xacf   : > { %v3242_v8 = vpop.f32.mrb[12].mxu1 }
 0xad0   : > { %v1501_v58 = vpop.f32.mrb[13].mxu1 }
 0xad1   : > { %v3243_v13 = vpop.f32.mrb[14].mxu1 }
 0xad2   : > { %v1565_v12 = vpack.c.bf16 %v3243_v13, %v3242_v8  ;;  %v1504_v0 = vpop.f32.mrb[15].mxu1  ;;  %v4757_v8 = vcombine.low %v4344_v24, %v4349_v25 }
 0xad3   : > { %v1564_v48 = vpack.c.bf16 %v1504_v0, %v1501_v58  ;;  %v4762_v0 = vcombine.low %v4354_v26, %v4359_v27 }
 0xad4   : > { %v1621_v7 = vmul.bf16 %v4738_v61, %v1565_v12 }
 0xad5   : > { %v1620_v2 = vmul.bf16 %v4734_v11, %v1564_v48 }
 0xad7   : > { %v3246_v3 = vpop.f32.mrb[16].mxu1  ;;  %3257 = vmatpush3.bf16.msra.mxu0 %v1620_v2 }
 0xad8   : > { %v1517_v9 = vpop.f32.mrb[17].mxu1  ;;  %3258 = vmatprep.subr.bf16.mxu0 %v3930_v37 }
 0xad9   : > { %v3247_v15 = vpop.f32.mrb[18].mxu1 }
 0xada   : > { %v1567_v36 = vpack.c.bf16 %v3247_v15, %v3246_v3  ;;  %v1520_v14 = vpop.f32.mrb[19].mxu1  ;;  %v4769_v15 = vcombine.low %v4364_v28, %v4369_v29 }
 0xadb   : > { %v1566_v60 = vpack.c.bf16 %v1520_v14, %v1517_v9  ;;  %3259 = vmatpush3.bf16.msra.mxu0 %v1621_v7 }
 0xadc   : > { %3260 = vmatprep.subr.bf16.mxu0 %v3930_v37  ;;  %v1623_v43 = vmul.bf16 %v4750_v57, %v1567_v36 }
 0xadd   : > { %v1622_v46 = vmul.bf16 %v4745_v5, %v1566_v60 }
 0xadf   : > { %v3250_v56 = vpop.f32.mrb[20].mxu1  ;;  %3261 = vmatpush3.bf16.msra.mxu0 %v1622_v46  ;;  %v4774_v46 = vcombine.low %v4374_v30, %v4379_v31  ;;  %v3040_v30 = vld [vmem:[%s5245_s19] ss:$0 sm:$0xff] (%p575_p6) }
 0xae0   : > { %v1533_v52 = vpop.f32.mrb[21].mxu1  ;;  %3262 = vmatprep.subr.bf16.mxu0 %v3930_v37 }
 0xae1   : > { %v3251_v53 = vpop.f32.mrb[22].mxu1 }
 0xae2   : > { %v1569_v58 = vpack.c.bf16 %v3251_v53, %v3250_v56  ;;  %v1536_v13 = vpop.f32.mrb[23].mxu1 }
 0xae3   : > { %v1568_v12 = vpack.c.bf16 %v1536_v13, %v1533_v52  ;;  %3263 = vmatpush3.bf16.msra.mxu0 %v1623_v43 }
 0xae4   : > { %3264 = vmatprep.subr.bf16.mxu0 %v3930_v37  ;;  %v1625_v9 = vmul.bf16 %v4762_v0, %v1569_v58 }
 0xae5   : > { %v1624_v48 = vmul.bf16 %v4757_v8, %v1568_v12 }
 0xae7   : > { %v3254_v2 = vpop.f32.mrb[24].mxu1  ;;  %3265 = vmatpush3.bf16.msra.mxu0 %v1624_v48  ;;  %v4781_v48 = vcombine.low %v4384_v32, %v4389_v33 }
 0xae8   : > { %v1549_v3 = vpop.f32.mrb[25].mxu1  ;;  %3266 = vmatprep.subr.bf16.mxu0 %v3930_v37 }
 0xae9   : > { %v3255_v7 = vpop.f32.mrb[26].mxu1 }
 0xaea   : > { %v1571_v36 = vpack.c.bf16 %v3255_v7, %v3254_v2  ;;  %v1552_v14 = vpop.f32.mrb[27].mxu1  ;;  %v5199_v7 = vmov 1065369472  }
 0xaeb   : > { %v1570_v60 = vpack.c.bf16 %v1552_v14, %v1549_v3  ;;  %3267 = vmatpush3.bf16.msra.mxu0 %v1625_v9 }
 0xaec   : > { %3268 = vmatprep.subr.bf16.mxu0 %v3930_v37  ;;  %v1627_v53 = vmul.bf16 %v4774_v46, %v1571_v36  ;;  %v4824_v36 = vld [vmem:[%s665_s2] sm:$0xf] }
 0xaed   : > { %v1626_v56 = vmul.bf16 %v4769_v15, %v1570_v60 }
 0xaef   : > { %3269 = vmatpush3.bf16.msra.mxu0 %v1626_v56  ;;  %v1716_v52 = vpop.f32.mrb[28].mxu1 }
 0xaf0   : > { %v1718_v43 = vpop.f32.mrb[29].mxu1  ;;  %3270 = vmatprep.subr.bf16.mxu0 %v3930_v37 }
 0xaf1   : > { %v1720_v58 = vpop.f32.mrb[30].mxu1 }
 0xaf2   : > { %v1768_v13 = vpack.c.bf16 %v1720_v58, %v1716_v52  ;;  %v1722_v12 = vpop.f32.mrb[31].mxu1 }
 0xaf3   : > { %v1769_v2 = vpack.c.bf16 %v1722_v12, %v1718_v43  ;;  %3271 = vmatpush3.bf16.msra.mxu0 %v1627_v53 }
 0xaf4   : > { %1725 = vmatprep.subr.bf16.mxu0 %v4466_v62  ;;  %v1772_v9 = vmul.bf16 %v4523_v49, %v1768_v13  ;;  %v5205_v49 = vld [vmem:[#allocation69_spill] sm:$0xff] }
 0xaf5   : > { %v1773_v3 = vmul.bf16 %v4515_v45, %v1769_v2  ;;  %v5204_v45 = vld [vmem:[#allocation68_spill] sm:$0xff] }
 0xaf6   : > { %3273 = vmatmul.mubr.bf16.vlgmr.msra.gmra.mrb[16].mxu0 %v4781_v48 }
 0xaf7   : > { %1726 = vmatpush1.bf16.msra.mxu0 %v4474_v34  ;;  %1776 = vmatprep.subr.bf16.mxu1 %v1773_v3 }
 0xaf8   : > { %1777 = vmatpush1.bf16.msra.mxu1 %v1772_v9  ;;  %1727 = vmatprep.subr.bf16.mxu0 %v4482_v39 }
 0xaf9   : > { %1757 = vmatprep.mubr.bf16.mxu0 %v5167_v6  ;;  %1865 = vmatprep.subr.bf16.mxu1 %v4462_v63  ;;  %v5200_v63 = vld [vmem:[#allocation60_spill] sm:$0xff] }
 0xafb   : > { %1728 = vmatpush1.bf16.msra.mxu0 %v4494_v41  ;;  %3019 = vmatmul.mubr.msk.bf16.vlgmr.msra.gmra.mrb[32].mxu1 %vm914_vm3, %v5199_v7 }
 0xafc   : > { %1866 = vmatpush1.bf16.msra.mxu1 %v4470_v35  ;;  %1897 = vmatprep.mubr.bf16.mxu1 %v5167_v6  ;;  %v5201_v35 = vld [vmem:[#allocation62_spill] sm:$0xff] }
 0xafd   : > { %1867 = vmatprep.subr.bf16.mxu1 %v4478_v38  ;;  %v5202_v38 = vld [vmem:[#allocation64_spill] sm:$0xff] }
 0xafe   : > { %3018 = vmatmul.mubr.msk.bf16.vlgmr.msra.gmra.mrb[20].mxu0 %vm351_vm2, %v4724_v10 }
 0xaff   : > { %1851 = vmatprep.mubr.bf16.mxu0 %v5167_v6 }
 0xb00   : > { %1868 = vmatpush1.bf16.msra.mxu1 %v4490_v40  ;;  %v5203_v40 = vld [vmem:[#allocation66_spill] sm:$0xff] }
 0xb01   : > { %3134 = vmatprep.subr.bf16.mxu1 %v4544_v4  ;;  %v5206_v4 = vld [vmem:[#allocation70_spill] sm:$0xff] }
 0xb07   : > { %3021 = vmatmul.mubr.msk.bf16.vlgmr.msra.gmra.mrb[32].mxu1 %vm351_vm2, %v4503_v59 }
 0xb08   : > { %3135 = vmatpush3.bf16.msra.mxu1 %v4556_v42  ;;  %v5207_v42 = vld [vmem:[#allocation71_spill] sm:$0xff] }
 0xb09   : > { %3136 = vmatprep.subr.bf16.mxu1 %v4562_v50  ;;  %v5208_v50 = vld [vmem:[#allocation72_spill] sm:$0xff] }
 0xb0c   : > { %3137 = vmatpush3.bf16.msra.mxu1 %v4573_v44  ;;  %v5209_v44 = vld [vmem:[#allocation73_spill] sm:$0xff] }
 0xb0d   : > { %3138 = vmatprep.subr.bf16.mxu1 %v4581_v51  ;;  %v2287_v51 = vlaneseq }
 0xb10   : > { %3139 = vmatpush3.bf16.msra.mxu1 %v4589_v55  ;;  %v4821_v55 = vshrl.u32 %v2287_v51, 7  ;;  %v5213_v51 = vld [vmem:[#allocation82_spill] sm:$0xff] }
 0xb11   : > { %3140 = vmatprep.subr.bf16.mxu1 %v5200_v63 }
 0xb12   : > { %v2289_v10 = vsub.s32 0, %v4821_v55 }
 0xb14   : > { %3141 = vmatpush3.bf16.msra.mxu1 %v5201_v35  ;;  %v4827_v14 = vrot.slane %v4824_v36, %v2289_v10 }
 0xb15   : > { %3142 = vmatprep.subr.bf16.mxu1 %v5202_v38  ;;  %v5210_v38 = vld [vmem:[#allocation52_spill] sm:$0xff] }
 0xb18   : > { %3143 = vmatpush3.bf16.msra.mxu1 %v5203_v40 }
 0xb19   : > { %3144 = vmatprep.subr.bf16.mxu1 %v5204_v45  ;;  %v5211_v45 = vld [vmem:[#allocation53_spill] sm:$0xff] }
 0xb1c   : > { %3145 = vmatpush3.bf16.msra.mxu1 %v5205_v49 }
 0xb1d   : > { %3146 = vmatprep.subr.bf16.mxu1 %v5206_v4 }
 0xb20   : > { %3147 = vmatpush3.bf16.msra.mxu1 %v5207_v42  ;;  %v5212_v42 = vld [vmem:[#allocation80_spill] sm:$0xff] }
 0xb21   : > { %3148 = vmatprep.subr.bf16.mxu1 %v5208_v50 }
 0xb24   : > { %3149 = vmatpush3.bf16.msra.mxu1 %v5209_v44 }
 0xb25   : > { %3276 = vmatprep.subr.bf16.mxu1 %v4503_v59 }
 0xbc9   : > { %v1668_v60 = vpop.f32.mrb[16].mxu0 }
 0xbca   : > { %v3274_v56 = vpop.f32.mrb[17].mxu0  ;;  %v4830_v43 = vadd.f32 %v4827_v14, %v1668_v60 }
 0xbcb   : > { %v1671_v52 = vpop.f32.mrb[18].mxu0 }
 0xbcc   : > { %v4833_v53 = vadd.f32 %v4827_v14, %v1671_v52  ;;  %v3275_v58 = vpop.f32.mrb[19].mxu0 }
 0xbce   : > { %v2295_v13 = vpack.c.bf16 %v4833_v53, %v4830_v43 }
 0xbd1   : > { %v1759_v12 = vpop.f32.mrb[20].mxu0 }
 0xbd2   : > { %v1761_v2 = vpop.f32.mrb[21].mxu0 }
 0xbd3   : > { %v1763_v3 = vpop.f32.mrb[22].mxu0 }
 0xbd4   : > { %v1770_v9 = vpack.c.bf16 %v1763_v3, %v1759_v12  ;;  %v1765_v63 = vpop.f32.mrb[23].mxu0 }
 0xbd5   : > { %v1771_v35 = vpack.c.bf16 %v1765_v63, %v1761_v2 }
 0xbd6   : > { %v1774_v49 = vmul.bf16 %v5211_v45, %v1770_v9  ;;  %v5219_v45 = vld [vmem:[#allocation59_spill] sm:$0xff] }
 0xbd7   : > { %v1775_v40 = vmul.bf16 %v5210_v38, %v1771_v35 }
 0xbd9   : > { %1819 = vmatprep.subr.bf16.mxu0 %v1775_v40  ;;  %v5218_v40 = vld [vmem:[#allocation58_spill] sm:$0xff] }
 0xbda   : > { %1820 = vmatpush1.bf16.msra.mxu0 %v1774_v49  ;;  %v1899_v4 = vpop.f32.mrb[32].mxu1  ;;  %v5221_v49 = vld [vmem:[#allocation63_spill] sm:$0xff] }
 0xbdb   : > { %v1951_v50 = vadd.f32 %v1899_v4, %v5212_v42  ;;  %v1901_v44 = vpop.f32.mrb[33].mxu1  ;;  %1908 = vmatprep.subr.bf16.mxu0 %v4466_v62  ;;  %v5222_v4 = vld [vmem:[#allocation65_spill] sm:$0xff]  ;;  %v5223_v42 = vld [vmem:[#allocation67_spill] sm:$0xff] }
 0xbdc   : > { %v1952_v10 = vadd.f32 %v1901_v44, %v5213_v51  ;;  %v1903_v60 = vpop.f32.mrb[34].mxu1  ;;  %v5226_v44 = vld [vmem:[#allocation76_spill] sm:$0xff]  ;;  %v5227_v51 = vld [vmem:[#allocation77_spill] sm:$0xff] }
 0xbdd   : > { %v1967_v56 = vmul.f32 0.2, %v1951_v50  ;;  %v1955_v52 = vadd.f32 %v1903_v60, %v4694_v54  ;;  %3020 = vmatmul.mubr.msk.bf16.vlgmr.msra.gmra.mrb[24].mxu0 %vm914_vm3, %v5199_v7  ;;  %v1905_v58 = vpop.f32.mrb[35].mxu1  ;;  %vm1959_vm13 = vcmp.ge.f32.partialorder %v1951_v50, 0.0  ;;  %v5229_v60 = vld [vmem:[#allocation79_spill] sm:$0xff] }
 0xbde   : > { %v1968_v12 = vmul.f32 0.2, %v1952_v10  ;;  %v1956_v2 = vadd.f32 %v1905_v58, %v4700_v47  ;;  %1909 = vmatpush1.bf16.msra.mxu0 %v4474_v34  ;;  %1940 = vmatprep.mubr.bf16.mxu0 %v5167_v6  ;;  %vm1960_vm14 = vcmp.ge.f32.partialorder %v1952_v10, 0.0  ;;  %v5214_v47 = vld [vmem:[#allocation54_spill] sm:$0xff]  ;;  %v5215_v34 = vld [vmem:[#allocation55_spill] sm:$0xff]  ;;  %v5217_v6 = vld [vmem:[#allocation57_spill] sm:$0xff] }
 0xbdf   : > { %vm1963_vm15 = vcmp.ge.f32.partialorder %v1955_v52, 0.0  ;;  %v1971_v62 = vmul.f32 0.2, %v1955_v52  ;;  %1910 = vmatprep.subr.bf16.mxu0 %v4482_v39  ;;  %v1975_v54 = vsel %vm1959_vm13, %v1951_v50, %v1967_v56  ;;  %v5216_v39 = vld [vmem:[#allocation56_spill] sm:$0xff]  ;;  %v5224_v50 = vld [vmem:[#allocation74_spill] sm:$0xff] }
 0xbe0   : > { %vm1964_vm0 = vcmp.ge.f32.partialorder %v1956_v2, 0.0  ;;  %v1972_v3 = vmul.f32 0.2, %v1956_v2  ;;  %v1976_v7 = vsel %vm1960_vm14, %v1952_v10, %v1968_v12  ;;  %v5228_v10 = vld [vmem:[#allocation78_spill] sm:$0xff] }
 0xbe1   : > { %v1979_v9 = vsel %vm1963_vm15, %v1955_v52, %v1971_v62 }
 0xbe2   : > { %v1983_v63 = vpack.c.bf16 %v1979_v9, %v1975_v54  ;;  %v1980_v35 = vsel %vm1964_vm0, %v1956_v2, %v1972_v3  ;;  %1911 = vmatpush1.bf16.msra.mxu0 %v4494_v41  ;;  %v5220_v41 = vld [vmem:[#allocation61_spill] sm:$0xff] }
 0xbe3   : > { %v1984_v38 = vpack.c.bf16 %v1980_v35, %v1976_v7  ;;  %3156 = vmatprep.subr.bf16.mxu0 %v5214_v47  ;;  %v5230_v3 = vld [vmem:[#allocation81_spill] sm:$0xff]  ;;  %v5231_v7 = vld [vmem:[#allocation83_spill] sm:$0xff] }
 0xbe5   : > { %2019 = vmatprep.mubr.bf16.mxu1 %v1984_v38 }
 0xbe6   : > { %2020 = vmatmul.mubr.bf16.vlgmr.msra.gmra.mrb[36].mxu1 %v1983_v63 }
 0xbe7   : > { %3277 = vmatpush3.bf16.msra.mxu1 %v4503_v59 }
 0xbe9   : > { %3022 = vmatmul.mubr.msk.bf16.vlgmr.msra.gmra.mrb[24].mxu0 %vm351_vm2, %v4503_v59  ;;  %v5225_v59 = vld [vmem:[#allocation75_spill] sm:$0xff] }
 0xbea   : > { %3157 = vmatpush3.bf16.msra.mxu0 %v5215_v34  ;;  %v5232_v34 = vld [vmem:[#allocation84_spill] sm:$0xff] }
 0xbeb   : > { %3158 = vmatprep.subr.bf16.mxu0 %v5216_v39 }
 0xbee   : > { %3159 = vmatpush3.bf16.msra.mxu0 %v5217_v6 }
 0xbef   : > { %3160 = vmatprep.subr.bf16.mxu0 %v5218_v40 }
 0xbf2   : > { %3161 = vmatpush3.bf16.msra.mxu0 %v5219_v45 }
 0xbf3   : > { %3162 = vmatprep.subr.bf16.mxu0 %v5220_v41 }
 0xbf6   : > { %3163 = vmatpush3.bf16.msra.mxu0 %v5221_v49 }
 0xbf7   : > { %3164 = vmatprep.subr.bf16.mxu0 %v5222_v4 }
 0xbfa   : > { %3165 = vmatpush3.bf16.msra.mxu0 %v5223_v42 }
 0xbfb   : > { %3166 = vmatprep.subr.bf16.mxu0 %v5224_v50 }
 0xbfe   : > { %3167 = vmatpush3.bf16.msra.mxu0 %v5225_v59 }
 0xbff   : > { %3168 = vmatprep.subr.bf16.mxu0 %v5226_v44 }
 0xc02   : > { %3169 = vmatpush3.bf16.msra.mxu0 %v5227_v51 }
 0xc03   : > { %3170 = vmatprep.subr.bf16.mxu0 %v5228_v10 }
 0xc06   : > { %3171 = vmatpush3.bf16.msra.mxu0 %v5229_v60 }
 0xc07   : > { %3294 = vmatprep.subr.bf16.mxu0 %v3930_v37 }
 0xcb9   : > { %v3150_v56 = vpop.f32.mrb[36].mxu1 }
 0xcba   : > { %v3151_v52 = vpop.f32.mrb[37].mxu1 }
 0xcbb   : > { %v3152_v58 = vadd.f32 %v3151_v52, %v3150_v56  ;;  %v3153_v12 = vpop.f32.mrb[38].mxu1 }
 0xcbc   : > { %v1942_v2 = vpop.f32.mrb[24].mxu0  ;;  %v3154_v62 = vpop.f32.mrb[39].mxu1 }
 0xcbd   : > { %v1953_v54 = vadd.f32 %v1942_v2, %v5230_v3  ;;  %v3155_v9 = vadd.f32 %v3154_v62, %v3153_v12  ;;  %v1944_v63 = vpop.f32.mrb[25].mxu0 }
 0xcbe   : > { %v1954_v35 = vadd.f32 %v1944_v63, %v5231_v7  ;;  %v1946_v38 = vpop.f32.mrb[26].mxu0 }
 0xcbf   : > { %v1969_v47 = vmul.f32 0.2, %v1953_v54  ;;  %v1957_v39 = vadd.f32 %v1946_v38, %v5232_v34  ;;  %v1948_v6 = vpop.f32.mrb[27].mxu0  ;;  %vm1961_vm1 = vcmp.ge.f32.partialorder %v1953_v54, 0.0 }
 0xcc0   : > { %v1970_v40 = vmul.f32 0.2, %v1954_v35  ;;  %v1958_v45 = vadd.f32 %v1948_v6, %v4702_v1  ;;  %vm1962_vm4 = vcmp.ge.f32.partialorder %v1954_v35, 0.0 }
 0xcc1   : > { %vm1965_vm5 = vcmp.ge.f32.partialorder %v1957_v39, 0.0  ;;  %v1973_v41 = vmul.f32 0.2, %v1957_v39  ;;  %v1977_v4 = vsel %vm1961_vm1, %v1953_v54, %v1969_v47 }
 0xcc2   : > { %vm1966_vm6 = vcmp.ge.f32.partialorder %v1958_v45, 0.0  ;;  %v1974_v49 = vmul.f32 0.2, %v1958_v45  ;;  %v1978_v59 = vsel %vm1962_vm4, %v1954_v35, %v1970_v40 }
 0xcc3   : > { %v1981_v42 = vsel %vm1965_vm5, %v1957_v39, %v1973_v41 }
 0xcc4   : > { %v1985_v50 = vpack.c.bf16 %v1981_v42, %v1977_v4  ;;  %v1982_v44 = vsel %vm1966_vm6, %v1958_v45, %v1974_v49 }
 0xcc5   : > { %v1986_v51 = vpack.c.bf16 %v1982_v44, %v1978_v59 }
 0xcc7   : > { %2060 = vmatprep.mubr.bf16.mxu0 %v1986_v51 }
 0xcc8   : > { %2061 = vmatmul.mubr.bf16.vlgmr.msra.gmra.mrb[28].mxu0 %v1985_v50 }
 0xcc9   : > { %3310 = vmatprep.mubr.msk.bf16.mxu0 %vm3931_vm12, %v3930_v37 }
 0xd9b   : > { %v3172_v10 = vpop.f32.mrb[28].mxu0 }
 0xd9c   : > { %v3173_v60 = vpop.f32.mrb[29].mxu0 }
 0xd9d   : > { %v3174_v56 = vadd.f32 %v3173_v60, %v3172_v10  ;;  %v3175_v1 = vpop.f32.mrb[30].mxu0 }
 0xd9e   : > { %v3176_v52 = vpop.f32.mrb[31].mxu0 }
 0xd9f   : > { %v2063_v12 = vadd.f32 %v3174_v56, %v3152_v58  ;;  %v3177_v2 = vadd.f32 %v3176_v52, %v3175_v1 }
 0xda1   : > { %v2066_v62 = vadd.f32 %v3177_v2, %v3155_v9 }
 0xda3   : > { %v2069_v3 = vmax.f32 %v2063_v12, %v2066_v62 }
 0xda5   : > { %v2070_v54 = vrot.slane %v2069_v3, 4 }
 0xda7   : > { %v2071_v63 = vmax.f32 %v2069_v3, %v2070_v54 }
 0xda9   : > { %v2072_v7 = vrot.slane %v2071_v63, 2 }
 0xdab   : > { %v2073_v35 = vmax.f32 %v2071_v63, %v2072_v7  ;;  %v3490_v63 = vld [vmem:[%s4458_s24] sm:$0xff]   ;;  %v3491_v7 = vld [vmem:[%s4458_s24 + $0x8] sm:$0xff]   ;;  %s2878_s24 = sshll.u32 (%p575_p6), %s3934_s12, 4  ;;  %s2879_s24 = int_to_ptr.vmem [resolvable:$true] %s2878_s24 }
 0xdac   : > { %3314 = vmatprep.subr.bf16.mxu1 %v3490_v63  ;;  %s3830_s14 = scalar_lea.vmem (%p575_p6), %s2879_s24, 512  ;;  %p3835_p8 = scmp.lt.s32.totalorder (%p575_p6), %s2879_s24, %s2879_s24 }
 0xdad   : > { %v2074_v38 = vrot.slane %v2073_v35, 1  ;;  %p3831_p7 = scmp.ne.s32.totalorder (%p575_p6), %s2879_s24, %s3830_s14  ;;  %p3836_p9 = scmp.lt.s32.totalorder (%p575_p6), %s3830_s14, %s3830_s14 }
 0xdaf   : > { %v2075_v47 = vmax.f32 %v2073_v35, %v2074_v38  ;;  %p3837_p10 = por (%p575_p6), %p3836_p9, %p3835_p8 }
 0xdb1   : > { %v2076_v34 = vsub.f32 %v2063_v12, %v2075_v47  ;;  %v2077_v39 = vsub.f32 %v2066_v62, %v2075_v47  ;;  %p3838_p11 = pnand (%p575_p6), %p3837_p10, %p3831_p7 }
 0xdb3   : > { %v2078_v6 = vmul.f32 1.442695, %v2076_v34  ;;  %v2080_v40 = vmul.f32 1.442695, %v2077_v39 }
 0xdb5   : > { %3498 = vpow2.f32 %v2078_v6 }
 0xdb6   : > { %3500 = vpow2.f32 %v2080_v40 }
 0xdbf   : > { %v3499_v45 = vpop.eup %3498 }
 0xdc0   : > { %v3501_v41 = vpop.eup %3500 }
 0xdc1   : > { %v2082_v49 = vadd.f32 %v3501_v41, %v3499_v45 }
 0xdc3   : > { %v2083_v4 = vrot.slane %v2082_v49, 4 }
 0xdc5   : > { %v2084_v58 = vadd.f32 %v2083_v4, %v2082_v49 }
 0xdc7   : > { %v2085_v42 = vrot.slane %v2084_v58, 2 }
 0xdc9   : > { %v2086_v9 = vadd.f32 %v2085_v42, %v2084_v58 }
 0xdcb   : > { %v2087_v50 = vrot.slane %v2086_v9, 1 }
 0xdcd   : > { %v2088_v59 = vadd.f32 %v2087_v50, %v2086_v9 }
 0xdcf   : > { %3502 = vrcp.f32 %v2088_v59 }
 0xdd9   : > { %v3503_v44 = vpop.eup %3502 }
 0xdda   : > { %v2090_v51 = vmul.f32 %v3503_v44, %v3499_v45  ;;  %v2091_v10 = vmul.f32 %v3503_v44, %v3501_v41 }
 0xddc   : > { %v2092_v60 = vpack.c.bf16 %v2091_v10, %v2090_v51 }
 0xdde   : > { %2093 = vxpose.xlu1.c.b16.start.end [1/1] (short) %v2092_v60, 128 }
 0xe44   : > { %v2101_v56 = vpop.trf.xlu1 }
 0xe45   : > { %3278 = vmatprep.mubr.msk.bf16.mxu1 %vm914_vm3, %v2101_v56 }
 0xe48   : > { %v2102_v1 = vpop.trf.xlu1 }
 0xe49   : > { %3279 = vmatmul.mubr.msk.bf16.vlgmr.msra.gmra.mrb[40].mxu1 %vm914_vm3, %v2102_v1 }
 0xe4a   : > { %3315 = vmatpush3.bf16.msra.mxu1 %v3490_v63 }
 0xe4b   : > { %3316 = vmatprep.subr.bf16.mxu1 %v3491_v7 }
 0xe4c   : > { %v2103_v52 = vpop.trf.xlu1 }
 0xe4d   : > { %3282 = vmatprep.mubr.msk.bf16.mxu1 %vm914_vm3, %v2103_v52 }
 0xe4e   : > { %3317 = vmatpush3.bf16.msra.mxu1 %v3491_v7 }
 0xe50   : > { %v2104_v12 = vpop.trf.xlu1 }
 0xe51   : > { %3283 = vmatmul.mubr.msk.bf16.gmra.mrb[44].mxu1 %vm914_vm3, %v2104_v12 }
 0xe54   : > { %v2105_v2 = vpop.trf.xlu1 }
 0xe55   : > { %3286 = vmatprep.mubr.msk.bf16.mxu1 %vm914_vm3, %v2105_v2 }
 0xe58   : > { %v2106_v62 = vpop.trf.xlu1 }
 0xe59   : > { %3287 = vmatmul.mubr.msk.bf16.gmra.mrb[48].mxu1 %vm914_vm3, %v2106_v62 }
 0xe5c   : > { %v2107_v3 = vpop.trf.xlu1 }
 0xe5d   : > { %3290 = vmatprep.mubr.msk.bf16.mxu1 %vm914_vm3, %v2107_v3 }
 0xe60   : > { %v2108_v54 = vpop.trf.xlu1 }
 0xe61   : > { %3291 = vmatmul.mubr.msk.bf16.gmra.mrb[52].mxu1 %vm914_vm3, %v2108_v54  ;;  %vm2524_vm3 = vcmask (%p575_p6), 15360  }
 0xe62   : > { %3318 = vmatprep.mubr.msk.bf16.mxu1 %vm351_vm2, %v2295_v13 }
 0xf1c   : > { %v3280_v35 = vpop.f32.mrb[40].mxu1 }
 0xf1d   : > { %v2167_v38 = vpop.f32.mrb[41].mxu1 }
 0xf1e   : > { %v3281_v47 = vpop.f32.mrb[42].mxu1 }
 0xf1f   : > { %v2231_v34 = vpack.c.bf16 %v3281_v47, %v3280_v35  ;;  %v2170_v39 = vpop.f32.mrb[43].mxu1 }
 0xf20   : > { %v2230_v6 = vpack.c.bf16 %v2170_v39, %v2167_v38 }
 0xf21   : > { %v2239_v43 = vmul.bf16 %v4738_v61, %v2231_v34 }
 0xf22   : > { %v2238_v40 = vmul.bf16 %v4734_v11, %v2230_v6 }
 0xf24   : > { %v3284_v45 = vpop.f32.mrb[44].mxu1  ;;  %3295 = vmatpush3.bf16.msra.mxu0 %v2238_v40 }
 0xf25   : > { %v2183_v41 = vpop.f32.mrb[45].mxu1  ;;  %3296 = vmatprep.subr.bf16.mxu0 %v3930_v37 }
 0xf26   : > { %v3285_v53 = vpop.f32.mrb[46].mxu1 }
 0xf27   : > { %v2233_v13 = vpack.c.bf16 %v3285_v53, %v3284_v45  ;;  %v2186_v49 = vpop.f32.mrb[47].mxu1 }
 0xf28   : > { %v2232_v4 = vpack.c.bf16 %v2186_v49, %v2183_v41  ;;  %3297 = vmatpush3.bf16.msra.mxu0 %v2239_v43 }
 0xf29   : > { %3298 = vmatprep.subr.bf16.mxu0 %v3930_v37  ;;  %v2241_v11 = vmul.bf16 %v4750_v57, %v2233_v13 }
 0xf2a   : > { %v2240_v58 = vmul.bf16 %v4745_v5, %v2232_v4 }
 0xf2c   : > { %v3288_v42 = vpop.f32.mrb[48].mxu1  ;;  %3299 = vmatpush3.bf16.msra.mxu0 %v2240_v58 }
 0xf2d   : > { %v2199_v9 = vpop.f32.mrb[49].mxu1  ;;  %3300 = vmatprep.subr.bf16.mxu0 %v3930_v37 }
 0xf2e   : > { %v3289_v50 = vpop.f32.mrb[50].mxu1 }
 0xf2f   : > { %v2235_v59 = vpack.c.bf16 %v3289_v50, %v3288_v42  ;;  %v2202_v44 = vpop.f32.mrb[51].mxu1 }
 0xf30   : > { %v2234_v61 = vpack.c.bf16 %v2202_v44, %v2199_v9  ;;  %3301 = vmatpush3.bf16.msra.mxu0 %v2241_v11 }
 0xf31   : > { %3302 = vmatprep.subr.bf16.mxu0 %v3930_v37  ;;  %v2243_v5 = vmul.bf16 %v4762_v0, %v2235_v59 }
 0xf32   : > { %v2242_v51 = vmul.bf16 %v4757_v8, %v2234_v61 }
 0xf34   : > { %v3292_v10 = vpop.f32.mrb[52].mxu1  ;;  %3303 = vmatpush3.bf16.msra.mxu0 %v2242_v51 }
 0xf35   : > { %v2215_v60 = vpop.f32.mrb[53].mxu1  ;;  %3304 = vmatprep.subr.bf16.mxu0 %v3930_v37 }
 0xf36   : > { %v3293_v56 = vpop.f32.mrb[54].mxu1 }
 0xf37   : > { %v2237_v1 = vpack.c.bf16 %v3293_v56, %v3292_v10  ;;  %v2218_v52 = vpop.f32.mrb[55].mxu1 }
 0xf38   : > { %v2236_v57 = vpack.c.bf16 %v2218_v52, %v2215_v60  ;;  %3305 = vmatpush3.bf16.msra.mxu0 %v2243_v5 }
 0xf39   : > { %3306 = vmatprep.subr.bf16.mxu0 %v3930_v37  ;;  %v2245_v8 = vmul.bf16 %v4774_v46, %v2237_v1 }
 0xf3a   : > { %v2244_v12 = vmul.bf16 %v4769_v15, %v2236_v57  ;;  %v2299_v15 = vsub.s32 1, %v4821_v55 }
 0xf3c   : > { %3307 = vmatpush3.bf16.msra.mxu0 %v2244_v12 }
 0xf3d   : > { %3308 = vmatprep.subr.bf16.mxu0 %v3930_v37  ;;  %v2300_v37 = vrot.slane %v4824_v36, %v2299_v15 }
 0xf40   : > { %3309 = vmatpush3.bf16.msra.mxu0 %v2245_v8 }
 0xf43   : > { %3311 = vmatmul.mubr.bf16.vlgmr.msra.gmra.mrb[32].mxu0 %v4781_v48 }
0x1016   : > { %v2280_v2 = vpop.f32.mrb[32].mxu0 }
0x1017   : > { %v3312_v62 = vpop.f32.mrb[33].mxu0  ;;  %v2293_v3 = vadd.f32 %v4827_v14, %v2280_v2 }
0x1018   : > { %v2283_v0 = vpop.f32.mrb[34].mxu0 }
0x1019   : > { %v2294_v54 = vadd.f32 %v4827_v14, %v2283_v0  ;;  %v3313_v63 = vpop.f32.mrb[35].mxu0 }
0x101b   : > { %v2296_v7 = vpack.c.bf16 %v2294_v54, %v2293_v3 }
0x101d   : > { %3319 = vmatmul.mubr.msk.bf16.vlgmr.msra.gmra.mrb[56].mxu1 %vm351_vm2, %v2296_v7 }
0x10f0   : > { %v3320_v35 = vpop.f32.mrb[56].mxu1 }
0x10f1   : > { %v2353_v46 = vpop.f32.mrb[57].mxu1  ;;  %v2362_v34 = vadd.f32 %v3320_v35, %v2300_v37 }
0x10f2   : > { %v2354_v38 = vadd.f32 %v2353_v46, %v2300_v37  ;;  %v3321_v47 = vpop.f32.mrb[58].mxu1  ;;  %v2430_v46 = vsub.s32 3, %v4821_v55 }
0x10f3   : > { %v2356_v48 = vpop.f32.mrb[59].mxu1  ;;  %v2365_v40 = vadd.f32 %v3321_v47, %v2300_v37  ;;  %v2374_v45 = vsel %vm351_vm2, %v2362_v34, 0.0 }
0x10f4   : > { %v2357_v39 = vadd.f32 %v2356_v48, %v2300_v37  ;;  %v2368_v6 = vsel %vm351_vm2, %v2354_v38, 0.0  ;;  %v2422_v37 = vsub.s32 2, %v4821_v55  ;;  %v2431_v48 = vrot.slane %v4824_v36, %v2430_v46 }
0x10f5   : > { %2369 = vadd.xlane.f32.xlu0 %v2368_v6  ;;  %v2377_v41 = vsel %vm351_vm2, %v2365_v40, 0.0 }
0x10f6   : > { %v2371_v14 = vsel %vm351_vm2, %v2357_v39, 0.0 }
0x10f7   : > { %2372 = vadd.xlane.f32.xlu1 %v2371_v14 }
0x10f9   : > { %2375 = vadd.xlane.f32.xlu0 %v2374_v45 }
0x10fd   : > { %2378 = vadd.xlane.f32.xlu0 %v2377_v41 }
0x1182   : > { %v2370_v43 = vpop.xlane.xlu0 %2369 }
0x1183   : > { %v2380_v53 = vmul.f32 0.03125, %v2370_v43 }
0x1184   : > { %v2373_v13 = vpop.xlane.xlu1 %2372 }
0x1185   : > { %v2384_v49 = vsub.f32 %v2354_v38, %v2380_v53  ;;  %v2381_v4 = vmul.f32 0.03125, %v2373_v13  ;;  %v2423_v38 = vrot.slane %v4824_v36, %v2422_v37 }
0x1186   : > { %v2376_v58 = vpop.xlane.xlu0 %2375 }
0x1187   : > { %v2385_v42 = vsub.f32 %v2357_v39, %v2381_v4  ;;  %v2382_v9 = vmul.f32 0.03125, %v2376_v58  ;;  %v2388_v11 = vmul.f32 %v2384_v49, %v2384_v49 }
0x1189   : > { %v2386_v50 = vsub.f32 %v2362_v34, %v2382_v9  ;;  %v2392_v59 = vsel %vm351_vm2, %v2388_v11, 0.0  ;;  %v2389_v44 = vmul.f32 %v2385_v42, %v2385_v42  ;;  %v5233_v9 = vld [vmem:[#allocation51_spill] sm:$0xff] }
0x118a   : > { %2393 = vadd.xlane.f32.xlu1 %v2392_v59  ;;  %v2379_v61 = vpop.xlane.xlu0 %2378 }
0x118b   : > { %v2383_v51 = vmul.f32 0.03125, %v2379_v61  ;;  %v2395_v10 = vsel %vm351_vm2, %v2389_v44, 0.0  ;;  %v2390_v60 = vmul.f32 %v2386_v50, %v2386_v50  ;;  %v5234_v61 = vld [vmem:[#allocation50_spill] sm:$0xff] }
0x118c   : > { %2396 = vadd.xlane.f32.xlu0 %v2395_v10  ;;  %v5235_v10 = vld [vmem:[#allocation49_spill] sm:$0xff] }
0x118d   : > { %v2387_v5 = vsub.f32 %v2365_v40, %v2383_v51  ;;  %v2398_v56 = vsel %vm351_vm2, %v2390_v60, 0.0 }
0x118e   : > { %2399 = vadd.xlane.f32.xlu1 %v2398_v56 }
0x118f   : > { %v2391_v1 = vmul.f32 %v2387_v5, %v2387_v5 }
0x1191   : > { %v2401_v52 = vsel %vm351_vm2, %v2391_v1, 0.0  ;;  %v5236_v1 = vld [vmem:[#allocation48_spill] sm:$0xff] }
0x1192   : > { %2402 = vadd.xlane.f32.xlu0 %v2401_v52 }
0x1217   : > { %v2394_v57 = vpop.xlane.xlu1 %2393 }
0x1218   : > { %v2404_v12 = vmul.f32 0.03125, %v2394_v57  ;;  %v3513_v57 = vld [vmem:[#allocation17 + $0x8] sm:$0xff] (%p575_p6)  }
0x1219   : > { %v2397_v8 = vpop.xlane.xlu0 %2396 }
0x121a   : > { %v2408_v2 = vadd.f32 1e-05, %v2404_v12  ;;  %v2405_v62 = vmul.f32 0.03125, %v2397_v8  ;;  %v3514_v12 = vld [vmem:[#allocation20] sm:$0xff] (%p575_p6)   ;;  %v3515_v8 = vld [vmem:[#allocation20 + $0x8] sm:$0xff] (%p575_p6)  }
0x121b   : > { %v2400_v0 = vpop.xlane.xlu1 %2399  ;;  %3330 = vmatprep.subr.bf16.mxu1 (%p575_p6), %v3514_v12 }
0x121c   : > { %3504 = vrsqrt.f32 %v2408_v2  ;;  %v2409_v3 = vadd.f32 1e-05, %v2405_v62  ;;  %v2406_v54 = vmul.f32 0.03125, %v2400_v0  ;;  %v3516_v2 = vld [vmem:[#allocation22] sm:$0xff] (%p575_p6)   ;;  %3331 = vmatpush3.bf16.msra.mxu1 (%p575_p6), %v3514_v12  ;;  %v5241_v0 = vld [vmem:[#allocation32_spill] sm:$0xff] (%p575_p6) }
0x121d   :  { %3332 = vmatprep.subr.bf16.mxu1 (%p575_p6), %v3515_v8 }
0x121e   : > { %3506 = vrsqrt.f32 %v2409_v3  ;;  %v2410_v63 = vadd.f32 1e-05, %v2406_v54  ;;  %v5242_v3 = vld [vmem:[#allocation33_spill] sm:$0xff] (%p575_p6) }
0x121f   : > { %v2403_v7 = vpop.xlane.xlu0 %2402  ;;  %v2605_v16 = vpack.c.bf16 (%p575_p6), %v5242_v3, %v5241_v0 }
0x1220   : > { %3508 = vrsqrt.f32 %v2410_v63  ;;  %v2407_v15 = vmul.f32 0.03125, %v2403_v7  ;;  %3333 = vmatpush3.bf16.msra.mxu1 (%p575_p6), %v3515_v8 }
0x1221   :  { %3346 = vmatprep.subr.bf16.mxu1 (%p575_p6), %v3518_v21 }
0x1222   : > { %v2411_v35 = vadd.f32 1e-05, %v2407_v15 }
0x1224   : > { %3510 = vrsqrt.f32 %v2411_v35 }
0x1226   : > { %v3505_v47 = vpop.eup %3504 }
0x1227   : > { %v2416_v34 = vmul.f32 %v3505_v47, %v2384_v49 }
0x1228   : > { %v3507_v39 = vpop.eup %3506 }
0x1229   : > { %v2424_v6 = vmul.f32 %v2423_v38, %v2416_v34  ;;  %v2417_v14 = vmul.f32 %v3507_v39, %v2385_v42 }
0x122a   : > { %v3509_v40 = vpop.eup %3508 }
0x122b   : > { %v2432_v45 = vadd.f32 %v2431_v48, %v2424_v6  ;;  %v2425_v41 = vmul.f32 %v2423_v38, %v2417_v14  ;;  %v2418_v43 = vmul.f32 %v3509_v40, %v2386_v50  ;;  %v3512_v50 = vld [vmem:[#allocation17] sm:$0xff] (%p575_p6)  }
0x122c   :  { %3322 = vmatprep.subr.bf16.mxu0 (%p575_p6), %v3512_v50 }
0x122d   : > { %v2436_v53 = vmax.f32 %v2432_v45, 0.0  ;;  %v2433_v13 = vadd.f32 %v2431_v48, %v2425_v41  ;;  %v2426_v4 = vmul.f32 %v2423_v38, %v2418_v43  ;;  %3323 = vmatpush3.bf16.msra.mxu0 (%p575_p6), %v3512_v50 }
0x122e   : > { %v3511_v58 = vpop.eup %3510  ;;  %3324 = vmatprep.subr.bf16.mxu0 (%p575_p6), %v3513_v57 }
0x122f   : > { %v2440_v55 = vadd.f32 %v5233_v9, %v2436_v53   ;;  %v2437_v11 = vmax.f32 %v2433_v13, 0.0  ;;  %v2434_v59 = vadd.f32 %v2431_v48, %v2426_v4  ;;  %v2419_v44 = vmul.f32 %v3511_v58, %v2387_v5 }
0x1231   : > { %v2441_v51 = vadd.f32 %v5234_v61, %v2437_v11   ;;  %v2438_v36 = vmax.f32 %v2434_v59, 0.0  ;;  %v2427_v49 = vmul.f32 %v2423_v38, %v2419_v44  ;;  %v5240_v53 = vmov %v2440_v55  ;;  %3325 = vmatpush3.bf16.msra.mxu0 (%p575_p6), %v3513_v57 }
0x1232   :  { %3338 = vmatprep.subr.bf16.mxu0 (%p575_p6), %v3516_v2 }
0x1233   : > { %v2442_v60 = vadd.f32 %v5235_v10, %v2438_v36   ;;  %v2435_v42 = vadd.f32 %v2431_v48, %v2427_v49  ;;  %v5239_v37 = vmov %v2441_v51  ;;  %577 = sbr.rel (!%p575_p6) target bundleno = 1364 (0x554), region = 177  ;;  %v2448_v5 = vpack.c.bf16 (%p575_p6), %v2441_v51, %v2440_v55 }
0x1235   : > { %v2439_v56 = vmax.f32 %v2435_v42, 0.0  ;;  %v5238_v58 = vmov %v2442_v60  ;;  %3326 = vmatprep.mubr.msk.bf16.mxu0 (%p575_p6), %vm351_vm2, %v2448_v5  ;;  %3334 = vmatprep.mubr.msk.bf16.mxu1 (%p575_p6), %vm351_vm2, %v2448_v5 }
0x1237   : > { %v2443_v52 = vadd.f32 %v5236_v1, %v2439_v56  }
0x1239   : > { %v5237_v61 = vmov %v2443_v52  ;;  %v2449_v62 = vpack.c.bf16 (%p575_p6), %v2443_v52, %v2442_v60 }
0x123b   :  { %3327 = vmatmul.mubr.msk.bf16.vlgmr.msra.gmra.mrb[0].mxu0 %vm351_vm2, %v2449_v62  ;;  %3335 = vmatmul.mubr.msk.bf16.vlgmr.msra.gmra.mrb[0].mxu1 %vm351_vm2, %v2449_v62 }
0x123c   :  { %3339 = vmatpush3.bf16.msra.mxu0 %v3516_v2  ;;  %3342 = vmatprep.mubr.msk.bf16.mxu0 %vm351_vm2, %v2605_v16 }
0x123d   :  { %3340 = vmatprep.subr.bf16.mxu0 %v3517_v17  ;;  %3347 = vmatpush3.bf16.msra.mxu1 %v3518_v21 }
0x123e   :  { %3348 = vmatprep.subr.bf16.mxu1 %v3519_v22 }
0x1240   :  { %3341 = vmatpush3.bf16.msra.mxu0 %v3517_v17 }
0x1241   :  { %3349 = vmatpush3.bf16.msra.mxu1 %v3519_v22 }
0x1243   :  { %3343 = vmatmul.mubr.msk.bf16.vlgmr.msra.gmra.mrb[4].mxu0 %vm351_vm2, %v2606_v20 }
0x130e   :  { %v3328_v24 = vpop.f32.mrb[0].mxu0  ;;  %v3336_v29 = vpop.f32.mrb[0].mxu1 }
0x130f   :  { %v2518_v25 = vadd.f32 %v3328_v24, %v3035_v23  ;;  %v2509_v26 = vpop.f32.mrb[1].mxu0  ;;  %v2586_v33 = vpop.f32.mrb[1].mxu1  ;;  %v2595_v7 = vadd.f32 %v3336_v29, %v3040_v30 }
0x1310   :  { %v2510_v27 = vadd.f32 %v3035_v23, %v2509_v26  ;;  %v3329_v28 = vpop.f32.mrb[2].mxu0  ;;  %v3337_v63 = vpop.f32.mrb[2].mxu1  ;;  %v2587_v37 = vadd.f32 %v3040_v30, %v2586_v33 }
0x1311   :  { %2527 = vst.msk [vmem:[%s5246_s15 + $0x10] sm:$0xff] %vm2524_vm3, %v2518_v25  ;;  %v2521_v31 = vadd.f32 %v3329_v28, %v3035_v23  ;;  %v2512_v32 = vpop.f32.mrb[3].mxu0  ;;  %v2589_v15 = vpop.f32.mrb[3].mxu1  ;;  %v4973_v46 = vadd.f32 %v3337_v63, %v3040_v30 }
0x1312   :  { %2525 = vst.msk [vmem:[%s5246_s15] sm:$0xff] %vm2524_vm3, %v2510_v27  ;;  %v2513_v54 = vadd.f32 %v3035_v23, %v2512_v32  ;;  %v2590_v48 = vadd.f32 %v3040_v30, %v2589_v15 }
0x1313   :  { %2528 = vst.msk [vmem:[%s5246_s15 + $0x18] sm:$0xff] %vm2524_vm3, %v2521_v31 }
0x1314   :  { %2526 = vst.msk [vmem:[%s5246_s15 + $0x8] sm:$0xff] %vm2524_vm3, %v2513_v54 }
0x1316   :  { %v3344_v35 = vpop.f32.mrb[4].mxu0 }
0x1317   :  { %v2676_v38 = vadd.f32 %v3344_v35, %v2595_v7  ;;  %v2659_v47 = vpop.f32.mrb[5].mxu0 }
0x1318   :  { %v2674_v34 = vadd.f32 %v2659_v47, %v2587_v37  ;;  %v3345_v39 = vpop.f32.mrb[6].mxu0 }
0x1319   :  { %v3051_v6 = vmul.f32 -1.442695, %v2676_v38  ;;  %v2677_v14 = vadd.f32 %v3345_v39, %v4973_v46  ;;  %v2662_v40 = vpop.f32.mrb[7].mxu0 }
0x131a   :  { %v3049_v45 = vmul.f32 -1.442695, %v2674_v34  ;;  %v2675_v41 = vadd.f32 %v2662_v40, %v2590_v48 }
0x131b   :  { %3520 = vpow2.f32 %v3051_v6  ;;  %v3052_v43 = vmul.f32 -1.442695, %v2677_v14 }
0x131c   :  { %3522 = vpow2.f32 %v3049_v45  ;;  %v3050_v53 = vmul.f32 -1.442695, %v2675_v41 }
0x131d   :  { %3524 = vpow2.f32 %v3052_v43 }
0x131e   :  { %3526 = vpow2.f32 %v3050_v53 }
0x1325   :  { %v3521_v13 = vpop.eup %3520 }
0x1326   :  { %v3523_v4 = vpop.eup %3522  ;;  %v2692_v58 = vadd.f32 1.0, %v3521_v13 }
0x1327   :  { %v3525_v9 = vpop.eup %3524  ;;  %v2690_v55 = vadd.f32 1.0, %v3523_v4 }
0x1328   :  { %v3527_v11 = vpop.eup %3526  ;;  %3528 = vrcp.f32 %v2692_v58  ;;  %v2693_v59 = vadd.f32 1.0, %v3525_v9 }
0x1329   :  { %3530 = vrcp.f32 %v2690_v55  ;;  %v2691_v44 = vadd.f32 1.0, %v3527_v11 }
0x132a   :  { %3532 = vrcp.f32 %v2693_v59 }
0x132b   :  { %3534 = vrcp.f32 %v2691_v44 }
0x1332   :  { %v4976_v61 = vpop.eup %3528 }
0x1333   :  { %v3531_v51 = vpop.eup %3530  ;;  %v2704_v56 = vmul.f32 %v4976_v61, %v5243_v18  ;;  %v2825_v33 = vsub.f32 1.0, %v4976_v61 }
0x1334   :  { %v4978_v36 = vpop.eup %3532  ;;  %v2702_v60 = vmul.f32 %v3531_v51, %v5241_v0  ;;  %v2823_v26 = vsub.f32 1.0, %v3531_v51 }
0x1335   :  { %v3535_v49 = vpop.eup %3534  ;;  %v2705_v10 = vmul.f32 %v4978_v36, %v5244_v19  ;;  %v2826_v47 = vsub.f32 1.0, %v4978_v36 }
0x1336   :  { %v2703_v42 = vmul.f32 %v3535_v49, %v5242_v3  ;;  %v2824_v32 = vsub.f32 1.0, %v3535_v49 }
0x1337   :  { %v2711_v52 = vpack.c.bf16 %v2705_v10, %v2704_v56 }
0x1338   :  { %v2710_v1 = vpack.c.bf16 %v2703_v42, %v2702_v60 }
0x133a   :  { %3350 = vmatprep.mubr.msk.bf16.mxu1 %vm351_vm2, %v2710_v1 }
0x133b   :  { %3351 = vmatmul.mubr.msk.bf16.vlgmr.msra.gmra.mrb[4].mxu1 %vm351_vm2, %v2711_v52 }
0x140e   :  { %v3352_v50 = vpop.f32.mrb[4].mxu1 }
0x140f   :  { %2787 = vrot.lane.b32.xlu1 %v3352_v50, %s3909_s25  ;;  %v2764_v5 = vpop.f32.mrb[5].mxu1 }
0x1410   :  { %2783 = vrot.lane.b32.xlu0 %v2764_v5, %s3909_s25  ;;  %v3353_v57 = vpop.f32.mrb[6].mxu1 }
0x1411   :  { %v2767_v12 = vpop.f32.mrb[7].mxu1 }
0x1413   :  { %2789 = vrot.lane.b32.xlu1 %v3353_v57, %s3909_s25 }
0x1414   :  { %2785 = vrot.lane.b32.xlu0 %v2767_v12, %s3909_s25  ;;  %s3933_s25 = smov 96  }
0x1417   :  { %2809 = vrot.lane.b32.xlu1 %v5242_v3, %s3932_s22 }
0x1418   :  { %2807 = vrot.lane.b32.xlu0 %v5241_v0, %s3932_s22 }
0x141b   :  { %2813 = vrot.lane.b32.xlu1 %v5244_v19, %s3932_s22 }
0x141c   :  { %2811 = vrot.lane.b32.xlu0 %v5243_v18, %s3932_s22 }
0x1481   :  { %v2788_v8 = vpop.permute.xlu1 %2787 }
0x1482   :  { %v2784_v2 = vpop.permute.xlu0 %2783  ;;  %v2797_v16 = vadd.f32 %v2788_v8, %v2595_v7 }
0x1483   :  { %v2795_v62 = vadd.f32 %v2784_v2, %v2587_v37 }
0x1485   :  { %3536 = vtanh.f32 %v2795_v62  ;;  %v2790_v17 = vpop.permute.xlu1 %2789 }
0x1486   :  { %v2786_v20 = vpop.permute.xlu0 %2785  ;;  %3538 = vtanh.f32 %v2797_v16  ;;  %v2798_v22 = vadd.f32 %v2790_v17, %v4973_v46 }
0x1487   :  { %v2796_v21 = vadd.f32 %v2786_v20, %v2590_v48 }
0x1489   :  { %3540 = vtanh.f32 %v2796_v21  ;;  %v2810_v24 = vpop.permute.xlu1 %2809 }
0x148a   :  { %3542 = vtanh.f32 %v2798_v22  ;;  %v2808_v23 = vpop.permute.xlu0 %2807  ;;  %v2820_v7 = vmul.f32 %v3535_v49, %v2810_v24 }
0x148b   :  { %v2819_v29 = vmul.f32 %v3531_v51, %v2808_v23 }
0x148d   :  { %v2814_v27 = vpop.permute.xlu1 %2813 }
0x148e   :  { %v2812_v25 = vpop.permute.xlu0 %2811  ;;  %v2822_v34 = vmul.f32 %v4978_v36, %v2814_v27 }
0x148f   :  { %v3537_v3 = vpop.eup %3536  ;;  %v2821_v15 = vmul.f32 %v4976_v61, %v2812_v25 }
0x1490   :  { %2831 = vrot.lane.b32.xlu0 %v3537_v3, %s3933_s25  ;;  %v3539_v0 = vpop.eup %3538 }
0x1493   :  { %v3541_v19 = vpop.eup %3540 }
0x1494   :  { %2835 = vrot.lane.b32.xlu0 %v3539_v0, %s3933_s25  ;;  %2833 = vrot.lane.b32.xlu1 %v3541_v19, %s3933_s25  ;;  %v3543_v18 = vpop.eup %3542 }
0x1498   :  { %2837 = vrot.lane.b32.xlu1 %v3543_v18, %s3933_s25 }
0x1502   :  { %v2832_v28 = vpop.permute.xlu0 %2831 }
0x1503   :  { %v2843_v30 = vmul.f32 %v2832_v28, %v2823_v26 }
0x1505   :  { %v2847_v31 = vadd.f32 %v2843_v30, %v2819_v29 }
0x1506   :  { %v2834_v54 = vpop.permute.xlu1 %2833  ;;  %v2836_v63 = vpop.permute.xlu0 %2835 }
0x1507   :  { %v2844_v37 = vmul.f32 %v2834_v54, %v2824_v32  ;;  %v2845_v35 = vmul.f32 %v2836_v63, %v2825_v33  ;;  %2855 = vrot.lane.b32.xlu0 %v2847_v31, %s3933_s25 }
0x1509   :  { %v2848_v46 = vadd.f32 %v2844_v37, %v2820_v7  ;;  %v2849_v38 = vadd.f32 %v2845_v35, %v2821_v15 }
0x150a   :  { %v2838_v48 = vpop.permute.xlu1 %2837 }
0x150b   :  { %v2846_v39 = vmul.f32 %v2838_v48, %v2826_v47  ;;  %2857 = vrot.lane.b32.xlu1 %v2848_v46, %s3933_s25  ;;  %2859 = vrot.lane.b32.xlu0 %v2849_v38, %s3933_s25 }
0x150d   :  { %v2850_v6 = vadd.f32 %v2846_v39, %v2822_v34 }
0x150f   :  { %2861 = vrot.lane.b32.xlu1 %v2850_v6, %s3933_s25 }
0x1579   :  { %v2856_v14 = vpop.permute.xlu0 %2855 }
0x157a   :  { %2867 = vst.msk [vmem:[#allocation23] sm:$0xff] %vm351_vm2, %v2856_v14 }
0x157d   :  { %v2858_v40 = vpop.permute.xlu1 %2857  ;;  %v2860_v45 = vpop.permute.xlu0 %2859 }
0x157e   :  { %2868 = vst.msk [vmem:[#allocation23 + $0x8] sm:$0xff] %vm351_vm2, %v2858_v40  ;;  %2869 = vst.msk [vmem:[#allocation23 + $0x10] sm:$0xff] %vm351_vm2, %v2860_v45 }
0x1581   :  { %v2862_v41 = vpop.permute.xlu1 %2861 }
0x1582   :  { %2870 = vst.msk [vmem:[#allocation23 + $0x18] sm:$0xff] %vm351_vm2, %v2862_v41 }
0x1583   :  { %3841 = shalt.err (!%p3838_p11)
}
0x1584   :  { %s5247_s28 = sld [smem:[#allocation94_spill]] }
0x158a   :  { %s3842_s11 = scalar_lea.hbm %s5247_s28, 512 }
0x158b   :  { %p3843_p12 = scmp.ne.s32.totalorder %s5247_s28, %s3842_s11  ;;  %p3846_p13 = scmp.lt.u32.totalorder %s3842_s11, %s5247_s28 }
0x158d   :  { %p3848_p0 = pnand %p3846_p13, %p3843_p12 }
0x158f   :  { %3851 = shalt.err (!%p3848_p0)
}
0x1590   :  { %2884 = dma.vmem_to_hbm [thread:$0]  %s2879_s24, 512, %s5247_s28, [#allocation4], %s3917_s13, %s3917_s13, %s3918_s27  }
0x1591   :  { %3886 = dma.done.wait [#allocation4], 512  }
0x1592   :  { %3887 = vsyncadd [#allocation4], 4294966784 }
0x1593   :  { %2890 = vsyncpa [#allocation3], 1 }
0x1594   :  { %2891 = vsyncpa [#allocation6], 1 }
0x1595   :  { %2892 = vsyncpa [#allocation9], 1 }
0x1596   :  { %2893 = vsyncpa [#allocation12], 1 }
0x1597   :  { %2894 = vsyncpa [#allocation15], 1 }
0x1598   :  { %2895 = vsyncpa [#allocation18], 1 }
0x1599   :  { %2896 = vsyncpa [#allocation21], 1 }
0x159a   :  { %2897 = vsyncpa [#allocation4], 1 }

</bundles_post_ra>
